<compile_context>
chip_gen: v5e
topology: v5e:2x2
jax: 0.10.0
libtpu: 0.0.40
codegen_flags: <defaults>
</compile_context>

<pallas_src>
import functools
import jax
import jax.numpy as jnp
from jax import lax
from jax.experimental import pallas as pl
from jax.experimental.pallas import tpu as pltpu


# ----------------------------- fused kernel --------------------------------

def _fused_lstm_fc_kernel(*refs, n_layers, num_dirs, hidden_dim, batch, seq_len):
    """Fused multi-layer bidirectional LSTM + final Linear.

    refs layout:
      refs[0]                       : x        (T*B, E)   bf16   embedded input, time-major rows
      refs[1 : 1+3*L*D]             : per (layer, dir): w_ih (Din,4H) bf16, w_hh (H,4H) bf16, b (1,4H) f32
      refs[1+3*L*D]                 : fc_w     (D*H, O)   bf16
      refs[2+3*L*D]                 : fc_b     (1, O)     f32
      refs[3+3*L*D]                 : out      (B, O)     f32   (output)
      refs[4+3*L*D : ]              : scratch: seq_a (T*B, D*H) f32, seq_b (T*B, D*H) f32,
                                               gx (T*B, 4H) f32
    """
    H, B, T = hidden_dim, batch, seq_len
    n_w = n_layers * num_dirs * 3

    x_ref = refs[0]
    w_refs = refs[1:1 + n_w]
    fc_w_ref = refs[1 + n_w]
    fc_b_ref = refs[2 + n_w]
    out_ref = refs[3 + n_w]
    seq_a, seq_b, gx_sc = refs[4 + n_w:]

    layer_in_ref = x_ref
    seq_bufs = [seq_a, seq_b]
    last_finals = None

    for layer in range(n_layers):
        is_last = (layer == n_layers - 1)
        out_sc = seq_bufs[layer % 2]
        finals = []

        # Read the whole layer input once (bf16 operand for the big matmul).
        x_in = layer_in_ref[...]
        if x_in.dtype != jnp.bfloat16:
            x_in = x_in.astype(jnp.bfloat16)

        for d in range(num_dirs):
            base = (layer * num_dirs + d) * 3
            w_ih = w_refs[base][...]       # (Din, 4H) bf16
            w_hh = w_refs[base + 1][...]   # (H, 4H)   bf16
            bias = w_refs[base + 2][...]   # (1, 4H)   f32

            # Hoisted input projection: one MXU-friendly (T*B, Din) @ (Din, 4H) matmul,
            # bias folded in here (loaded once, not per timestep).
            gx_sc[...] = (jnp.dot(x_in, w_ih, preferred_element_type=jnp.float32)
                          + bias)

            def step(s, carry, _d=d):
                h, c = carry                                   # f32 (B, H) vreg carries
                t = (T - 1 - s) if _d == 1 else s              # reverse dir: index, no flip
                g_x = gx_sc[pl.ds(t * B, B), :]                # (B, 4H)
                gates = g_x + jnp.dot(h.astype(jnp.bfloat16), w_hh,
                                      preferred_element_type=jnp.float32)
                sig = jax.nn.sigmoid(gates)                    # one wide EUP pass (i, f, o)
                i_g = sig[:, 0 * H:1 * H]
                f_g = sig[:, 1 * H:2 * H]
                o_g = sig[:, 3 * H:4 * H]
                g_g = jnp.tanh(gates[:, 2 * H:3 * H])
                c = f_g * c + i_g * g_g
                h = o_g * jnp.tanh(c)
                if not is_last:
                    # next layer's input: forward half / backward half columns
                    out_sc[pl.ds(t * B, B), pl.ds(_d * H, H)] = h
                return (h, c)

            h0 = jnp.zeros((B, H), jnp.float32)
            c0 = jnp.zeros((B, H), jnp.float32)
            h_fin, _ = lax.fori_loop(0, T, step, (h0, c0), unroll=True)
            finals.append(h_fin)

        last_finals = finals
        layer_in_ref = out_sc

    # torch: hidden = cat((hidden[-2], hidden[-1]), dim=1); dropout is identity at inference.
    hidden = jnp.concatenate(last_finals, axis=-1)             # (B, num_dirs*H) f32
    logits = (jnp.dot(hidden.astype(jnp.bfloat16), fc_w_ref[...],
                      preferred_element_type=jnp.float32)
              + fc_b_ref[...])
    out_ref[...] = logits.astype(out_ref.dtype)


# ----------------------------- wrapper --------------------------------------

def lstm_classifier_forward(params, text, *, n_layers, hidden_dim, bidirectional=True):
    """text: (B, T) int32 token ids. Returns logits (B, output_dim)."""
    B, T = text.shape
    num_dirs = 2 if bidirectional else 1
    H = hidden_dim

    # Embedding gather (XLA glue); dropout identity at inference.
    emb = jnp.take(params["embedding"], text, axis=0)              # (B, T, E) f32
    E = emb.shape[-1]
    # time-major, flattened: row block for time t is rows t*B:(t+1)*B
    x = jnp.transpose(emb, (1, 0, 2)).reshape(T * B, E).astype(jnp.bfloat16)

    w_inputs, w_specs = [], []
    for layer in range(n_layers):
        in_dim = E if layer == 0 else H * num_dirs
        for d in range(num_dirs):
            sfx = f"l{layer}" + ("_reverse" if d == 1 else "")
            w_inputs += [params[f"w_ih_{sfx}"],
                         params[f"w_hh_{sfx}"],
                         params[f"b_{sfx}"].reshape(1, 4 * H)]
            w_specs += [pl.BlockSpec((in_dim, 4 * H), lambda i: (0, 0)),
                        pl.BlockSpec((H, 4 * H), lambda i: (0, 0)),
                        pl.BlockSpec((1, 4 * H), lambda i: (0, 0))]

    fc_w = params["fc_w"]                                          # (num_dirs*H, O) bf16
    fc_b = params["fc_b"].reshape(1, -1)                           # (1, O) f32
    OUT = fc_w.shape[1]

    kernel = functools.partial(
        _fused_lstm_fc_kernel,
        n_layers=n_layers, num_dirs=num_dirs,
        hidden_dim=H, batch=B, seq_len=T)

    return pl.pallas_call(
        kernel,
        grid=(1,),
        in_specs=[pl.BlockSpec((T * B, E), lambda i: (0, 0))] + w_specs + [
            pl.BlockSpec((H * num_dirs, OUT), lambda i: (0, 0)),
            pl.BlockSpec((1, OUT), lambda i: (0, 0)),
        ],
        out_specs=pl.BlockSpec((B, OUT), lambda i: (0, 0)),
        out_shape=jax.ShapeDtypeStruct((B, OUT), jnp.float32),
        scratch_shapes=[
            pltpu.VMEM((T * B, H * num_dirs), jnp.float32),        # layer output ping
            pltpu.VMEM((T * B, H * num_dirs), jnp.float32),        # layer output pong
            pltpu.VMEM((T * B, 4 * H), jnp.float32),               # hoisted input projection
        ],
        compiler_params=pltpu.CompilerParams(
            dimension_semantics=("arbitrary",)),
    )(x, *w_inputs, fc_w, fc_b)


# ----------------------------- params & reference ---------------------------

def init_params(key, vocab_size, embedding_dim, hidden_dim, output_dim,
                n_layers, pad_idx, bidirectional=True):
    params = {}
    k_emb, key = jax.random.split(key)
    emb = jax.random.normal(k_emb, (vocab_size, embedding_dim), jnp.float32)
    emb = emb.at[pad_idx].set(0.0)   # nn.Embedding zeros the padding_idx row
    params["embedding"] = emb

    num_dirs = 2 if bidirectional else 1
    k = 1.0 / jnp.sqrt(hidden_dim)
    for layer in range(n_layers):
        in_dim = embedding_dim if layer == 0 else hidden_dim * num_dirs
        for d in range(num_dirs):
            sfx = f"l{layer}" + ("_reverse" if d == 1 else "")
            key, k1, k2, k3, k4 = jax.random.split(key, 5)
            # Stored transposed for the kernel ((Din,4H)/(H,4H)); gate order [i,f,g,o]
            # along the 4H axis is preserved (required when loading real torch weights).
            params[f"w_ih_{sfx}"] = jax.random.uniform(
                k1, (in_dim, 4 * hidden_dim), jnp.float32, -k, k).astype(jnp.bfloat16)
            params[f"w_hh_{sfx}"] = jax.random.uniform(
                k2, (hidden_dim, 4 * hidden_dim), jnp.float32, -k, k).astype(jnp.bfloat16)
            b_ih = jax.random.uniform(k3, (4 * hidden_dim,), jnp.float32, -k, k)
            b_hh = jax.random.uniform(k4, (4 * hidden_dim,), jnp.float32, -k, k)
            params[f"b_{sfx}"] = b_ih + b_hh

    fc_in = hidden_dim * num_dirs
    key, k1, k2 = jax.random.split(key, 3)
    kf = 1.0 / jnp.sqrt(fc_in)
    params["fc_w"] = jax.random.uniform(
        k1, (fc_in, output_dim), jnp.float32, -kf, kf).astype(jnp.bfloat16)
    params["fc_b"] = jax.random.uniform(k2, (output_dim,), jnp.float32, -kf, kf)
    return params


def _ref_forward(params, text, *, n_layers, hidden_dim, bidirectional=True):
    """Pure-JAX reference mirroring the kernel's arithmetic (bf16 MXU operands, f32 state)."""
    num_dirs = 2 if bidirectional else 1
    H = hidden_dim
    B, T = text.shape
    emb = jnp.take(params["embedding"], text, axis=0)
    x = jnp.transpose(emb, (1, 0, 2)).astype(jnp.bfloat16)         # (T, B, E)
    last_finals = None
    for layer in range(n_layers):
        outs, finals = [], []
        for d in range(num_dirs):
            sfx = f"l{layer}" + ("_reverse" if d == 1 else "")
            w_ih = params[f"w_ih_{sfx}"].astype(jnp.float32)
            w_hh = params[f"w_hh_{sfx}"].astype(jnp.float32)
            b = params[f"b_{sfx}"]
            xs = x[::-1] if d == 1 else x
            gx = jnp.einsum("tbd,dg->tbg", xs.astype(jnp.float32), w_ih) + b

            def step(carry, g_x):
                h, c = carry
                gates = g_x + jnp.dot(h.astype(jnp.bfloat16).astype(jnp.float32), w_hh)
                i = jax.nn.sigmoid(gates[:, 0 * H:1 * H])
                f = jax.nn.sigmoid(gates[:, 1 * H:2 * H])
                g = jnp.tanh(gates[:, 2 * H:3 * H])
                o = jax.nn.sigmoid(gates[:, 3 * H:4 * H])
                c = f * c + i * g
                h = o * jnp.tanh(c)
                return (h, c), h

            (h_fin, _), hs = lax.scan(
                step, (jnp.zeros((B, H), jnp.float32), jnp.zeros((B, H), jnp.float32)), gx)
            hs = hs[::-1] if d == 1 else hs
            outs.append(hs)
            finals.append(h_fin)
        x = jnp.concatenate(outs, axis=-1).astype(jnp.bfloat16)
        last_finals = finals
    hidden = jnp.concatenate(last_finals, axis=-1)
    return (jnp.dot(hidden.astype(jnp.bfloat16).astype(jnp.float32),
                    params["fc_w"].astype(jnp.float32)) + params["fc_b"])


# ----------------------------- main ------------------------------------------

if __name__ == "__main__":
    VOCAB, EMB, HIDDEN, OUT = 50, 16, 32, 3
    N_LAYERS, PAD_IDX = 2, 0
    B, T = 2, 8

    key = jax.random.PRNGKey(0)
    k_params, k_text = jax.random.split(key)
    params = init_params(k_params, VOCAB, EMB, HIDDEN, OUT, N_LAYERS, PAD_IDX,
                         bidirectional=True)
    text = jax.random.randint(k_text, (B, T), 1, VOCAB, dtype=jnp.int32)
    text = text.at[0, -2:].set(PAD_IDX)   # some padding tokens (fed through, as in the torch spec)

    logits = lstm_classifier_forward(params, text, n_layers=N_LAYERS,
                                     hidden_dim=HIDDEN, bidirectional=True)
    logits = jax.block_until_ready(logits)

    ref = _ref_forward(params, text, n_layers=N_LAYERS, hidden_dim=HIDDEN,
                       bidirectional=True)

    assert logits.shape == (B, OUT)
    assert bool(jnp.all(jnp.isfinite(logits)))
    assert bool(jnp.allclose(logits, ref, atol=2e-2, rtol=2e-2)), (logits, ref)
    print("KERNEL_OK")
</pallas_src>

<mosaic_0001>
module attributes {stable_mosaic.version = 11 : i64} {
  func.func @_fused_lstm_fc_kernel(%arg0: i32, %arg1: memref<16x16xbf16, #tpu.memory_space<vmem>>, %arg2: memref<16x128xbf16, #tpu.memory_space<vmem>>, %arg3: memref<32x128xbf16, #tpu.memory_space<vmem>>, %arg4: memref<1x128xf32, #tpu.memory_space<vmem>>, %arg5: memref<16x128xbf16, #tpu.memory_space<vmem>>, %arg6: memref<32x128xbf16, #tpu.memory_space<vmem>>, %arg7: memref<1x128xf32, #tpu.memory_space<vmem>>, %arg8: memref<64x128xbf16, #tpu.memory_space<vmem>>, %arg9: memref<32x128xbf16, #tpu.memory_space<vmem>>, %arg10: memref<1x128xf32, #tpu.memory_space<vmem>>, %arg11: memref<64x128xbf16, #tpu.memory_space<vmem>>, %arg12: memref<32x128xbf16, #tpu.memory_space<vmem>>, %arg13: memref<1x128xf32, #tpu.memory_space<vmem>>, %arg14: memref<64x3xbf16, #tpu.memory_space<vmem>>, %arg15: memref<1x3xf32, #tpu.memory_space<vmem>>, %arg16: memref<2x3xf32, #tpu.memory_space<vmem>>, %arg17: memref<16x64xf32, #tpu.memory_space<vmem>>, %arg18: memref<16x64xf32, #tpu.memory_space<vmem>>, %arg19: memref<16x128xf32, #tpu.memory_space<vmem>>) attributes {dimension_semantics = [#tpu.dimension_semantics<arbitrary>], iteration_bounds = array<i64: 1>, scalar_prefetch = 0 : i64, scratch_operands = 3 : i64, tpu.core_type = #tpu.core_type<tc>, window_params = [{pipeline_mode = #tpu.pipeline_mode<synchronous>, transform_indices = @transform_0, window_bounds = array<i64: 16, 16>}, {pipeline_mode = #tpu.pipeline_mode<synchronous>, transform_indices = @transform_1, window_bounds = array<i64: 16, 128>}, {pipeline_mode = #tpu.pipeline_mode<synchronous>, transform_indices = @transform_2, window_bounds = array<i64: 32, 128>}, {pipeline_mode = #tpu.pipeline_mode<synchronous>, transform_indices = @transform_3, window_bounds = array<i64: 1, 128>}, {pipeline_mode = #tpu.pipeline_mode<synchronous>, transform_indices = @transform_4, window_bounds = array<i64: 16, 128>}, {pipeline_mode = #tpu.pipeline_mode<synchronous>, transform_indices = @transform_5, window_bounds = array<i64: 32, 128>}, {pipeline_mode = #tpu.pipeline_mode<synchronous>, transform_indices = @transform_6, window_bounds = array<i64: 1, 128>}, {pipeline_mode = #tpu.pipeline_mode<synchronous>, transform_indices = @transform_7, window_bounds = array<i64: 64, 128>}, {pipeline_mode = #tpu.pipeline_mode<synchronous>, transform_indices = @transform_8, window_bounds = array<i64: 32, 128>}, {pipeline_mode = #tpu.pipeline_mode<synchronous>, transform_indices = @transform_9, window_bounds = array<i64: 1, 128>}, {pipeline_mode = #tpu.pipeline_mode<synchronous>, transform_indices = @transform_10, window_bounds = array<i64: 64, 128>}, {pipeline_mode = #tpu.pipeline_mode<synchronous>, transform_indices = @transform_11, window_bounds = array<i64: 32, 128>}, {pipeline_mode = #tpu.pipeline_mode<synchronous>, transform_indices = @transform_12, window_bounds = array<i64: 1, 128>}, {pipeline_mode = #tpu.pipeline_mode<synchronous>, transform_indices = @transform_13, window_bounds = array<i64: 64, 3>}, {pipeline_mode = #tpu.pipeline_mode<synchronous>, transform_indices = @transform_14, window_bounds = array<i64: 1, 3>}, {pipeline_mode = #tpu.pipeline_mode<synchronous>, transform_indices = @transform_15, window_bounds = array<i64: 2, 3>}]} {
    %c0 = arith.constant 0 : index
    %c0_0 = arith.constant 0 : index
    %0 = vector.load %arg1[%c0, %c0_0] : memref<16x16xbf16, #tpu.memory_space<vmem>>, vector<16x16xbf16>
    %c0_1 = arith.constant 0 : index
    %c0_2 = arith.constant 0 : index
    %1 = vector.load %arg2[%c0_1, %c0_2] : memref<16x128xbf16, #tpu.memory_space<vmem>>, vector<16x128xbf16>
    %c0_3 = arith.constant 0 : index
    %c0_4 = arith.constant 0 : index
    %2 = vector.load %arg3[%c0_3, %c0_4] : memref<32x128xbf16, #tpu.memory_space<vmem>>, vector<32x128xbf16>
    %c0_5 = arith.constant 0 : index
    %c0_6 = arith.constant 0 : index
    %3 = vector.load %arg4[%c0_5, %c0_6] : memref<1x128xf32, #tpu.memory_space<vmem>>, vector<1x128xf32>
    %cst = arith.constant dense<0.000000e+00> : vector<16x128xf32>
    %4 = tpu.matmul %0, %1, %cst {dimension_numbers = #tpu.dot_dimension_numbers<[1], [0], [0], [1], [0, 0, 1, 1], [], []>} : vector<16x16xbf16>, vector<16x128xbf16>, vector<16x128xf32> -> vector<16x128xf32>
    %5 = vector.broadcast %3 : vector<1x128xf32> to vector<16x128xf32>
    %6 = arith.addf %4, %5 : vector<16x128xf32>
    %c0_7 = arith.constant 0 : index
    %c0_8 = arith.constant 0 : index
    %7 = vector.load %arg19[%c0_7, %c0_8] : memref<16x128xf32, #tpu.memory_space<vmem>>, vector<16x128xf32>
    tpu.vector_store %arg19[%c0_7, %c0_8], %6 {strides = array<i32>} : memref<16x128xf32, #tpu.memory_space<vmem>>, vector<16x128xf32>,
    %cst_9 = arith.constant 0.000000e+00 : f32
    %8 = vector.broadcast %cst_9 : f32 to vector<2x32xf32>
    %cst_10 = arith.constant 0.000000e+00 : f32
    %9 = vector.broadcast %cst_10 : f32 to vector<2x32xf32>
    %c0_i32 = arith.constant 0 : i32
    %c2_i32 = arith.constant 2 : i32
    %10 = arith.muli %c0_i32, %c2_i32 : i32
    %11 = arith.index_cast %10 : i32 to index
    %c0_11 = arith.constant 0 : index
    %12 = vector.load %arg19[%11, %c0_11] : memref<16x128xf32, #tpu.memory_space<vmem>>, vector<2x128xf32>
    %13 = arith.truncf %8 : vector<2x32xf32> to vector<2x32xbf16>
    %cst_12 = arith.constant dense<0.000000e+00> : vector<2x128xf32>
    %14 = tpu.matmul %13, %2, %cst_12 {dimension_numbers = #tpu.dot_dimension_numbers<[1], [0], [0], [1], [0, 0, 1, 1], [], []>} : vector<2x32xbf16>, vector<32x128xbf16>, vector<2x128xf32> -> vector<2x128xf32>
    %15 = arith.addf %12, %14 : vector<2x128xf32>
    %16 = arith.negf %15 : vector<2x128xf32>
    %17 = math.exp %16 : vector<2x128xf32>
    %cst_13 = arith.constant 1.000000e+00 : f32
    %18 = vector.broadcast %cst_13 : f32 to vector<2x128xf32>
    %19 = arith.addf %18, %17 : vector<2x128xf32>
    %20 = arith.divf %18, %19 : vector<2x128xf32>
    %21 = vector.extract_strided_slice %20 {offsets = [0, 0], sizes = [2, 32], strides = [1, 1]} : vector<2x128xf32> to vector<2x32xf32>
    %22 = vector.extract_strided_slice %20 {offsets = [0, 32], sizes = [2, 32], strides = [1, 1]} : vector<2x128xf32> to vector<2x32xf32>
    %23 = vector.extract_strided_slice %20 {offsets = [0, 96], sizes = [2, 32], strides = [1, 1]} : vector<2x128xf32> to vector<2x32xf32>
    %24 = vector.extract_strided_slice %15 {offsets = [0, 64], sizes = [2, 32], strides = [1, 1]} : vector<2x128xf32> to vector<2x32xf32>
    %25 = math.tanh %24 : vector<2x32xf32>
    %26 = arith.mulf %22, %9 : vector<2x32xf32>
    %27 = arith.mulf %21, %25 : vector<2x32xf32>
    %28 = arith.addf %26, %27 : vector<2x32xf32>
    %29 = math.tanh %28 : vector<2x32xf32>
    %30 = arith.mulf %23, %29 : vector<2x32xf32>
    %c2_i32_14 = arith.constant 2 : i32
    %31 = arith.muli %c0_i32, %c2_i32_14 : i32
    %32 = arith.index_cast %31 : i32 to index
    %c0_15 = arith.constant 0 : index
    %33 = vector.load %arg17[%32, %c0_15] : memref<16x64xf32, #tpu.memory_space<vmem>>, vector<2x32xf32>
    tpu.vector_store %arg17[%32, %c0_15], %30 {strides = array<i32>} : memref<16x64xf32, #tpu.memory_space<vmem>>, vector<2x32xf32>,
    %c1_i32 = arith.constant 1 : i32
    %c2_i32_16 = arith.constant 2 : i32
    %34 = arith.muli %c1_i32, %c2_i32_16 : i32
    %35 = arith.index_cast %34 : i32 to index
    %c0_17 = arith.constant 0 : index
    %36 = vector.load %arg19[%35, %c0_17] : memref<16x128xf32, #tpu.memory_space<vmem>>, vector<2x128xf32>
    %37 = arith.truncf %30 : vector<2x32xf32> to vector<2x32xbf16>
    %cst_18 = arith.constant dense<0.000000e+00> : vector<2x128xf32>
    %38 = tpu.matmul %37, %2, %cst_18 {dimension_numbers = #tpu.dot_dimension_numbers<[1], [0], [0], [1], [0, 0, 1, 1], [], []>} : vector<2x32xbf16>, vector<32x128xbf16>, vector<2x128xf32> -> vector<2x128xf32>
    %39 = arith.addf %36, %38 : vector<2x128xf32>
    %40 = arith.negf %39 : vector<2x128xf32>
    %41 = math.exp %40 : vector<2x128xf32>
    %cst_19 = arith.constant 1.000000e+00 : f32
    %42 = vector.broadcast %cst_19 : f32 to vector<2x128xf32>
    %43 = arith.addf %42, %41 : vector<2x128xf32>
    %44 = arith.divf %42, %43 : vector<2x128xf32>
    %45 = vector.extract_strided_slice %44 {offsets = [0, 0], sizes = [2, 32], strides = [1, 1]} : vector<2x128xf32> to vector<2x32xf32>
    %46 = vector.extract_strided_slice %44 {offsets = [0, 32], sizes = [2, 32], strides = [1, 1]} : vector<2x128xf32> to vector<2x32xf32>
    %47 = vector.extract_strided_slice %44 {offsets = [0, 96], sizes = [2, 32], strides = [1, 1]} : vector<2x128xf32> to vector<2x32xf32>
    %48 = vector.extract_strided_slice %39 {offsets = [0, 64], sizes = [2, 32], strides = [1, 1]} : vector<2x128xf32> to vector<2x32xf32>
    %49 = math.tanh %48 : vector<2x32xf32>
    %50 = arith.mulf %46, %28 : vector<2x32xf32>
    %51 = arith.mulf %45, %49 : vector<2x32xf32>
    %52 = arith.addf %50, %51 : vector<2x32xf32>
    %53 = math.tanh %52 : vector<2x32xf32>
    %54 = arith.mulf %47, %53 : vector<2x32xf32>
    %c2_i32_20 = arith.constant 2 : i32
    %55 = arith.muli %c1_i32, %c2_i32_20 : i32
    %56 = arith.index_cast %55 : i32 to index
    %c0_21 = arith.constant 0 : index
    %57 = vector.load %arg17[%56, %c0_21] : memref<16x64xf32, #tpu.memory_space<vmem>>, vector<2x32xf32>
    tpu.vector_store %arg17[%56, %c0_21], %54 {strides = array<i32>} : memref<16x64xf32, #tpu.memory_space<vmem>>, vector<2x32xf32>,
    %c2_i32_22 = arith.constant 2 : i32
    %c2_i32_23 = arith.constant 2 : i32
    %58 = arith.muli %c2_i32_22, %c2_i32_23 : i32
    %59 = arith.index_cast %58 : i32 to index
    %c0_24 = arith.constant 0 : index
    %60 = vector.load %arg19[%59, %c0_24] : memref<16x128xf32, #tpu.memory_space<vmem>>, vector<2x128xf32>
    %61 = arith.truncf %54 : vector<2x32xf32> to vector<2x32xbf16>
    %cst_25 = arith.constant dense<0.000000e+00> : vector<2x128xf32>
    %62 = tpu.matmul %61, %2, %cst_25 {dimension_numbers = #tpu.dot_dimension_numbers<[1], [0], [0], [1], [0, 0, 1, 1], [], []>} : vector<2x32xbf16>, vector<32x128xbf16>, vector<2x128xf32> -> vector<2x128xf32>
    %63 = arith.addf %60, %62 : vector<2x128xf32>
    %64 = arith.negf %63 : vector<2x128xf32>
    %65 = math.exp %64 : vector<2x128xf32>
    %cst_26 = arith.constant 1.000000e+00 : f32
    %66 = vector.broadcast %cst_26 : f32 to vector<2x128xf32>
    %67 = arith.addf %66, %65 : vector<2x128xf32>
    %68 = arith.divf %66, %67 : vector<2x128xf32>
    %69 = vector.extract_strided_slice %68 {offsets = [0, 0], sizes = [2, 32], strides = [1, 1]} : vector<2x128xf32> to vector<2x32xf32>
    %70 = vector.extract_strided_slice %68 {offsets = [0, 32], sizes = [2, 32], strides = [1, 1]} : vector<2x128xf32> to vector<2x32xf32>
    %71 = vector.extract_strided_slice %68 {offsets = [0, 96], sizes = [2, 32], strides = [1, 1]} : vector<2x128xf32> to vector<2x32xf32>
    %72 = vector.extract_strided_slice %63 {offsets = [0, 64], sizes = [2, 32], strides = [1, 1]} : vector<2x128xf32> to vector<2x32xf32>
    %73 = math.tanh %72 : vector<2x32xf32>
    %74 = arith.mulf %70, %52 : vector<2x32xf32>
    %75 = arith.mulf %69, %73 : vector<2x32xf32>
    %76 = arith.addf %74, %75 : vector<2x32xf32>
    %77 = math.tanh %76 : vector<2x32xf32>
    %78 = arith.mulf %71, %77 : vector<2x32xf32>
    %c2_i32_27 = arith.constant 2 : i32
    %79 = arith.muli %c2_i32_22, %c2_i32_27 : i32
    %80 = arith.index_cast %79 : i32 to index
    %c0_28 = arith.constant 0 : index
    %81 = vector.load %arg17[%80, %c0_28] : memref<16x64xf32, #tpu.memory_space<vmem>>, vector<2x32xf32>
    tpu.vector_store %arg17[%80, %c0_28], %78 {strides = array<i32>} : memref<16x64xf32, #tpu.memory_space<vmem>>, vector<2x32xf32>,
    %c3_i32 = arith.constant 3 : i32
    %c2_i32_29 = arith.constant 2 : i32
    %82 = arith.muli %c3_i32, %c2_i32_29 : i32
    %83 = arith.index_cast %82 : i32 to index
    %c0_30 = arith.constant 0 : index
    %84 = vector.load %arg19[%83, %c0_30] : memref<16x128xf32, #tpu.memory_space<vmem>>, vector<2x128xf32>
    %85 = arith.truncf %78 : vector<2x32xf32> to vector<2x32xbf16>
    %cst_31 = arith.constant dense<0.000000e+00> : vector<2x128xf32>
    %86 = tpu.matmul %85, %2, %cst_31 {dimension_numbers = #tpu.dot_dimension_numbers<[1], [0], [0], [1], [0, 0, 1, 1], [], []>} : vector<2x32xbf16>, vector<32x128xbf16>, vector<2x128xf32> -> vector<2x128xf32>
    %87 = arith.addf %84, %86 : vector<2x128xf32>
    %88 = arith.negf %87 : vector<2x128xf32>
    %89 = math.exp %88 : vector<2x128xf32>
    %cst_32 = arith.constant 1.000000e+00 : f32
    %90 = vector.broadcast %cst_32 : f32 to vector<2x128xf32>
    %91 = arith.addf %90, %89 : vector<2x128xf32>
    %92 = arith.divf %90, %91 : vector<2x128xf32>
    %93 = vector.extract_strided_slice %92 {offsets = [0, 0], sizes = [2, 32], strides = [1, 1]} : vector<2x128xf32> to vector<2x32xf32>
    %94 = vector.extract_strided_slice %92 {offsets = [0, 32], sizes = [2, 32], strides = [1, 1]} : vector<2x128xf32> to vector<2x32xf32>
    %95 = vector.extract_strided_slice %92 {offsets = [0, 96], sizes = [2, 32], strides = [1, 1]} : vector<2x128xf32> to vector<2x32xf32>
    %96 = vector.extract_strided_slice %87 {offsets = [0, 64], sizes = [2, 32], strides = [1, 1]} : vector<2x128xf32> to vector<2x32xf32>
    %97 = math.tanh %96 : vector<2x32xf32>
    %98 = arith.mulf %94, %76 : vector<2x32xf32>
    %99 = arith.mulf %93, %97 : vector<2x32xf32>
    %100 = arith.addf %98, %99 : vector<2x32xf32>
    %101 = math.tanh %100 : vector<2x32xf32>
    %102 = arith.mulf %95, %101 : vector<2x32xf32>
    %c2_i32_33 = arith.constant 2 : i32
    %103 = arith.muli %c3_i32, %c2_i32_33 : i32
    %104 = arith.index_cast %103 : i32 to index
    %c0_34 = arith.constant 0 : index
    %105 = vector.load %arg17[%104, %c0_34] : memref<16x64xf32, #tpu.memory_space<vmem>>, vector<2x32xf32>
    tpu.vector_store %arg17[%104, %c0_34], %102 {strides = array<i32>} : memref<16x64xf32, #tpu.memory_space<vmem>>, vector<2x32xf32>,
    %c4_i32 = arith.constant 4 : i32
    %c2_i32_35 = arith.constant 2 : i32
    %106 = arith.muli %c4_i32, %c2_i32_35 : i32
    %107 = arith.index_cast %106 : i32 to index
    %c0_36 = arith.constant 0 : index
    %108 = vector.load %arg19[%107, %c0_36] : memref<16x128xf32, #tpu.memory_space<vmem>>, vector<2x128xf32>
    %109 = arith.truncf %102 : vector<2x32xf32> to vector<2x32xbf16>
    %cst_37 = arith.constant dense<0.000000e+00> : vector<2x128xf32>
    %110 = tpu.matmul %109, %2, %cst_37 {dimension_numbers = #tpu.dot_dimension_numbers<[1], [0], [0], [1], [0, 0, 1, 1], [], []>} : vector<2x32xbf16>, vector<32x128xbf16>, vector<2x128xf32> -> vector<2x128xf32>
    %111 = arith.addf %108, %110 : vector<2x128xf32>
    %112 = arith.negf %111 : vector<2x128xf32>
    %113 = math.exp %112 : vector<2x128xf32>
    %cst_38 = arith.constant 1.000000e+00 : f32
    %114 = vector.broadcast %cst_38 : f32 to vector<2x128xf32>
    %115 = arith.addf %114, %113 : vector<2x128xf32>
    %116 = arith.divf %114, %115 : vector<2x128xf32>
    %117 = vector.extract_strided_slice %116 {offsets = [0, 0], sizes = [2, 32], strides = [1, 1]} : vector<2x128xf32> to vector<2x32xf32>
    %118 = vector.extract_strided_slice %116 {offsets = [0, 32], sizes = [2, 32], strides = [1, 1]} : vector<2x128xf32> to vector<2x32xf32>
    %119 = vector.extract_strided_slice %116 {offsets = [0, 96], sizes = [2, 32], strides = [1, 1]} : vector<2x128xf32> to vector<2x32xf32>
    %120 = vector.extract_strided_slice %111 {offsets = [0, 64], sizes = [2, 32], strides = [1, 1]} : vector<2x128xf32> to vector<2x32xf32>
    %121 = math.tanh %120 : vector<2x32xf32>
    %122 = arith.mulf %118, %100 : vector<2x32xf32>
    %123 = arith.mulf %117, %121 : vector<2x32xf32>
    %124 = arith.addf %122, %123 : vector<2x32xf32>
    %125 = math.tanh %124 : vector<2x32xf32>
    %126 = arith.mulf %119, %125 : vector<2x32xf32>
    %c2_i32_39 = arith.constant 2 : i32
    %127 = arith.muli %c4_i32, %c2_i32_39 : i32
    %128 = arith.index_cast %127 : i32 to index
    %c0_40 = arith.constant 0 : index
    %129 = vector.load %arg17[%128, %c0_40] : memref<16x64xf32, #tpu.memory_space<vmem>>, vector<2x32xf32>
    tpu.vector_store %arg17[%128, %c0_40], %126 {strides = array<i32>} : memref<16x64xf32, #tpu.memory_space<vmem>>, vector<2x32xf32>,
    %c5_i32 = arith.constant 5 : i32
    %c2_i32_41 = arith.constant 2 : i32
    %130 = arith.muli %c5_i32, %c2_i32_41 : i32
    %131 = arith.index_cast %130 : i32 to index
    %c0_42 = arith.constant 0 : index
    %132 = vector.load %arg19[%131, %c0_42] : memref<16x128xf32, #tpu.memory_space<vmem>>, vector<2x128xf32>
    %133 = arith.truncf %126 : vector<2x32xf32> to vector<2x32xbf16>
    %cst_43 = arith.constant dense<0.000000e+00> : vector<2x128xf32>
    %134 = tpu.matmul %133, %2, %cst_43 {dimension_numbers = #tpu.dot_dimension_numbers<[1], [0], [0], [1], [0, 0, 1, 1], [], []>} : vector<2x32xbf16>, vector<32x128xbf16>, vector<2x128xf32> -> vector<2x128xf32>
    %135 = arith.addf %132, %134 : vector<2x128xf32>
    %136 = arith.negf %135 : vector<2x128xf32>
    %137 = math.exp %136 : vector<2x128xf32>
    %cst_44 = arith.constant 1.000000e+00 : f32
    %138 = vector.broadcast %cst_44 : f32 to vector<2x128xf32>
    %139 = arith.addf %138, %137 : vector<2x128xf32>
    %140 = arith.divf %138, %139 : vector<2x128xf32>
    %141 = vector.extract_strided_slice %140 {offsets = [0, 0], sizes = [2, 32], strides = [1, 1]} : vector<2x128xf32> to vector<2x32xf32>
    %142 = vector.extract_strided_slice %140 {offsets = [0, 32], sizes = [2, 32], strides = [1, 1]} : vector<2x128xf32> to vector<2x32xf32>
    %143 = vector.extract_strided_slice %140 {offsets = [0, 96], sizes = [2, 32], strides = [1, 1]} : vector<2x128xf32> to vector<2x32xf32>
    %144 = vector.extract_strided_slice %135 {offsets = [0, 64], sizes = [2, 32], strides = [1, 1]} : vector<2x128xf32> to vector<2x32xf32>
    %145 = math.tanh %144 : vector<2x32xf32>
    %146 = arith.mulf %142, %124 : vector<2x32xf32>
    %147 = arith.mulf %141, %145 : vector<2x32xf32>
    %148 = arith.addf %146, %147 : vector<2x32xf32>
    %149 = math.tanh %148 : vector<2x32xf32>
    %150 = arith.mulf %143, %149 : vector<2x32xf32>
    %c2_i32_45 = arith.constant 2 : i32
    %151 = arith.muli %c5_i32, %c2_i32_45 : i32
    %152 = arith.index_cast %151 : i32 to index
    %c0_46 = arith.constant 0 : index
    %153 = vector.load %arg17[%152, %c0_46] : memref<16x64xf32, #tpu.memory_space<vmem>>, vector<2x32xf32>
    tpu.vector_store %arg17[%152, %c0_46], %150 {strides = array<i32>} : memref<16x64xf32, #tpu.memory_space<vmem>>, vector<2x32xf32>,
    %c6_i32 = arith.constant 6 : i32
    %c2_i32_47 = arith.constant 2 : i32
    %154 = arith.muli %c6_i32, %c2_i32_47 : i32
    %155 = arith.index_cast %154 : i32 to index
    %c0_48 = arith.constant 0 : index
    %156 = vector.load %arg19[%155, %c0_48] : memref<16x128xf32, #tpu.memory_space<vmem>>, vector<2x128xf32>
    %157 = arith.truncf %150 : vector<2x32xf32> to vector<2x32xbf16>
    %cst_49 = arith.constant dense<0.000000e+00> : vector<2x128xf32>
    %158 = tpu.matmul %157, %2, %cst_49 {dimension_numbers = #tpu.dot_dimension_numbers<[1], [0], [0], [1], [0, 0, 1, 1], [], []>} : vector<2x32xbf16>, vector<32x128xbf16>, vector<2x128xf32> -> vector<2x128xf32>
    %159 = arith.addf %156, %158 : vector<2x128xf32>
    %160 = arith.negf %159 : vector<2x128xf32>
    %161 = math.exp %160 : vector<2x128xf32>
    %cst_50 = arith.constant 1.000000e+00 : f32
    %162 = vector.broadcast %cst_50 : f32 to vector<2x128xf32>
    %163 = arith.addf %162, %161 : vector<2x128xf32>
    %164 = arith.divf %162, %163 : vector<2x128xf32>
    %165 = vector.extract_strided_slice %164 {offsets = [0, 0], sizes = [2, 32], strides = [1, 1]} : vector<2x128xf32> to vector<2x32xf32>
    %166 = vector.extract_strided_slice %164 {offsets = [0, 32], sizes = [2, 32], strides = [1, 1]} : vector<2x128xf32> to vector<2x32xf32>
    %167 = vector.extract_strided_slice %164 {offsets = [0, 96], sizes = [2, 32], strides = [1, 1]} : vector<2x128xf32> to vector<2x32xf32>
    %168 = vector.extract_strided_slice %159 {offsets = [0, 64], sizes = [2, 32], strides = [1, 1]} : vector<2x128xf32> to vector<2x32xf32>
    %169 = math.tanh %168 : vector<2x32xf32>
    %170 = arith.mulf %166, %148 : vector<2x32xf32>
    %171 = arith.mulf %165, %169 : vector<2x32xf32>
    %172 = arith.addf %170, %171 : vector<2x32xf32>
    %173 = math.tanh %172 : vector<2x32xf32>
    %174 = arith.mulf %167, %173 : vector<2x32xf32>
    %c2_i32_51 = arith.constant 2 : i32
    %175 = arith.muli %c6_i32, %c2_i32_51 : i32
    %176 = arith.index_cast %175 : i32 to index
    %c0_52 = arith.constant 0 : index
    %177 = vector.load %arg17[%176, %c0_52] : memref<16x64xf32, #tpu.memory_space<vmem>>, vector<2x32xf32>
    tpu.vector_store %arg17[%176, %c0_52], %174 {strides = array<i32>} : memref<16x64xf32, #tpu.memory_space<vmem>>, vector<2x32xf32>,
    %c7_i32 = arith.constant 7 : i32
    %c2_i32_53 = arith.constant 2 : i32
    %178 = arith.muli %c7_i32, %c2_i32_53 : i32
    %179 = arith.index_cast %178 : i32 to index
    %c0_54 = arith.constant 0 : index
    %180 = vector.load %arg19[%179, %c0_54] : memref<16x128xf32, #tpu.memory_space<vmem>>, vector<2x128xf32>
    %181 = arith.truncf %174 : vector<2x32xf32> to vector<2x32xbf16>
    %cst_55 = arith.constant dense<0.000000e+00> : vector<2x128xf32>
    %182 = tpu.matmul %181, %2, %cst_55 {dimension_numbers = #tpu.dot_dimension_numbers<[1], [0], [0], [1], [0, 0, 1, 1], [], []>} : vector<2x32xbf16>, vector<32x128xbf16>, vector<2x128xf32> -> vector<2x128xf32>
    %183 = arith.addf %180, %182 : vector<2x128xf32>
    %184 = arith.negf %183 : vector<2x128xf32>
    %185 = math.exp %184 : vector<2x128xf32>
    %cst_56 = arith.constant 1.000000e+00 : f32
    %186 = vector.broadcast %cst_56 : f32 to vector<2x128xf32>
    %187 = arith.addf %186, %185 : vector<2x128xf32>
    %188 = arith.divf %186, %187 : vector<2x128xf32>
    %189 = vector.extract_strided_slice %188 {offsets = [0, 0], sizes = [2, 32], strides = [1, 1]} : vector<2x128xf32> to vector<2x32xf32>
    %190 = vector.extract_strided_slice %188 {offsets = [0, 32], sizes = [2, 32], strides = [1, 1]} : vector<2x128xf32> to vector<2x32xf32>
    %191 = vector.extract_strided_slice %188 {offsets = [0, 96], sizes = [2, 32], strides = [1, 1]} : vector<2x128xf32> to vector<2x32xf32>
    %192 = vector.extract_strided_slice %183 {offsets = [0, 64], sizes = [2, 32], strides = [1, 1]} : vector<2x128xf32> to vector<2x32xf32>
    %193 = math.tanh %192 : vector<2x32xf32>
    %194 = arith.mulf %190, %172 : vector<2x32xf32>
    %195 = arith.mulf %189, %193 : vector<2x32xf32>
    %196 = arith.addf %194, %195 : vector<2x32xf32>
    %197 = math.tanh %196 : vector<2x32xf32>
    %198 = arith.mulf %191, %197 : vector<2x32xf32>
    %c2_i32_57 = arith.constant 2 : i32
    %199 = arith.muli %c7_i32, %c2_i32_57 : i32
    %200 = arith.index_cast %199 : i32 to index
    %c0_58 = arith.constant 0 : index
    %201 = vector.load %arg17[%200, %c0_58] : memref<16x64xf32, #tpu.memory_space<vmem>>, vector<2x32xf32>
    tpu.vector_store %arg17[%200, %c0_58], %198 {strides = array<i32>} : memref<16x64xf32, #tpu.memory_space<vmem>>, vector<2x32xf32>,
    %c8_i32 = arith.constant 8 : i32
    %c0_59 = arith.constant 0 : index
    %c0_60 = arith.constant 0 : index
    %202 = vector.load %arg5[%c0_59, %c0_60] : memref<16x128xbf16, #tpu.memory_space<vmem>>, vector<16x128xbf16>
    %c0_61 = arith.constant 0 : index
    %c0_62 = arith.constant 0 : index
    %203 = vector.load %arg6[%c0_61, %c0_62] : memref<32x128xbf16, #tpu.memory_space<vmem>>, vector<32x128xbf16>
    %c0_63 = arith.constant 0 : index
    %c0_64 = arith.constant 0 : index
    %204 = vector.load %arg7[%c0_63, %c0_64] : memref<1x128xf32, #tpu.memory_space<vmem>>, vector<1x128xf32>
    %cst_65 = arith.constant dense<0.000000e+00> : vector<16x128xf32>
    %205 = tpu.matmul %0, %202, %cst_65 {dimension_numbers = #tpu.dot_dimension_numbers<[1], [0], [0], [1], [0, 0, 1, 1], [], []>} : vector<16x16xbf16>, vector<16x128xbf16>, vector<16x128xf32> -> vector<16x128xf32>
    %206 = vector.broadcast %204 : vector<1x128xf32> to vector<16x128xf32>
    %207 = arith.addf %205, %206 : vector<16x128xf32>
    %c0_66 = arith.constant 0 : index
    %c0_67 = arith.constant 0 : index
    %208 = vector.load %arg19[%c0_66, %c0_67] : memref<16x128xf32, #tpu.memory_space<vmem>>, vector<16x128xf32>
    tpu.vector_store %arg19[%c0_66, %c0_67], %207 {strides = array<i32>} : memref<16x128xf32, #tpu.memory_space<vmem>>, vector<16x128xf32>,
    %cst_68 = arith.constant 0.000000e+00 : f32
    %209 = vector.broadcast %cst_68 : f32 to vector<2x32xf32>
    %cst_69 = arith.constant 0.000000e+00 : f32
    %210 = vector.broadcast %cst_69 : f32 to vector<2x32xf32>
    %c0_i32_70 = arith.constant 0 : i32
    %c7_i32_71 = arith.constant 7 : i32
    %211 = arith.subi %c7_i32_71, %c0_i32_70 : i32
    %c2_i32_72 = arith.constant 2 : i32
    %212 = arith.muli %211, %c2_i32_72 : i32
    %213 = arith.index_cast %212 : i32 to index
    %c0_73 = arith.constant 0 : index
    %214 = vector.load %arg19[%213, %c0_73] : memref<16x128xf32, #tpu.memory_space<vmem>>, vector<2x128xf32>
    %215 = arith.truncf %209 : vector<2x32xf32> to vector<2x32xbf16>
    %cst_74 = arith.constant dense<0.000000e+00> : vector<2x128xf32>
    %216 = tpu.matmul %215, %203, %cst_74 {dimension_numbers = #tpu.dot_dimension_numbers<[1], [0], [0], [1], [0, 0, 1, 1], [], []>} : vector<2x32xbf16>, vector<32x128xbf16>, vector<2x128xf32> -> vector<2x128xf32>
    %217 = arith.addf %214, %216 : vector<2x128xf32>
    %218 = arith.negf %217 : vector<2x128xf32>
    %219 = math.exp %218 : vector<2x128xf32>
    %cst_75 = arith.constant 1.000000e+00 : f32
    %220 = vector.broadcast %cst_75 : f32 to vector<2x128xf32>
    %221 = arith.addf %220, %219 : vector<2x128xf32>
    %222 = arith.divf %220, %221 : vector<2x128xf32>
    %223 = vector.extract_strided_slice %222 {offsets = [0, 0], sizes = [2, 32], strides = [1, 1]} : vector<2x128xf32> to vector<2x32xf32>
    %224 = vector.extract_strided_slice %222 {offsets = [0, 32], sizes = [2, 32], strides = [1, 1]} : vector<2x128xf32> to vector<2x32xf32>
    %225 = vector.extract_strided_slice %222 {offsets = [0, 96], sizes = [2, 32], strides = [1, 1]} : vector<2x128xf32> to vector<2x32xf32>
    %226 = vector.extract_strided_slice %217 {offsets = [0, 64], sizes = [2, 32], strides = [1, 1]} : vector<2x128xf32> to vector<2x32xf32>
    %227 = math.tanh %226 : vector<2x32xf32>
    %228 = arith.mulf %224, %210 : vector<2x32xf32>
    %229 = arith.mulf %223, %227 : vector<2x32xf32>
    %230 = arith.addf %228, %229 : vector<2x32xf32>
    %231 = math.tanh %230 : vector<2x32xf32>
    %232 = arith.mulf %225, %231 : vector<2x32xf32>
    %c2_i32_76 = arith.constant 2 : i32
    %233 = arith.muli %211, %c2_i32_76 : i32
    %234 = arith.index_cast %233 : i32 to index
    %c32 = arith.constant 32 : index
    %235 = vector.load %arg17[%234, %c32] : memref<16x64xf32, #tpu.memory_space<vmem>>, vector<2x32xf32>
    tpu.vector_store %arg17[%234, %c32], %232 {strides = array<i32>} : memref<16x64xf32, #tpu.memory_space<vmem>>, vector<2x32xf32>,
    %c1_i32_77 = arith.constant 1 : i32
    %c7_i32_78 = arith.constant 7 : i32
    %236 = arith.subi %c7_i32_78, %c1_i32_77 : i32
    %c2_i32_79 = arith.constant 2 : i32
    %237 = arith.muli %236, %c2_i32_79 : i32
    %238 = arith.index_cast %237 : i32 to index
    %c0_80 = arith.constant 0 : index
    %239 = vector.load %arg19[%238, %c0_80] : memref<16x128xf32, #tpu.memory_space<vmem>>, vector<2x128xf32>
    %240 = arith.truncf %232 : vector<2x32xf32> to vector<2x32xbf16>
    %cst_81 = arith.constant dense<0.000000e+00> : vector<2x128xf32>
    %241 = tpu.matmul %240, %203, %cst_81 {dimension_numbers = #tpu.dot_dimension_numbers<[1], [0], [0], [1], [0, 0, 1, 1], [], []>} : vector<2x32xbf16>, vector<32x128xbf16>, vector<2x128xf32> -> vector<2x128xf32>
    %242 = arith.addf %239, %241 : vector<2x128xf32>
    %243 = arith.negf %242 : vector<2x128xf32>
    %244 = math.exp %243 : vector<2x128xf32>
    %cst_82 = arith.constant 1.000000e+00 : f32
    %245 = vector.broadcast %cst_82 : f32 to vector<2x128xf32>
    %246 = arith.addf %245, %244 : vector<2x128xf32>
    %247 = arith.divf %245, %246 : vector<2x128xf32>
    %248 = vector.extract_strided_slice %247 {offsets = [0, 0], sizes = [2, 32], strides = [1, 1]} : vector<2x128xf32> to vector<2x32xf32>
    %249 = vector.extract_strided_slice %247 {offsets = [0, 32], sizes = [2, 32], strides = [1, 1]} : vector<2x128xf32> to vector<2x32xf32>
    %250 = vector.extract_strided_slice %247 {offsets = [0, 96], sizes = [2, 32], strides = [1, 1]} : vector<2x128xf32> to vector<2x32xf32>
    %251 = vector.extract_strided_slice %242 {offsets = [0, 64], sizes = [2, 32], strides = [1, 1]} : vector<2x128xf32> to vector<2x32xf32>
    %252 = math.tanh %251 : vector<2x32xf32>
    %253 = arith.mulf %249, %230 : vector<2x32xf32>
    %254 = arith.mulf %248, %252 : vector<2x32xf32>
    %255 = arith.addf %253, %254 : vector<2x32xf32>
    %256 = math.tanh %255 : vector<2x32xf32>
    %257 = arith.mulf %250, %256 : vector<2x32xf32>
    %c2_i32_83 = arith.constant 2 : i32
    %258 = arith.muli %236, %c2_i32_83 : i32
    %259 = arith.index_cast %258 : i32 to index
    %c32_84 = arith.constant 32 : index
    %260 = vector.load %arg17[%259, %c32_84] : memref<16x64xf32, #tpu.memory_space<vmem>>, vector<2x32xf32>
    tpu.vector_store %arg17[%259, %c32_84], %257 {strides = array<i32>} : memref<16x64xf32, #tpu.memory_space<vmem>>, vector<2x32xf32>,
    %c2_i32_85 = arith.constant 2 : i32
    %c7_i32_86 = arith.constant 7 : i32
    %261 = arith.subi %c7_i32_86, %c2_i32_85 : i32
    %c2_i32_87 = arith.constant 2 : i32
    %262 = arith.muli %261, %c2_i32_87 : i32
    %263 = arith.index_cast %262 : i32 to index
    %c0_88 = arith.constant 0 : index
    %264 = vector.load %arg19[%263, %c0_88] : memref<16x128xf32, #tpu.memory_space<vmem>>, vector<2x128xf32>
    %265 = arith.truncf %257 : vector<2x32xf32> to vector<2x32xbf16>
    %cst_89 = arith.constant dense<0.000000e+00> : vector<2x128xf32>
    %266 = tpu.matmul %265, %203, %cst_89 {dimension_numbers = #tpu.dot_dimension_numbers<[1], [0], [0], [1], [0, 0, 1, 1], [], []>} : vector<2x32xbf16>, vector<32x128xbf16>, vector<2x128xf32> -> vector<2x128xf32>
    %267 = arith.addf %264, %266 : vector<2x128xf32>
    %268 = arith.negf %267 : vector<2x128xf32>
    %269 = math.exp %268 : vector<2x128xf32>
    %cst_90 = arith.constant 1.000000e+00 : f32
    %270 = vector.broadcast %cst_90 : f32 to vector<2x128xf32>
    %271 = arith.addf %270, %269 : vector<2x128xf32>
    %272 = arith.divf %270, %271 : vector<2x128xf32>
    %273 = vector.extract_strided_slice %272 {offsets = [0, 0], sizes = [2, 32], strides = [1, 1]} : vector<2x128xf32> to vector<2x32xf32>
    %274 = vector.extract_strided_slice %272 {offsets = [0, 32], sizes = [2, 32], strides = [1, 1]} : vector<2x128xf32> to vector<2x32xf32>
    %275 = vector.extract_strided_slice %272 {offsets = [0, 96], sizes = [2, 32], strides = [1, 1]} : vector<2x128xf32> to vector<2x32xf32>
    %276 = vector.extract_strided_slice %267 {offsets = [0, 64], sizes = [2, 32], strides = [1, 1]} : vector<2x128xf32> to vector<2x32xf32>
    %277 = math.tanh %276 : vector<2x32xf32>
    %278 = arith.mulf %274, %255 : vector<2x32xf32>
    %279 = arith.mulf %273, %277 : vector<2x32xf32>
    %280 = arith.addf %278, %279 : vector<2x32xf32>
    %281 = math.tanh %280 : vector<2x32xf32>
    %282 = arith.mulf %275, %281 : vector<2x32xf32>
    %c2_i32_91 = arith.constant 2 : i32
    %283 = arith.muli %261, %c2_i32_91 : i32
    %284 = arith.index_cast %283 : i32 to index
    %c32_92 = arith.constant 32 : index
    %285 = vector.load %arg17[%284, %c32_92] : memref<16x64xf32, #tpu.memory_space<vmem>>, vector<2x32xf32>
    tpu.vector_store %arg17[%284, %c32_92], %282 {strides = array<i32>} : memref<16x64xf32, #tpu.memory_space<vmem>>, vector<2x32xf32>,
    %c3_i32_93 = arith.constant 3 : i32
    %c7_i32_94 = arith.constant 7 : i32
    %286 = arith.subi %c7_i32_94, %c3_i32_93 : i32
    %c2_i32_95 = arith.constant 2 : i32
    %287 = arith.muli %286, %c2_i32_95 : i32
    %288 = arith.index_cast %287 : i32 to index
    %c0_96 = arith.constant 0 : index
    %289 = vector.load %arg19[%288, %c0_96] : memref<16x128xf32, #tpu.memory_space<vmem>>, vector<2x128xf32>
    %290 = arith.truncf %282 : vector<2x32xf32> to vector<2x32xbf16>
    %cst_97 = arith.constant dense<0.000000e+00> : vector<2x128xf32>
    %291 = tpu.matmul %290, %203, %cst_97 {dimension_numbers = #tpu.dot_dimension_numbers<[1], [0], [0], [1], [0, 0, 1, 1], [], []>} : vector<2x32xbf16>, vector<32x128xbf16>, vector<2x128xf32> -> vector<2x128xf32>
    %292 = arith.addf %289, %291 : vector<2x128xf32>
    %293 = arith.negf %292 : vector<2x128xf32>
    %294 = math.exp %293 : vector<2x128xf32>
    %cst_98 = arith.constant 1.000000e+00 : f32
    %295 = vector.broadcast %cst_98 : f32 to vector<2x128xf32>
    %296 = arith.addf %295, %294 : vector<2x128xf32>
    %297 = arith.divf %295, %296 : vector<2x128xf32>
    %298 = vector.extract_strided_slice %297 {offsets = [0, 0], sizes = [2, 32], strides = [1, 1]} : vector<2x128xf32> to vector<2x32xf32>
    %299 = vector.extract_strided_slice %297 {offsets = [0, 32], sizes = [2, 32], strides = [1, 1]} : vector<2x128xf32> to vector<2x32xf32>
    %300 = vector.extract_strided_slice %297 {offsets = [0, 96], sizes = [2, 32], strides = [1, 1]} : vector<2x128xf32> to vector<2x32xf32>
    %301 = vector.extract_strided_slice %292 {offsets = [0, 64], sizes = [2, 32], strides = [1, 1]} : vector<2x128xf32> to vector<2x32xf32>
    %302 = math.tanh %301 : vector<2x32xf32>
    %303 = arith.mulf %299, %280 : vector<2x32xf32>
    %304 = arith.mulf %298, %302 : vector<2x32xf32>
    %305 = arith.addf %303, %304 : vector<2x32xf32>
    %306 = math.tanh %305 : vector<2x32xf32>
    %307 = arith.mulf %300, %306 : vector<2x32xf32>
    %c2_i32_99 = arith.constant 2 : i32
    %308 = arith.muli %286, %c2_i32_99 : i32
    %309 = arith.index_cast %308 : i32 to index
    %c32_100 = arith.constant 32 : index
    %310 = vector.load %arg17[%309, %c32_100] : memref<16x64xf32, #tpu.memory_space<vmem>>, vector<2x32xf32>
    tpu.vector_store %arg17[%309, %c32_100], %307 {strides = array<i32>} : memref<16x64xf32, #tpu.memory_space<vmem>>, vector<2x32xf32>,
    %c4_i32_101 = arith.constant 4 : i32
    %c7_i32_102 = arith.constant 7 : i32
    %311 = arith.subi %c7_i32_102, %c4_i32_101 : i32
    %c2_i32_103 = arith.constant 2 : i32
    %312 = arith.muli %311, %c2_i32_103 : i32
    %313 = arith.index_cast %312 : i32 to index
    %c0_104 = arith.constant 0 : index
    %314 = vector.load %arg19[%313, %c0_104] : memref<16x128xf32, #tpu.memory_space<vmem>>, vector<2x128xf32>
    %315 = arith.truncf %307 : vector<2x32xf32> to vector<2x32xbf16>
    %cst_105 = arith.constant dense<0.000000e+00> : vector<2x128xf32>
    %316 = tpu.matmul %315, %203, %cst_105 {dimension_numbers = #tpu.dot_dimension_numbers<[1], [0], [0], [1], [0, 0, 1, 1], [], []>} : vector<2x32xbf16>, vector<32x128xbf16>, vector<2x128xf32> -> vector<2x128xf32>
    %317 = arith.addf %314, %316 : vector<2x128xf32>
    %318 = arith.negf %317 : vector<2x128xf32>
    %319 = math.exp %318 : vector<2x128xf32>
    %cst_106 = arith.constant 1.000000e+00 : f32
    %320 = vector.broadcast %cst_106 : f32 to vector<2x128xf32>
    %321 = arith.addf %320, %319 : vector<2x128xf32>
    %322 = arith.divf %320, %321 : vector<2x128xf32>
    %323 = vector.extract_strided_slice %322 {offsets = [0, 0], sizes = [2, 32], strides = [1, 1]} : vector<2x128xf32> to vector<2x32xf32>
    %324 = vector.extract_strided_slice %322 {offsets = [0, 32], sizes = [2, 32], strides = [1, 1]} : vector<2x128xf32> to vector<2x32xf32>
    %325 = vector.extract_strided_slice %322 {offsets = [0, 96], sizes = [2, 32], strides = [1, 1]} : vector<2x128xf32> to vector<2x32xf32>
    %326 = vector.extract_strided_slice %317 {offsets = [0, 64], sizes = [2, 32], strides = [1, 1]} : vector<2x128xf32> to vector<2x32xf32>
    %327 = math.tanh %326 : vector<2x32xf32>
    %328 = arith.mulf %324, %305 : vector<2x32xf32>
    %329 = arith.mulf %323, %327 : vector<2x32xf32>
    %330 = arith.addf %328, %329 : vector<2x32xf32>
    %331 = math.tanh %330 : vector<2x32xf32>
    %332 = arith.mulf %325, %331 : vector<2x32xf32>
    %c2_i32_107 = arith.constant 2 : i32
    %333 = arith.muli %311, %c2_i32_107 : i32
    %334 = arith.index_cast %333 : i32 to index
    %c32_108 = arith.constant 32 : index
    %335 = vector.load %arg17[%334, %c32_108] : memref<16x64xf32, #tpu.memory_space<vmem>>, vector<2x32xf32>
    tpu.vector_store %arg17[%334, %c32_108], %332 {strides = array<i32>} : memref<16x64xf32, #tpu.memory_space<vmem>>, vector<2x32xf32>,
    %c5_i32_109 = arith.constant 5 : i32
    %c7_i32_110 = arith.constant 7 : i32
    %336 = arith.subi %c7_i32_110, %c5_i32_109 : i32
    %c2_i32_111 = arith.constant 2 : i32
    %337 = arith.muli %336, %c2_i32_111 : i32
    %338 = arith.index_cast %337 : i32 to index
    %c0_112 = arith.constant 0 : index
    %339 = vector.load %arg19[%338, %c0_112] : memref<16x128xf32, #tpu.memory_space<vmem>>, vector<2x128xf32>
    %340 = arith.truncf %332 : vector<2x32xf32> to vector<2x32xbf16>
    %cst_113 = arith.constant dense<0.000000e+00> : vector<2x128xf32>
    %341 = tpu.matmul %340, %203, %cst_113 {dimension_numbers = #tpu.dot_dimension_numbers<[1], [0], [0], [1], [0, 0, 1, 1], [], []>} : vector<2x32xbf16>, vector<32x128xbf16>, vector<2x128xf32> -> vector<2x128xf32>
    %342 = arith.addf %339, %341 : vector<2x128xf32>
    %343 = arith.negf %342 : vector<2x128xf32>
    %344 = math.exp %343 : vector<2x128xf32>
    %cst_114 = arith.constant 1.000000e+00 : f32
    %345 = vector.broadcast %cst_114 : f32 to vector<2x128xf32>
    %346 = arith.addf %345, %344 : vector<2x128xf32>
    %347 = arith.divf %345, %346 : vector<2x128xf32>
    %348 = vector.extract_strided_slice %347 {offsets = [0, 0], sizes = [2, 32], strides = [1, 1]} : vector<2x128xf32> to vector<2x32xf32>
    %349 = vector.extract_strided_slice %347 {offsets = [0, 32], sizes = [2, 32], strides = [1, 1]} : vector<2x128xf32> to vector<2x32xf32>
    %350 = vector.extract_strided_slice %347 {offsets = [0, 96], sizes = [2, 32], strides = [1, 1]} : vector<2x128xf32> to vector<2x32xf32>
    %351 = vector.extract_strided_slice %342 {offsets = [0, 64], sizes = [2, 32], strides = [1, 1]} : vector<2x128xf32> to vector<2x32xf32>
    %352 = math.tanh %351 : vector<2x32xf32>
    %353 = arith.mulf %349, %330 : vector<2x32xf32>
    %354 = arith.mulf %348, %352 : vector<2x32xf32>
    %355 = arith.addf %353, %354 : vector<2x32xf32>
    %356 = math.tanh %355 : vector<2x32xf32>
    %357 = arith.mulf %350, %356 : vector<2x32xf32>
    %c2_i32_115 = arith.constant 2 : i32
    %358 = arith.muli %336, %c2_i32_115 : i32
    %359 = arith.index_cast %358 : i32 to index
    %c32_116 = arith.constant 32 : index
    %360 = vector.load %arg17[%359, %c32_116] : memref<16x64xf32, #tpu.memory_space<vmem>>, vector<2x32xf32>
    tpu.vector_store %arg17[%359, %c32_116], %357 {strides = array<i32>} : memref<16x64xf32, #tpu.memory_space<vmem>>, vector<2x32xf32>,
    %c6_i32_117 = arith.constant 6 : i32
    %c7_i32_118 = arith.constant 7 : i32
    %361 = arith.subi %c7_i32_118, %c6_i32_117 : i32
    %c2_i32_119 = arith.constant 2 : i32
    %362 = arith.muli %361, %c2_i32_119 : i32
    %363 = arith.index_cast %362 : i32 to index
    %c0_120 = arith.constant 0 : index
    %364 = vector.load %arg19[%363, %c0_120] : memref<16x128xf32, #tpu.memory_space<vmem>>, vector<2x128xf32>
    %365 = arith.truncf %357 : vector<2x32xf32> to vector<2x32xbf16>
    %cst_121 = arith.constant dense<0.000000e+00> : vector<2x128xf32>
    %366 = tpu.matmul %365, %203, %cst_121 {dimension_numbers = #tpu.dot_dimension_numbers<[1], [0], [0], [1], [0, 0, 1, 1], [], []>} : vector<2x32xbf16>, vector<32x128xbf16>, vector<2x128xf32> -> vector<2x128xf32>
    %367 = arith.addf %364, %366 : vector<2x128xf32>
    %368 = arith.negf %367 : vector<2x128xf32>
    %369 = math.exp %368 : vector<2x128xf32>
    %cst_122 = arith.constant 1.000000e+00 : f32
    %370 = vector.broadcast %cst_122 : f32 to vector<2x128xf32>
    %371 = arith.addf %370, %369 : vector<2x128xf32>
    %372 = arith.divf %370, %371 : vector<2x128xf32>
    %373 = vector.extract_strided_slice %372 {offsets = [0, 0], sizes = [2, 32], strides = [1, 1]} : vector<2x128xf32> to vector<2x32xf32>
    %374 = vector.extract_strided_slice %372 {offsets = [0, 32], sizes = [2, 32], strides = [1, 1]} : vector<2x128xf32> to vector<2x32xf32>
    %375 = vector.extract_strided_slice %372 {offsets = [0, 96], sizes = [2, 32], strides = [1, 1]} : vector<2x128xf32> to vector<2x32xf32>
    %376 = vector.extract_strided_slice %367 {offsets = [0, 64], sizes = [2, 32], strides = [1, 1]} : vector<2x128xf32> to vector<2x32xf32>
    %377 = math.tanh %376 : vector<2x32xf32>
    %378 = arith.mulf %374, %355 : vector<2x32xf32>
    %379 = arith.mulf %373, %377 : vector<2x32xf32>
    %380 = arith.addf %378, %379 : vector<2x32xf32>
    %381 = math.tanh %380 : vector<2x32xf32>
    %382 = arith.mulf %375, %381 : vector<2x32xf32>
    %c2_i32_123 = arith.constant 2 : i32
    %383 = arith.muli %361, %c2_i32_123 : i32
    %384 = arith.index_cast %383 : i32 to index
    %c32_124 = arith.constant 32 : index
    %385 = vector.load %arg17[%384, %c32_124] : memref<16x64xf32, #tpu.memory_space<vmem>>, vector<2x32xf32>
    tpu.vector_store %arg17[%384, %c32_124], %382 {strides = array<i32>} : memref<16x64xf32, #tpu.memory_space<vmem>>, vector<2x32xf32>,
    %c7_i32_125 = arith.constant 7 : i32
    %c7_i32_126 = arith.constant 7 : i32
    %386 = arith.subi %c7_i32_126, %c7_i32_125 : i32
    %c2_i32_127 = arith.constant 2 : i32
    %387 = arith.muli %386, %c2_i32_127 : i32
    %388 = arith.index_cast %387 : i32 to index
    %c0_128 = arith.constant 0 : index
    %389 = vector.load %arg19[%388, %c0_128] : memref<16x128xf32, #tpu.memory_space<vmem>>, vector<2x128xf32>
    %390 = arith.truncf %382 : vector<2x32xf32> to vector<2x32xbf16>
    %cst_129 = arith.constant dense<0.000000e+00> : vector<2x128xf32>
    %391 = tpu.matmul %390, %203, %cst_129 {dimension_numbers = #tpu.dot_dimension_numbers<[1], [0], [0], [1], [0, 0, 1, 1], [], []>} : vector<2x32xbf16>, vector<32x128xbf16>, vector<2x128xf32> -> vector<2x128xf32>
    %392 = arith.addf %389, %391 : vector<2x128xf32>
    %393 = arith.negf %392 : vector<2x128xf32>
    %394 = math.exp %393 : vector<2x128xf32>
    %cst_130 = arith.constant 1.000000e+00 : f32
    %395 = vector.broadcast %cst_130 : f32 to vector<2x128xf32>
    %396 = arith.addf %395, %394 : vector<2x128xf32>
    %397 = arith.divf %395, %396 : vector<2x128xf32>
    %398 = vector.extract_strided_slice %397 {offsets = [0, 0], sizes = [2, 32], strides = [1, 1]} : vector<2x128xf32> to vector<2x32xf32>
    %399 = vector.extract_strided_slice %397 {offsets = [0, 32], sizes = [2, 32], strides = [1, 1]} : vector<2x128xf32> to vector<2x32xf32>
    %400 = vector.extract_strided_slice %397 {offsets = [0, 96], sizes = [2, 32], strides = [1, 1]} : vector<2x128xf32> to vector<2x32xf32>
    %401 = vector.extract_strided_slice %392 {offsets = [0, 64], sizes = [2, 32], strides = [1, 1]} : vector<2x128xf32> to vector<2x32xf32>
    %402 = math.tanh %401 : vector<2x32xf32>
    %403 = arith.mulf %399, %380 : vector<2x32xf32>
    %404 = arith.mulf %398, %402 : vector<2x32xf32>
    %405 = arith.addf %403, %404 : vector<2x32xf32>
    %406 = math.tanh %405 : vector<2x32xf32>
    %407 = arith.mulf %400, %406 : vector<2x32xf32>
    %c2_i32_131 = arith.constant 2 : i32
    %408 = arith.muli %386, %c2_i32_131 : i32
    %409 = arith.index_cast %408 : i32 to index
    %c32_132 = arith.constant 32 : index
    %410 = vector.load %arg17[%409, %c32_132] : memref<16x64xf32, #tpu.memory_space<vmem>>, vector<2x32xf32>
    tpu.vector_store %arg17[%409, %c32_132], %407 {strides = array<i32>} : memref<16x64xf32, #tpu.memory_space<vmem>>, vector<2x32xf32>,
    %c8_i32_133 = arith.constant 8 : i32
    %c0_134 = arith.constant 0 : index
    %c0_135 = arith.constant 0 : index
    %411 = vector.load %arg17[%c0_134, %c0_135] : memref<16x64xf32, #tpu.memory_space<vmem>>, vector<16x64xf32>
    %412 = arith.truncf %411 : vector<16x64xf32> to vector<16x64xbf16>
    %c0_136 = arith.constant 0 : index
    %c0_137 = arith.constant 0 : index
    %413 = vector.load %arg8[%c0_136, %c0_137] : memref<64x128xbf16, #tpu.memory_space<vmem>>, vector<64x128xbf16>
    %c0_138 = arith.constant 0 : index
    %c0_139 = arith.constant 0 : index
    %414 = vector.load %arg9[%c0_138, %c0_139] : memref<32x128xbf16, #tpu.memory_space<vmem>>, vector<32x128xbf16>
    %c0_140 = arith.constant 0 : index
    %c0_141 = arith.constant 0 : index
    %415 = vector.load %arg10[%c0_140, %c0_141] : memref<1x128xf32, #tpu.memory_space<vmem>>, vector<1x128xf32>
    %cst_142 = arith.constant dense<0.000000e+00> : vector<16x128xf32>
    %416 = tpu.matmul %412, %413, %cst_142 {dimension_numbers = #tpu.dot_dimension_numbers<[1], [0], [0], [1], [0, 0, 1, 1], [], []>} : vector<16x64xbf16>, vector<64x128xbf16>, vector<16x128xf32> -> vector<16x128xf32>
    %417 = vector.broadcast %415 : vector<1x128xf32> to vector<16x128xf32>
    %418 = arith.addf %416, %417 : vector<16x128xf32>
    %c0_143 = arith.constant 0 : index
    %c0_144 = arith.constant 0 : index
    %419 = vector.load %arg19[%c0_143, %c0_144] : memref<16x128xf32, #tpu.memory_space<vmem>>, vector<16x128xf32>
    tpu.vector_store %arg19[%c0_143, %c0_144], %418 {strides = array<i32>} : memref<16x128xf32, #tpu.memory_space<vmem>>, vector<16x128xf32>,
    %cst_145 = arith.constant 0.000000e+00 : f32
    %420 = vector.broadcast %cst_145 : f32 to vector<2x32xf32>
    %cst_146 = arith.constant 0.000000e+00 : f32
    %421 = vector.broadcast %cst_146 : f32 to vector<2x32xf32>
    %c0_i32_147 = arith.constant 0 : i32
    %c2_i32_148 = arith.constant 2 : i32
    %422 = arith.muli %c0_i32_147, %c2_i32_148 : i32
    %423 = arith.index_cast %422 : i32 to index
    %c0_149 = arith.constant 0 : index
    %424 = vector.load %arg19[%423, %c0_149] : memref<16x128xf32, #tpu.memory_space<vmem>>, vector<2x128xf32>
    %425 = arith.truncf %420 : vector<2x32xf32> to vector<2x32xbf16>
    %cst_150 = arith.constant dense<0.000000e+00> : vector<2x128xf32>
    %426 = tpu.matmul %425, %414, %cst_150 {dimension_numbers = #tpu.dot_dimension_numbers<[1], [0], [0], [1], [0, 0, 1, 1], [], []>} : vector<2x32xbf16>, vector<32x128xbf16>, vector<2x128xf32> -> vector<2x128xf32>
    %427 = arith.addf %424, %426 : vector<2x128xf32>
    %428 = arith.negf %427 : vector<2x128xf32>
    %429 = math.exp %428 : vector<2x128xf32>
    %cst_151 = arith.constant 1.000000e+00 : f32
    %430 = vector.broadcast %cst_151 : f32 to vector<2x128xf32>
    %431 = arith.addf %430, %429 : vector<2x128xf32>
    %432 = arith.divf %430, %431 : vector<2x128xf32>
    %433 = vector.extract_strided_slice %432 {offsets = [0, 0], sizes = [2, 32], strides = [1, 1]} : vector<2x128xf32> to vector<2x32xf32>
    %434 = vector.extract_strided_slice %432 {offsets = [0, 32], sizes = [2, 32], strides = [1, 1]} : vector<2x128xf32> to vector<2x32xf32>
    %435 = vector.extract_strided_slice %432 {offsets = [0, 96], sizes = [2, 32], strides = [1, 1]} : vector<2x128xf32> to vector<2x32xf32>
    %436 = vector.extract_strided_slice %427 {offsets = [0, 64], sizes = [2, 32], strides = [1, 1]} : vector<2x128xf32> to vector<2x32xf32>
    %437 = math.tanh %436 : vector<2x32xf32>
    %438 = arith.mulf %434, %421 : vector<2x32xf32>
    %439 = arith.mulf %433, %437 : vector<2x32xf32>
    %440 = arith.addf %438, %439 : vector<2x32xf32>
    %441 = math.tanh %440 : vector<2x32xf32>
    %442 = arith.mulf %435, %441 : vector<2x32xf32>
    %c1_i32_152 = arith.constant 1 : i32
    %c2_i32_153 = arith.constant 2 : i32
    %443 = arith.muli %c1_i32_152, %c2_i32_153 : i32
    %444 = arith.index_cast %443 : i32 to index
    %c0_154 = arith.constant 0 : index
    %445 = vector.load %arg19[%444, %c0_154] : memref<16x128xf32, #tpu.memory_space<vmem>>, vector<2x128xf32>
    %446 = arith.truncf %442 : vector<2x32xf32> to vector<2x32xbf16>
    %cst_155 = arith.constant dense<0.000000e+00> : vector<2x128xf32>
    %447 = tpu.matmul %446, %414, %cst_155 {dimension_numbers = #tpu.dot_dimension_numbers<[1], [0], [0], [1], [0, 0, 1, 1], [], []>} : vector<2x32xbf16>, vector<32x128xbf16>, vector<2x128xf32> -> vector<2x128xf32>
    %448 = arith.addf %445, %447 : vector<2x128xf32>
    %449 = arith.negf %448 : vector<2x128xf32>
    %450 = math.exp %449 : vector<2x128xf32>
    %cst_156 = arith.constant 1.000000e+00 : f32
    %451 = vector.broadcast %cst_156 : f32 to vector<2x128xf32>
    %452 = arith.addf %451, %450 : vector<2x128xf32>
    %453 = arith.divf %451, %452 : vector<2x128xf32>
    %454 = vector.extract_strided_slice %453 {offsets = [0, 0], sizes = [2, 32], strides = [1, 1]} : vector<2x128xf32> to vector<2x32xf32>
    %455 = vector.extract_strided_slice %453 {offsets = [0, 32], sizes = [2, 32], strides = [1, 1]} : vector<2x128xf32> to vector<2x32xf32>
    %456 = vector.extract_strided_slice %453 {offsets = [0, 96], sizes = [2, 32], strides = [1, 1]} : vector<2x128xf32> to vector<2x32xf32>
    %457 = vector.extract_strided_slice %448 {offsets = [0, 64], sizes = [2, 32], strides = [1, 1]} : vector<2x128xf32> to vector<2x32xf32>
    %458 = math.tanh %457 : vector<2x32xf32>
    %459 = arith.mulf %455, %440 : vector<2x32xf32>
    %460 = arith.mulf %454, %458 : vector<2x32xf32>
    %461 = arith.addf %459, %460 : vector<2x32xf32>
    %462 = math.tanh %461 : vector<2x32xf32>
    %463 = arith.mulf %456, %462 : vector<2x32xf32>
    %c2_i32_157 = arith.constant 2 : i32
    %c2_i32_158 = arith.constant 2 : i32
    %464 = arith.muli %c2_i32_157, %c2_i32_158 : i32
    %465 = arith.index_cast %464 : i32 to index
    %c0_159 = arith.constant 0 : index
    %466 = vector.load %arg19[%465, %c0_159] : memref<16x128xf32, #tpu.memory_space<vmem>>, vector<2x128xf32>
    %467 = arith.truncf %463 : vector<2x32xf32> to vector<2x32xbf16>
    %cst_160 = arith.constant dense<0.000000e+00> : vector<2x128xf32>
    %468 = tpu.matmul %467, %414, %cst_160 {dimension_numbers = #tpu.dot_dimension_numbers<[1], [0], [0], [1], [0, 0, 1, 1], [], []>} : vector<2x32xbf16>, vector<32x128xbf16>, vector<2x128xf32> -> vector<2x128xf32>
    %469 = arith.addf %466, %468 : vector<2x128xf32>
    %470 = arith.negf %469 : vector<2x128xf32>
    %471 = math.exp %470 : vector<2x128xf32>
    %cst_161 = arith.constant 1.000000e+00 : f32
    %472 = vector.broadcast %cst_161 : f32 to vector<2x128xf32>
    %473 = arith.addf %472, %471 : vector<2x128xf32>
    %474 = arith.divf %472, %473 : vector<2x128xf32>
    %475 = vector.extract_strided_slice %474 {offsets = [0, 0], sizes = [2, 32], strides = [1, 1]} : vector<2x128xf32> to vector<2x32xf32>
    %476 = vector.extract_strided_slice %474 {offsets = [0, 32], sizes = [2, 32], strides = [1, 1]} : vector<2x128xf32> to vector<2x32xf32>
    %477 = vector.extract_strided_slice %474 {offsets = [0, 96], sizes = [2, 32], strides = [1, 1]} : vector<2x128xf32> to vector<2x32xf32>
    %478 = vector.extract_strided_slice %469 {offsets = [0, 64], sizes = [2, 32], strides = [1, 1]} : vector<2x128xf32> to vector<2x32xf32>
    %479 = math.tanh %478 : vector<2x32xf32>
    %480 = arith.mulf %476, %461 : vector<2x32xf32>
    %481 = arith.mulf %475, %479 : vector<2x32xf32>
    %482 = arith.addf %480, %481 : vector<2x32xf32>
    %483 = math.tanh %482 : vector<2x32xf32>
    %484 = arith.mulf %477, %483 : vector<2x32xf32>
    %c3_i32_162 = arith.constant 3 : i32
    %c2_i32_163 = arith.constant 2 : i32
    %485 = arith.muli %c3_i32_162, %c2_i32_163 : i32
    %486 = arith.index_cast %485 : i32 to index
    %c0_164 = arith.constant 0 : index
    %487 = vector.load %arg19[%486, %c0_164] : memref<16x128xf32, #tpu.memory_space<vmem>>, vector<2x128xf32>
    %488 = arith.truncf %484 : vector<2x32xf32> to vector<2x32xbf16>
    %cst_165 = arith.constant dense<0.000000e+00> : vector<2x128xf32>
    %489 = tpu.matmul %488, %414, %cst_165 {dimension_numbers = #tpu.dot_dimension_numbers<[1], [0], [0], [1], [0, 0, 1, 1], [], []>} : vector<2x32xbf16>, vector<32x128xbf16>, vector<2x128xf32> -> vector<2x128xf32>
    %490 = arith.addf %487, %489 : vector<2x128xf32>
    %491 = arith.negf %490 : vector<2x128xf32>
    %492 = math.exp %491 : vector<2x128xf32>
    %cst_166 = arith.constant 1.000000e+00 : f32
    %493 = vector.broadcast %cst_166 : f32 to vector<2x128xf32>
    %494 = arith.addf %493, %492 : vector<2x128xf32>
    %495 = arith.divf %493, %494 : vector<2x128xf32>
    %496 = vector.extract_strided_slice %495 {offsets = [0, 0], sizes = [2, 32], strides = [1, 1]} : vector<2x128xf32> to vector<2x32xf32>
    %497 = vector.extract_strided_slice %495 {offsets = [0, 32], sizes = [2, 32], strides = [1, 1]} : vector<2x128xf32> to vector<2x32xf32>
    %498 = vector.extract_strided_slice %495 {offsets = [0, 96], sizes = [2, 32], strides = [1, 1]} : vector<2x128xf32> to vector<2x32xf32>
    %499 = vector.extract_strided_slice %490 {offsets = [0, 64], sizes = [2, 32], strides = [1, 1]} : vector<2x128xf32> to vector<2x32xf32>
    %500 = math.tanh %499 : vector<2x32xf32>
    %501 = arith.mulf %497, %482 : vector<2x32xf32>
    %502 = arith.mulf %496, %500 : vector<2x32xf32>
    %503 = arith.addf %501, %502 : vector<2x32xf32>
    %504 = math.tanh %503 : vector<2x32xf32>
    %505 = arith.mulf %498, %504 : vector<2x32xf32>
    %c4_i32_167 = arith.constant 4 : i32
    %c2_i32_168 = arith.constant 2 : i32
    %506 = arith.muli %c4_i32_167, %c2_i32_168 : i32
    %507 = arith.index_cast %506 : i32 to index
    %c0_169 = arith.constant 0 : index
    %508 = vector.load %arg19[%507, %c0_169] : memref<16x128xf32, #tpu.memory_space<vmem>>, vector<2x128xf32>
    %509 = arith.truncf %505 : vector<2x32xf32> to vector<2x32xbf16>
    %cst_170 = arith.constant dense<0.000000e+00> : vector<2x128xf32>
    %510 = tpu.matmul %509, %414, %cst_170 {dimension_numbers = #tpu.dot_dimension_numbers<[1], [0], [0], [1], [0, 0, 1, 1], [], []>} : vector<2x32xbf16>, vector<32x128xbf16>, vector<2x128xf32> -> vector<2x128xf32>
    %511 = arith.addf %508, %510 : vector<2x128xf32>
    %512 = arith.negf %511 : vector<2x128xf32>
    %513 = math.exp %512 : vector<2x128xf32>
    %cst_171 = arith.constant 1.000000e+00 : f32
    %514 = vector.broadcast %cst_171 : f32 to vector<2x128xf32>
    %515 = arith.addf %514, %513 : vector<2x128xf32>
    %516 = arith.divf %514, %515 : vector<2x128xf32>
    %517 = vector.extract_strided_slice %516 {offsets = [0, 0], sizes = [2, 32], strides = [1, 1]} : vector<2x128xf32> to vector<2x32xf32>
    %518 = vector.extract_strided_slice %516 {offsets = [0, 32], sizes = [2, 32], strides = [1, 1]} : vector<2x128xf32> to vector<2x32xf32>
    %519 = vector.extract_strided_slice %516 {offsets = [0, 96], sizes = [2, 32], strides = [1, 1]} : vector<2x128xf32> to vector<2x32xf32>
    %520 = vector.extract_strided_slice %511 {offsets = [0, 64], sizes = [2, 32], strides = [1, 1]} : vector<2x128xf32> to vector<2x32xf32>
    %521 = math.tanh %520 : vector<2x32xf32>
    %522 = arith.mulf %518, %503 : vector<2x32xf32>
    %523 = arith.mulf %517, %521 : vector<2x32xf32>
    %524 = arith.addf %522, %523 : vector<2x32xf32>
    %525 = math.tanh %524 : vector<2x32xf32>
    %526 = arith.mulf %519, %525 : vector<2x32xf32>
    %c5_i32_172 = arith.constant 5 : i32
    %c2_i32_173 = arith.constant 2 : i32
    %527 = arith.muli %c5_i32_172, %c2_i32_173 : i32
    %528 = arith.index_cast %527 : i32 to index
    %c0_174 = arith.constant 0 : index
    %529 = vector.load %arg19[%528, %c0_174] : memref<16x128xf32, #tpu.memory_space<vmem>>, vector<2x128xf32>
    %530 = arith.truncf %526 : vector<2x32xf32> to vector<2x32xbf16>
    %cst_175 = arith.constant dense<0.000000e+00> : vector<2x128xf32>
    %531 = tpu.matmul %530, %414, %cst_175 {dimension_numbers = #tpu.dot_dimension_numbers<[1], [0], [0], [1], [0, 0, 1, 1], [], []>} : vector<2x32xbf16>, vector<32x128xbf16>, vector<2x128xf32> -> vector<2x128xf32>
    %532 = arith.addf %529, %531 : vector<2x128xf32>
    %533 = arith.negf %532 : vector<2x128xf32>
    %534 = math.exp %533 : vector<2x128xf32>
    %cst_176 = arith.constant 1.000000e+00 : f32
    %535 = vector.broadcast %cst_176 : f32 to vector<2x128xf32>
    %536 = arith.addf %535, %534 : vector<2x128xf32>
    %537 = arith.divf %535, %536 : vector<2x128xf32>
    %538 = vector.extract_strided_slice %537 {offsets = [0, 0], sizes = [2, 32], strides = [1, 1]} : vector<2x128xf32> to vector<2x32xf32>
    %539 = vector.extract_strided_slice %537 {offsets = [0, 32], sizes = [2, 32], strides = [1, 1]} : vector<2x128xf32> to vector<2x32xf32>
    %540 = vector.extract_strided_slice %537 {offsets = [0, 96], sizes = [2, 32], strides = [1, 1]} : vector<2x128xf32> to vector<2x32xf32>
    %541 = vector.extract_strided_slice %532 {offsets = [0, 64], sizes = [2, 32], strides = [1, 1]} : vector<2x128xf32> to vector<2x32xf32>
    %542 = math.tanh %541 : vector<2x32xf32>
    %543 = arith.mulf %539, %524 : vector<2x32xf32>
    %544 = arith.mulf %538, %542 : vector<2x32xf32>
    %545 = arith.addf %543, %544 : vector<2x32xf32>
    %546 = math.tanh %545 : vector<2x32xf32>
    %547 = arith.mulf %540, %546 : vector<2x32xf32>
    %c6_i32_177 = arith.constant 6 : i32
    %c2_i32_178 = arith.constant 2 : i32
    %548 = arith.muli %c6_i32_177, %c2_i32_178 : i32
    %549 = arith.index_cast %548 : i32 to index
    %c0_179 = arith.constant 0 : index
    %550 = vector.load %arg19[%549, %c0_179] : memref<16x128xf32, #tpu.memory_space<vmem>>, vector<2x128xf32>
    %551 = arith.truncf %547 : vector<2x32xf32> to vector<2x32xbf16>
    %cst_180 = arith.constant dense<0.000000e+00> : vector<2x128xf32>
    %552 = tpu.matmul %551, %414, %cst_180 {dimension_numbers = #tpu.dot_dimension_numbers<[1], [0], [0], [1], [0, 0, 1, 1], [], []>} : vector<2x32xbf16>, vector<32x128xbf16>, vector<2x128xf32> -> vector<2x128xf32>
    %553 = arith.addf %550, %552 : vector<2x128xf32>
    %554 = arith.negf %553 : vector<2x128xf32>
    %555 = math.exp %554 : vector<2x128xf32>
    %cst_181 = arith.constant 1.000000e+00 : f32
    %556 = vector.broadcast %cst_181 : f32 to vector<2x128xf32>
    %557 = arith.addf %556, %555 : vector<2x128xf32>
    %558 = arith.divf %556, %557 : vector<2x128xf32>
    %559 = vector.extract_strided_slice %558 {offsets = [0, 0], sizes = [2, 32], strides = [1, 1]} : vector<2x128xf32> to vector<2x32xf32>
    %560 = vector.extract_strided_slice %558 {offsets = [0, 32], sizes = [2, 32], strides = [1, 1]} : vector<2x128xf32> to vector<2x32xf32>
    %561 = vector.extract_strided_slice %558 {offsets = [0, 96], sizes = [2, 32], strides = [1, 1]} : vector<2x128xf32> to vector<2x32xf32>
    %562 = vector.extract_strided_slice %553 {offsets = [0, 64], sizes = [2, 32], strides = [1, 1]} : vector<2x128xf32> to vector<2x32xf32>
    %563 = math.tanh %562 : vector<2x32xf32>
    %564 = arith.mulf %560, %545 : vector<2x32xf32>
    %565 = arith.mulf %559, %563 : vector<2x32xf32>
    %566 = arith.addf %564, %565 : vector<2x32xf32>
    %567 = math.tanh %566 : vector<2x32xf32>
    %568 = arith.mulf %561, %567 : vector<2x32xf32>
    %c7_i32_182 = arith.constant 7 : i32
    %c2_i32_183 = arith.constant 2 : i32
    %569 = arith.muli %c7_i32_182, %c2_i32_183 : i32
    %570 = arith.index_cast %569 : i32 to index
    %c0_184 = arith.constant 0 : index
    %571 = vector.load %arg19[%570, %c0_184] : memref<16x128xf32, #tpu.memory_space<vmem>>, vector<2x128xf32>
    %572 = arith.truncf %568 : vector<2x32xf32> to vector<2x32xbf16>
    %cst_185 = arith.constant dense<0.000000e+00> : vector<2x128xf32>
    %573 = tpu.matmul %572, %414, %cst_185 {dimension_numbers = #tpu.dot_dimension_numbers<[1], [0], [0], [1], [0, 0, 1, 1], [], []>} : vector<2x32xbf16>, vector<32x128xbf16>, vector<2x128xf32> -> vector<2x128xf32>
    %574 = arith.addf %571, %573 : vector<2x128xf32>
    %575 = arith.negf %574 : vector<2x128xf32>
    %576 = math.exp %575 : vector<2x128xf32>
    %cst_186 = arith.constant 1.000000e+00 : f32
    %577 = vector.broadcast %cst_186 : f32 to vector<2x128xf32>
    %578 = arith.addf %577, %576 : vector<2x128xf32>
    %579 = arith.divf %577, %578 : vector<2x128xf32>
    %580 = vector.extract_strided_slice %579 {offsets = [0, 0], sizes = [2, 32], strides = [1, 1]} : vector<2x128xf32> to vector<2x32xf32>
    %581 = vector.extract_strided_slice %579 {offsets = [0, 32], sizes = [2, 32], strides = [1, 1]} : vector<2x128xf32> to vector<2x32xf32>
    %582 = vector.extract_strided_slice %579 {offsets = [0, 96], sizes = [2, 32], strides = [1, 1]} : vector<2x128xf32> to vector<2x32xf32>
    %583 = vector.extract_strided_slice %574 {offsets = [0, 64], sizes = [2, 32], strides = [1, 1]} : vector<2x128xf32> to vector<2x32xf32>
    %584 = math.tanh %583 : vector<2x32xf32>
    %585 = arith.mulf %581, %566 : vector<2x32xf32>
    %586 = arith.mulf %580, %584 : vector<2x32xf32>
    %587 = arith.addf %585, %586 : vector<2x32xf32>
    %588 = math.tanh %587 : vector<2x32xf32>
    %589 = arith.mulf %582, %588 : vector<2x32xf32>
    %c8_i32_187 = arith.constant 8 : i32
    %c0_188 = arith.constant 0 : index
    %c0_189 = arith.constant 0 : index
    %590 = vector.load %arg11[%c0_188, %c0_189] : memref<64x128xbf16, #tpu.memory_space<vmem>>, vector<64x128xbf16>
    %c0_190 = arith.constant 0 : index
    %c0_191 = arith.constant 0 : index
    %591 = vector.load %arg12[%c0_190, %c0_191] : memref<32x128xbf16, #tpu.memory_space<vmem>>, vector<32x128xbf16>
    %c0_192 = arith.constant 0 : index
    %c0_193 = arith.constant 0 : index
    %592 = vector.load %arg13[%c0_192, %c0_193] : memref<1x128xf32, #tpu.memory_space<vmem>>, vector<1x128xf32>
    %cst_194 = arith.constant dense<0.000000e+00> : vector<16x128xf32>
    %593 = tpu.matmul %412, %590, %cst_194 {dimension_numbers = #tpu.dot_dimension_numbers<[1], [0], [0], [1], [0, 0, 1, 1], [], []>} : vector<16x64xbf16>, vector<64x128xbf16>, vector<16x128xf32> -> vector<16x128xf32>
    %594 = vector.broadcast %592 : vector<1x128xf32> to vector<16x128xf32>
    %595 = arith.addf %593, %594 : vector<16x128xf32>
    %c0_195 = arith.constant 0 : index
    %c0_196 = arith.constant 0 : index
    %596 = vector.load %arg19[%c0_195, %c0_196] : memref<16x128xf32, #tpu.memory_space<vmem>>, vector<16x128xf32>
    tpu.vector_store %arg19[%c0_195, %c0_196], %595 {strides = array<i32>} : memref<16x128xf32, #tpu.memory_space<vmem>>, vector<16x128xf32>,
    %cst_197 = arith.constant 0.000000e+00 : f32
    %597 = vector.broadcast %cst_197 : f32 to vector<2x32xf32>
    %cst_198 = arith.constant 0.000000e+00 : f32
    %598 = vector.broadcast %cst_198 : f32 to vector<2x32xf32>
    %c0_i32_199 = arith.constant 0 : i32
    %c7_i32_200 = arith.constant 7 : i32
    %599 = arith.subi %c7_i32_200, %c0_i32_199 : i32
    %c2_i32_201 = arith.constant 2 : i32
    %600 = arith.muli %599, %c2_i32_201 : i32
    %601 = arith.index_cast %600 : i32 to index
    %c0_202 = arith.constant 0 : index
    %602 = vector.load %arg19[%601, %c0_202] : memref<16x128xf32, #tpu.memory_space<vmem>>, vector<2x128xf32>
    %603 = arith.truncf %597 : vector<2x32xf32> to vector<2x32xbf16>
    %cst_203 = arith.constant dense<0.000000e+00> : vector<2x128xf32>
    %604 = tpu.matmul %603, %591, %cst_203 {dimension_numbers = #tpu.dot_dimension_numbers<[1], [0], [0], [1], [0, 0, 1, 1], [], []>} : vector<2x32xbf16>, vector<32x128xbf16>, vector<2x128xf32> -> vector<2x128xf32>
    %605 = arith.addf %602, %604 : vector<2x128xf32>
    %606 = arith.negf %605 : vector<2x128xf32>
    %607 = math.exp %606 : vector<2x128xf32>
    %cst_204 = arith.constant 1.000000e+00 : f32
    %608 = vector.broadcast %cst_204 : f32 to vector<2x128xf32>
    %609 = arith.addf %608, %607 : vector<2x128xf32>
    %610 = arith.divf %608, %609 : vector<2x128xf32>
    %611 = vector.extract_strided_slice %610 {offsets = [0, 0], sizes = [2, 32], strides = [1, 1]} : vector<2x128xf32> to vector<2x32xf32>
    %612 = vector.extract_strided_slice %610 {offsets = [0, 32], sizes = [2, 32], strides = [1, 1]} : vector<2x128xf32> to vector<2x32xf32>
    %613 = vector.extract_strided_slice %610 {offsets = [0, 96], sizes = [2, 32], strides = [1, 1]} : vector<2x128xf32> to vector<2x32xf32>
    %614 = vector.extract_strided_slice %605 {offsets = [0, 64], sizes = [2, 32], strides = [1, 1]} : vector<2x128xf32> to vector<2x32xf32>
    %615 = math.tanh %614 : vector<2x32xf32>
    %616 = arith.mulf %612, %598 : vector<2x32xf32>
    %617 = arith.mulf %611, %615 : vector<2x32xf32>
    %618 = arith.addf %616, %617 : vector<2x32xf32>
    %619 = math.tanh %618 : vector<2x32xf32>
    %620 = arith.mulf %613, %619 : vector<2x32xf32>
    %c1_i32_205 = arith.constant 1 : i32
    %c7_i32_206 = arith.constant 7 : i32
    %621 = arith.subi %c7_i32_206, %c1_i32_205 : i32
    %c2_i32_207 = arith.constant 2 : i32
    %622 = arith.muli %621, %c2_i32_207 : i32
    %623 = arith.index_cast %622 : i32 to index
    %c0_208 = arith.constant 0 : index
    %624 = vector.load %arg19[%623, %c0_208] : memref<16x128xf32, #tpu.memory_space<vmem>>, vector<2x128xf32>
    %625 = arith.truncf %620 : vector<2x32xf32> to vector<2x32xbf16>
    %cst_209 = arith.constant dense<0.000000e+00> : vector<2x128xf32>
    %626 = tpu.matmul %625, %591, %cst_209 {dimension_numbers = #tpu.dot_dimension_numbers<[1], [0], [0], [1], [0, 0, 1, 1], [], []>} : vector<2x32xbf16>, vector<32x128xbf16>, vector<2x128xf32> -> vector<2x128xf32>
    %627 = arith.addf %624, %626 : vector<2x128xf32>
    %628 = arith.negf %627 : vector<2x128xf32>
    %629 = math.exp %628 : vector<2x128xf32>
    %cst_210 = arith.constant 1.000000e+00 : f32
    %630 = vector.broadcast %cst_210 : f32 to vector<2x128xf32>
    %631 = arith.addf %630, %629 : vector<2x128xf32>
    %632 = arith.divf %630, %631 : vector<2x128xf32>
    %633 = vector.extract_strided_slice %632 {offsets = [0, 0], sizes = [2, 32], strides = [1, 1]} : vector<2x128xf32> to vector<2x32xf32>
    %634 = vector.extract_strided_slice %632 {offsets = [0, 32], sizes = [2, 32], strides = [1, 1]} : vector<2x128xf32> to vector<2x32xf32>
    %635 = vector.extract_strided_slice %632 {offsets = [0, 96], sizes = [2, 32], strides = [1, 1]} : vector<2x128xf32> to vector<2x32xf32>
    %636 = vector.extract_strided_slice %627 {offsets = [0, 64], sizes = [2, 32], strides = [1, 1]} : vector<2x128xf32> to vector<2x32xf32>
    %637 = math.tanh %636 : vector<2x32xf32>
    %638 = arith.mulf %634, %618 : vector<2x32xf32>
    %639 = arith.mulf %633, %637 : vector<2x32xf32>
    %640 = arith.addf %638, %639 : vector<2x32xf32>
    %641 = math.tanh %640 : vector<2x32xf32>
    %642 = arith.mulf %635, %641 : vector<2x32xf32>
    %c2_i32_211 = arith.constant 2 : i32
    %c7_i32_212 = arith.constant 7 : i32
    %643 = arith.subi %c7_i32_212, %c2_i32_211 : i32
    %c2_i32_213 = arith.constant 2 : i32
    %644 = arith.muli %643, %c2_i32_213 : i32
    %645 = arith.index_cast %644 : i32 to index
    %c0_214 = arith.constant 0 : index
    %646 = vector.load %arg19[%645, %c0_214] : memref<16x128xf32, #tpu.memory_space<vmem>>, vector<2x128xf32>
    %647 = arith.truncf %642 : vector<2x32xf32> to vector<2x32xbf16>
    %cst_215 = arith.constant dense<0.000000e+00> : vector<2x128xf32>
    %648 = tpu.matmul %647, %591, %cst_215 {dimension_numbers = #tpu.dot_dimension_numbers<[1], [0], [0], [1], [0, 0, 1, 1], [], []>} : vector<2x32xbf16>, vector<32x128xbf16>, vector<2x128xf32> -> vector<2x128xf32>
    %649 = arith.addf %646, %648 : vector<2x128xf32>
    %650 = arith.negf %649 : vector<2x128xf32>
    %651 = math.exp %650 : vector<2x128xf32>
    %cst_216 = arith.constant 1.000000e+00 : f32
    %652 = vector.broadcast %cst_216 : f32 to vector<2x128xf32>
    %653 = arith.addf %652, %651 : vector<2x128xf32>
    %654 = arith.divf %652, %653 : vector<2x128xf32>
    %655 = vector.extract_strided_slice %654 {offsets = [0, 0], sizes = [2, 32], strides = [1, 1]} : vector<2x128xf32> to vector<2x32xf32>
    %656 = vector.extract_strided_slice %654 {offsets = [0, 32], sizes = [2, 32], strides = [1, 1]} : vector<2x128xf32> to vector<2x32xf32>
    %657 = vector.extract_strided_slice %654 {offsets = [0, 96], sizes = [2, 32], strides = [1, 1]} : vector<2x128xf32> to vector<2x32xf32>
    %658 = vector.extract_strided_slice %649 {offsets = [0, 64], sizes = [2, 32], strides = [1, 1]} : vector<2x128xf32> to vector<2x32xf32>
    %659 = math.tanh %658 : vector<2x32xf32>
    %660 = arith.mulf %656, %640 : vector<2x32xf32>
    %661 = arith.mulf %655, %659 : vector<2x32xf32>
    %662 = arith.addf %660, %661 : vector<2x32xf32>
    %663 = math.tanh %662 : vector<2x32xf32>
    %664 = arith.mulf %657, %663 : vector<2x32xf32>
    %c3_i32_217 = arith.constant 3 : i32
    %c7_i32_218 = arith.constant 7 : i32
    %665 = arith.subi %c7_i32_218, %c3_i32_217 : i32
    %c2_i32_219 = arith.constant 2 : i32
    %666 = arith.muli %665, %c2_i32_219 : i32
    %667 = arith.index_cast %666 : i32 to index
    %c0_220 = arith.constant 0 : index
    %668 = vector.load %arg19[%667, %c0_220] : memref<16x128xf32, #tpu.memory_space<vmem>>, vector<2x128xf32>
    %669 = arith.truncf %664 : vector<2x32xf32> to vector<2x32xbf16>
    %cst_221 = arith.constant dense<0.000000e+00> : vector<2x128xf32>
    %670 = tpu.matmul %669, %591, %cst_221 {dimension_numbers = #tpu.dot_dimension_numbers<[1], [0], [0], [1], [0, 0, 1, 1], [], []>} : vector<2x32xbf16>, vector<32x128xbf16>, vector<2x128xf32> -> vector<2x128xf32>
    %671 = arith.addf %668, %670 : vector<2x128xf32>
    %672 = arith.negf %671 : vector<2x128xf32>
    %673 = math.exp %672 : vector<2x128xf32>
    %cst_222 = arith.constant 1.000000e+00 : f32
    %674 = vector.broadcast %cst_222 : f32 to vector<2x128xf32>
    %675 = arith.addf %674, %673 : vector<2x128xf32>
    %676 = arith.divf %674, %675 : vector<2x128xf32>
    %677 = vector.extract_strided_slice %676 {offsets = [0, 0], sizes = [2, 32], strides = [1, 1]} : vector<2x128xf32> to vector<2x32xf32>
    %678 = vector.extract_strided_slice %676 {offsets = [0, 32], sizes = [2, 32], strides = [1, 1]} : vector<2x128xf32> to vector<2x32xf32>
    %679 = vector.extract_strided_slice %676 {offsets = [0, 96], sizes = [2, 32], strides = [1, 1]} : vector<2x128xf32> to vector<2x32xf32>
    %680 = vector.extract_strided_slice %671 {offsets = [0, 64], sizes = [2, 32], strides = [1, 1]} : vector<2x128xf32> to vector<2x32xf32>
    %681 = math.tanh %680 : vector<2x32xf32>
    %682 = arith.mulf %678, %662 : vector<2x32xf32>
    %683 = arith.mulf %677, %681 : vector<2x32xf32>
    %684 = arith.addf %682, %683 : vector<2x32xf32>
    %685 = math.tanh %684 : vector<2x32xf32>
    %686 = arith.mulf %679, %685 : vector<2x32xf32>
    %c4_i32_223 = arith.constant 4 : i32
    %c7_i32_224 = arith.constant 7 : i32
    %687 = arith.subi %c7_i32_224, %c4_i32_223 : i32
    %c2_i32_225 = arith.constant 2 : i32
    %688 = arith.muli %687, %c2_i32_225 : i32
    %689 = arith.index_cast %688 : i32 to index
    %c0_226 = arith.constant 0 : index
    %690 = vector.load %arg19[%689, %c0_226] : memref<16x128xf32, #tpu.memory_space<vmem>>, vector<2x128xf32>
    %691 = arith.truncf %686 : vector<2x32xf32> to vector<2x32xbf16>
    %cst_227 = arith.constant dense<0.000000e+00> : vector<2x128xf32>
    %692 = tpu.matmul %691, %591, %cst_227 {dimension_numbers = #tpu.dot_dimension_numbers<[1], [0], [0], [1], [0, 0, 1, 1], [], []>} : vector<2x32xbf16>, vector<32x128xbf16>, vector<2x128xf32> -> vector<2x128xf32>
    %693 = arith.addf %690, %692 : vector<2x128xf32>
    %694 = arith.negf %693 : vector<2x128xf32>
    %695 = math.exp %694 : vector<2x128xf32>
    %cst_228 = arith.constant 1.000000e+00 : f32
    %696 = vector.broadcast %cst_228 : f32 to vector<2x128xf32>
    %697 = arith.addf %696, %695 : vector<2x128xf32>
    %698 = arith.divf %696, %697 : vector<2x128xf32>
    %699 = vector.extract_strided_slice %698 {offsets = [0, 0], sizes = [2, 32], strides = [1, 1]} : vector<2x128xf32> to vector<2x32xf32>
    %700 = vector.extract_strided_slice %698 {offsets = [0, 32], sizes = [2, 32], strides = [1, 1]} : vector<2x128xf32> to vector<2x32xf32>
    %701 = vector.extract_strided_slice %698 {offsets = [0, 96], sizes = [2, 32], strides = [1, 1]} : vector<2x128xf32> to vector<2x32xf32>
    %702 = vector.extract_strided_slice %693 {offsets = [0, 64], sizes = [2, 32], strides = [1, 1]} : vector<2x128xf32> to vector<2x32xf32>
    %703 = math.tanh %702 : vector<2x32xf32>
    %704 = arith.mulf %700, %684 : vector<2x32xf32>
    %705 = arith.mulf %699, %703 : vector<2x32xf32>
    %706 = arith.addf %704, %705 : vector<2x32xf32>
    %707 = math.tanh %706 : vector<2x32xf32>
    %708 = arith.mulf %701, %707 : vector<2x32xf32>
    %c5_i32_229 = arith.constant 5 : i32
    %c7_i32_230 = arith.constant 7 : i32
    %709 = arith.subi %c7_i32_230, %c5_i32_229 : i32
    %c2_i32_231 = arith.constant 2 : i32
    %710 = arith.muli %709, %c2_i32_231 : i32
    %711 = arith.index_cast %710 : i32 to index
    %c0_232 = arith.constant 0 : index
    %712 = vector.load %arg19[%711, %c0_232] : memref<16x128xf32, #tpu.memory_space<vmem>>, vector<2x128xf32>
    %713 = arith.truncf %708 : vector<2x32xf32> to vector<2x32xbf16>
    %cst_233 = arith.constant dense<0.000000e+00> : vector<2x128xf32>
    %714 = tpu.matmul %713, %591, %cst_233 {dimension_numbers = #tpu.dot_dimension_numbers<[1], [0], [0], [1], [0, 0, 1, 1], [], []>} : vector<2x32xbf16>, vector<32x128xbf16>, vector<2x128xf32> -> vector<2x128xf32>
    %715 = arith.addf %712, %714 : vector<2x128xf32>
    %716 = arith.negf %715 : vector<2x128xf32>
    %717 = math.exp %716 : vector<2x128xf32>
    %cst_234 = arith.constant 1.000000e+00 : f32
    %718 = vector.broadcast %cst_234 : f32 to vector<2x128xf32>
    %719 = arith.addf %718, %717 : vector<2x128xf32>
    %720 = arith.divf %718, %719 : vector<2x128xf32>
    %721 = vector.extract_strided_slice %720 {offsets = [0, 0], sizes = [2, 32], strides = [1, 1]} : vector<2x128xf32> to vector<2x32xf32>
    %722 = vector.extract_strided_slice %720 {offsets = [0, 32], sizes = [2, 32], strides = [1, 1]} : vector<2x128xf32> to vector<2x32xf32>
    %723 = vector.extract_strided_slice %720 {offsets = [0, 96], sizes = [2, 32], strides = [1, 1]} : vector<2x128xf32> to vector<2x32xf32>
    %724 = vector.extract_strided_slice %715 {offsets = [0, 64], sizes = [2, 32], strides = [1, 1]} : vector<2x128xf32> to vector<2x32xf32>
    %725 = math.tanh %724 : vector<2x32xf32>
    %726 = arith.mulf %722, %706 : vector<2x32xf32>
    %727 = arith.mulf %721, %725 : vector<2x32xf32>
    %728 = arith.addf %726, %727 : vector<2x32xf32>
    %729 = math.tanh %728 : vector<2x32xf32>
    %730 = arith.mulf %723, %729 : vector<2x32xf32>
    %c6_i32_235 = arith.constant 6 : i32
    %c7_i32_236 = arith.constant 7 : i32
    %731 = arith.subi %c7_i32_236, %c6_i32_235 : i32
    %c2_i32_237 = arith.constant 2 : i32
    %732 = arith.muli %731, %c2_i32_237 : i32
    %733 = arith.index_cast %732 : i32 to index
    %c0_238 = arith.constant 0 : index
    %734 = vector.load %arg19[%733, %c0_238] : memref<16x128xf32, #tpu.memory_space<vmem>>, vector<2x128xf32>
    %735 = arith.truncf %730 : vector<2x32xf32> to vector<2x32xbf16>
    %cst_239 = arith.constant dense<0.000000e+00> : vector<2x128xf32>
    %736 = tpu.matmul %735, %591, %cst_239 {dimension_numbers = #tpu.dot_dimension_numbers<[1], [0], [0], [1], [0, 0, 1, 1], [], []>} : vector<2x32xbf16>, vector<32x128xbf16>, vector<2x128xf32> -> vector<2x128xf32>
    %737 = arith.addf %734, %736 : vector<2x128xf32>
    %738 = arith.negf %737 : vector<2x128xf32>
    %739 = math.exp %738 : vector<2x128xf32>
    %cst_240 = arith.constant 1.000000e+00 : f32
    %740 = vector.broadcast %cst_240 : f32 to vector<2x128xf32>
    %741 = arith.addf %740, %739 : vector<2x128xf32>
    %742 = arith.divf %740, %741 : vector<2x128xf32>
    %743 = vector.extract_strided_slice %742 {offsets = [0, 0], sizes = [2, 32], strides = [1, 1]} : vector<2x128xf32> to vector<2x32xf32>
    %744 = vector.extract_strided_slice %742 {offsets = [0, 32], sizes = [2, 32], strides = [1, 1]} : vector<2x128xf32> to vector<2x32xf32>
    %745 = vector.extract_strided_slice %742 {offsets = [0, 96], sizes = [2, 32], strides = [1, 1]} : vector<2x128xf32> to vector<2x32xf32>
    %746 = vector.extract_strided_slice %737 {offsets = [0, 64], sizes = [2, 32], strides = [1, 1]} : vector<2x128xf32> to vector<2x32xf32>
    %747 = math.tanh %746 : vector<2x32xf32>
    %748 = arith.mulf %744, %728 : vector<2x32xf32>
    %749 = arith.mulf %743, %747 : vector<2x32xf32>
    %750 = arith.addf %748, %749 : vector<2x32xf32>
    %751 = math.tanh %750 : vector<2x32xf32>
    %752 = arith.mulf %745, %751 : vector<2x32xf32>
    %c7_i32_241 = arith.constant 7 : i32
    %c7_i32_242 = arith.constant 7 : i32
    %753 = arith.subi %c7_i32_242, %c7_i32_241 : i32
    %c2_i32_243 = arith.constant 2 : i32
    %754 = arith.muli %753, %c2_i32_243 : i32
    %755 = arith.index_cast %754 : i32 to index
    %c0_244 = arith.constant 0 : index
    %756 = vector.load %arg19[%755, %c0_244] : memref<16x128xf32, #tpu.memory_space<vmem>>, vector<2x128xf32>
    %757 = arith.truncf %752 : vector<2x32xf32> to vector<2x32xbf16>
    %cst_245 = arith.constant dense<0.000000e+00> : vector<2x128xf32>
    %758 = tpu.matmul %757, %591, %cst_245 {dimension_numbers = #tpu.dot_dimension_numbers<[1], [0], [0], [1], [0, 0, 1, 1], [], []>} : vector<2x32xbf16>, vector<32x128xbf16>, vector<2x128xf32> -> vector<2x128xf32>
    %759 = arith.addf %756, %758 : vector<2x128xf32>
    %760 = arith.negf %759 : vector<2x128xf32>
    %761 = math.exp %760 : vector<2x128xf32>
    %cst_246 = arith.constant 1.000000e+00 : f32
    %762 = vector.broadcast %cst_246 : f32 to vector<2x128xf32>
    %763 = arith.addf %762, %761 : vector<2x128xf32>
    %764 = arith.divf %762, %763 : vector<2x128xf32>
    %765 = vector.extract_strided_slice %764 {offsets = [0, 0], sizes = [2, 32], strides = [1, 1]} : vector<2x128xf32> to vector<2x32xf32>
    %766 = vector.extract_strided_slice %764 {offsets = [0, 32], sizes = [2, 32], strides = [1, 1]} : vector<2x128xf32> to vector<2x32xf32>
    %767 = vector.extract_strided_slice %764 {offsets = [0, 96], sizes = [2, 32], strides = [1, 1]} : vector<2x128xf32> to vector<2x32xf32>
    %768 = vector.extract_strided_slice %759 {offsets = [0, 64], sizes = [2, 32], strides = [1, 1]} : vector<2x128xf32> to vector<2x32xf32>
    %769 = math.tanh %768 : vector<2x32xf32>
    %770 = arith.mulf %766, %750 : vector<2x32xf32>
    %771 = arith.mulf %765, %769 : vector<2x32xf32>
    %772 = arith.addf %770, %771 : vector<2x32xf32>
    %773 = math.tanh %772 : vector<2x32xf32>
    %774 = arith.mulf %767, %773 : vector<2x32xf32>
    %c8_i32_247 = arith.constant 8 : i32
    %775 = tpu.concatenate %589, %774 in 1 : vector<2x32xf32>, vector<2x32xf32> -> vector<2x64xf32>
    %776 = arith.truncf %775 : vector<2x64xf32> to vector<2x64xbf16>
    %c0_248 = arith.constant 0 : index
    %c0_249 = arith.constant 0 : index
    %777 = vector.load %arg14[%c0_248, %c0_249] : memref<64x3xbf16, #tpu.memory_space<vmem>>, vector<64x3xbf16>
    %cst_250 = arith.constant dense<0.000000e+00> : vector<2x3xf32>
    %778 = tpu.matmul %776, %777, %cst_250 {dimension_numbers = #tpu.dot_dimension_numbers<[1], [0], [0], [1], [0, 0, 1, 1], [], []>} : vector<2x64xbf16>, vector<64x3xbf16>, vector<2x3xf32> -> vector<2x3xf32>
    %c0_251 = arith.constant 0 : index
    %c0_252 = arith.constant 0 : index
    %779 = vector.load %arg15[%c0_251, %c0_252] : memref<1x3xf32, #tpu.memory_space<vmem>>, vector<1x3xf32>
    %780 = vector.broadcast %779 : vector<1x3xf32> to vector<2x3xf32>
    %781 = arith.addf %778, %780 : vector<2x3xf32>
    %c0_253 = arith.constant 0 : index
    %c0_254 = arith.constant 0 : index
    %782 = vector.load %arg16[%c0_253, %c0_254] : memref<2x3xf32, #tpu.memory_space<vmem>>, vector<2x3xf32>
    tpu.vector_store %arg16[%c0_253, %c0_254], %781 {strides = array<i32>} : memref<2x3xf32, #tpu.memory_space<vmem>>, vector<2x3xf32>,
    return
  }
  func.func @transform_0(%arg0: i32) -> (i32, i32) {
    %c0_i32 = arith.constant 0 : i32
    %c0_i32_0 = arith.constant 0 : i32
    %c0_i32_1 = arith.constant 0 : i32
    return %c0_i32, %c0_i32_0 : i32, i32
  }
  func.func @transform_1(%arg0: i32) -> (i32, i32) {
    %c0_i32 = arith.constant 0 : i32
    %c0_i32_0 = arith.constant 0 : i32
    %c0_i32_1 = arith.constant 0 : i32
    return %c0_i32, %c0_i32_0 : i32, i32
  }
  func.func @transform_2(%arg0: i32) -> (i32, i32) {
    %c0_i32 = arith.constant 0 : i32
    %c0_i32_0 = arith.constant 0 : i32
    %c0_i32_1 = arith.constant 0 : i32
    return %c0_i32, %c0_i32_0 : i32, i32
  }
  func.func @transform_3(%arg0: i32) -> (i32, i32) {
    %c0_i32 = arith.constant 0 : i32
    %c0_i32_0 = arith.constant 0 : i32
    %c0_i32_1 = arith.constant 0 : i32
    return %c0_i32, %c0_i32_0 : i32, i32
  }
  func.func @transform_4(%arg0: i32) -> (i32, i32) {
    %c0_i32 = arith.constant 0 : i32
    %c0_i32_0 = arith.constant 0 : i32
    %c0_i32_1 = arith.constant 0 : i32
    return %c0_i32, %c0_i32_0 : i32, i32
  }
  func.func @transform_5(%arg0: i32) -> (i32, i32) {
    %c0_i32 = arith.constant 0 : i32
    %c0_i32_0 = arith.constant 0 : i32
    %c0_i32_1 = arith.constant 0 : i32
    return %c0_i32, %c0_i32_0 : i32, i32
  }
  func.func @transform_6(%arg0: i32) -> (i32, i32) {
    %c0_i32 = arith.constant 0 : i32
    %c0_i32_0 = arith.constant 0 : i32
    %c0_i32_1 = arith.constant 0 : i32
    return %c0_i32, %c0_i32_0 : i32, i32
  }
  func.func @transform_7(%arg0: i32) -> (i32, i32) {
    %c0_i32 = arith.constant 0 : i32
    %c0_i32_0 = arith.constant 0 : i32
    %c0_i32_1 = arith.constant 0 : i32
    return %c0_i32, %c0_i32_0 : i32, i32
  }
  func.func @transform_8(%arg0: i32) -> (i32, i32) {
    %c0_i32 = arith.constant 0 : i32
    %c0_i32_0 = arith.constant 0 : i32
    %c0_i32_1 = arith.constant 0 : i32
    return %c0_i32, %c0_i32_0 : i32, i32
  }
  func.func @transform_9(%arg0: i32) -> (i32, i32) {
    %c0_i32 = arith.constant 0 : i32
    %c0_i32_0 = arith.constant 0 : i32
    %c0_i32_1 = arith.constant 0 : i32
    return %c0_i32, %c0_i32_0 : i32, i32
  }
  func.func @transform_10(%arg0: i32) -> (i32, i32) {
    %c0_i32 = arith.constant 0 : i32
    %c0_i32_0 = arith.constant 0 : i32
    %c0_i32_1 = arith.constant 0 : i32
    return %c0_i32, %c0_i32_0 : i32, i32
  }
  func.func @transform_11(%arg0: i32) -> (i32, i32) {
    %c0_i32 = arith.constant 0 : i32
    %c0_i32_0 = arith.constant 0 : i32
    %c0_i32_1 = arith.constant 0 : i32
    return %c0_i32, %c0_i32_0 : i32, i32
  }
  func.func @transform_12(%arg0: i32) -> (i32, i32) {
    %c0_i32 = arith.constant 0 : i32
    %c0_i32_0 = arith.constant 0 : i32
    %c0_i32_1 = arith.constant 0 : i32
    return %c0_i32, %c0_i32_0 : i32, i32
  }
  func.func @transform_13(%arg0: i32) -> (i32, i32) {
    %c0_i32 = arith.constant 0 : i32
    %c0_i32_0 = arith.constant 0 : i32
    %c0_i32_1 = arith.constant 0 : i32
    return %c0_i32, %c0_i32_0 : i32, i32
  }
  func.func @transform_14(%arg0: i32) -> (i32, i32) {
    %c0_i32 = arith.constant 0 : i32
    %c0_i32_0 = arith.constant 0 : i32
    %c0_i32_1 = arith.constant 0 : i32
    return %c0_i32, %c0_i32_0 : i32, i32
  }
  func.func @transform_15(%arg0: i32) -> (i32, i32) {
    %c0_i32 = arith.constant 0 : i32
    %c0_i32_0 = arith.constant 0 : i32
    %c0_i32_1 = arith.constant 0 : i32
    return %c0_i32, %c0_i32_0 : i32, i32
  }
}

</mosaic_0001>

<bundles_post_ra>
// kernel: tpu_custom_call.1
= control target key start
LH: loop header
LB: loop body
LE: loop exit
PB: predicated region body
PF: predicated region fallthrough
CT: control target
= control target key end

     0   :  { %20 = vsyncpa [#allocation6], 0  ;;  %s3687_s0 = inlined_call_operand.hbm [shape: bf16[16,16], index: 0, kind: input, shape index: {}]   ;;  %s3688_s1 = inlined_call_operand.hbm [shape: bf16[16,128], index: 1, kind: input, shape index: {}]   ;;  %s3689_s2 = inlined_call_operand.hbm [shape: bf16[32,128], index: 2, kind: input, shape index: {}]   ;;  %s3690_s3 = inlined_call_operand.vmem [shape: f32[1,128], index: 3, kind: input, shape index: {}]   ;;  %s3691_s4 = inlined_call_operand.hbm [shape: bf16[16,128], index: 4, kind: input, shape index: {}]   ;;  %s3692_s5 = inlined_call_operand.hbm [shape: bf16[32,128], index: 5, kind: input, shape index: {}]   ;;  %s3693_s6 = inlined_call_operand.vmem [shape: f32[1,128], index: 6, kind: input, shape index: {}]   ;;  %s3694_s7 = inlined_call_operand.vmem [shape: bf16[64,128], index: 7, kind: input, shape index: {}]   ;;  %s3695_s8 = inlined_call_operand.hbm [shape: bf16[32,128], index: 8, kind: input, shape index: {}]   ;;  %s3696_s9 = inlined_call_operand.vmem [shape: f32[1,128], index: 9, kind: input, shape index: {}]   ;;  %s3697_s10 = inlined_call_operand.hbm [shape: bf16[64,128], index: 10, kind: input, shape index: {}]   ;;  %s3698_s11 = inlined_call_operand.hbm [shape: bf16[32,128], index: 11, kind: input, shape index: {}]   ;;  %s3699_s12 = inlined_call_operand.vmem [shape: f32[1,128], index: 12, kind: input, shape index: {}]   ;;  %s3700_s13 = inlined_call_operand.vmem [shape: bf16[64,3], index: 13, kind: input, shape index: {}]   ;;  %s3701_s14 = inlined_call_operand.vmem [shape: f32[1,3], index: 14, kind: input, shape index: {}]   ;;  %s3702_s15 = inlined_call_operand.hbm [shape: f32[2,3], index: 15, kind: output, shape index: {}]  }
   0x1   :  { %21 = vsyncpa [#allocation9], 0 }
   0x2   :  { %22 = vsyncpa [#allocation12], 0 }
   0x3   :  { %23 = vsyncpa [#allocation15], 0 }
   0x4   :  { %24 = vsyncpa [#allocation18], 0 }
   0x5   :  { %25 = vsyncpa [#allocation7], 0  ;;  %s43_s20 = sshll.u32 %s3688_s1, 4  ;;  %s3132_s21 = smov [#allocation8]   ;;  %s44_s20 = int_to_ptr.hbm [resolvable:$true] %s43_s20 }
   0x6   :  { %s45_s22 = sshll.u32 %s3132_s21, 4  ;;  %s71_s25 = sshll.u32 %s3691_s4, 4  ;;  %s46_s22 = int_to_ptr.vmem [resolvable:$true] %s45_s22  ;;  %s72_s25 = int_to_ptr.hbm [resolvable:$true] %s71_s25 }
   0x7   :  { %s3133_s26 = smov 64   ;;  %s3134_s27 = smov 4  }
   0x8   :  { %51 = dma.hbm_to_vmem [thread:$0]  %s44_s20, 128, %s46_s22, [#allocation9], %s3133_s26, %s3133_s26, %s3134_s27  }
   0x9   :  { %s3135_s28 = smov [#allocation11]   ;;  %s101_s1 = sshll.u32 %s3695_s8, 4  ;;  %s102_s1 = int_to_ptr.hbm [resolvable:$true] %s101_s1 }
   0xa   :  { %s73_s29 = sshll.u32 %s3135_s28, 4  ;;  %s30_s18 = sshll.u32 %s3687_s0, 4  ;;  %s74_s29 = int_to_ptr.vmem [resolvable:$true] %s73_s29  ;;  %s31_s18 = int_to_ptr.hbm [resolvable:$true] %s30_s18 }
   0xb   :  { %79 = dma.hbm_to_vmem [thread:$0]  %s72_s25, 128, %s74_s29, [#allocation12], %s3133_s26, %s3133_s26, %s3134_s27  }
   0xc   :  { %s3136_s19 = smov [#allocation14]   ;;  %s3137_s20 = smov [#allocation5]  }
   0xd   :  { %s103_s21 = sshll.u32 %s3136_s19, 4  ;;  %s32_s8 = sshll.u32 %s3137_s20, 4  ;;  %s104_s21 = int_to_ptr.vmem [resolvable:$true] %s103_s21  ;;  %s33_s8 = int_to_ptr.vmem [resolvable:$true] %s32_s8 }
   0xe   :  { %109 = dma.hbm_to_vmem [thread:$0]  %s102_s1, 256, %s104_s21, [#allocation15], %s3133_s26, %s3133_s26, %s3134_s27  }
   0xf   :  { %s56_s24 = sshll.u32 %s3689_s2, 4  ;;  %s84_s28 = sshll.u32 %s3692_s5, 4  ;;  %s57_s24 = int_to_ptr.hbm [resolvable:$true] %s56_s24  ;;  %s85_s28 = int_to_ptr.hbm [resolvable:$true] %s84_s28 }
  0x10   :  { %38 = dma.hbm_to_vmem [thread:$0]  %s31_s18, 128, %s33_s8, [#allocation6], %s3133_s26, %s3133_s26, %s3134_s27  }
  0x11   :  { %s3138_s29 = smov [#allocation10]   ;;  %s3139_s16 = smov [#allocation13]  }
  0x12   :  { %s58_s30 = sshll.u32 %s3138_s29, 4  ;;  %s86_s2 = sshll.u32 %s3139_s16, 4  ;;  %s59_s30 = int_to_ptr.vmem [resolvable:$true] %s58_s30  ;;  %s87_s2 = int_to_ptr.vmem [resolvable:$true] %s86_s2 }
  0x13   :  { %64 = dma.hbm_to_vmem [thread:$0]  %s57_s24, 256, %s59_s30, [#allocation9], %s3133_s26, %s3133_s26, %s3134_s27  }
  0x14   :  { %s116_s17 = sshll.u32 %s3697_s10, 4  ;;  %s129_s19 = sshll.u32 %s3698_s11, 4  ;;  %s117_s17 = int_to_ptr.hbm [resolvable:$true] %s116_s17  ;;  %s130_s19 = int_to_ptr.hbm [resolvable:$true] %s129_s19 }
  0x15   :  { %92 = dma.hbm_to_vmem [thread:$0]  %s85_s28, 256, %s87_s2, [#allocation12], %s3133_s26, %s3133_s26, %s3134_s27  }
  0x16   :  { %s3140_s21 = smov [#allocation16]   ;;  %s3141_s8 = smov [#allocation17]  }
  0x17   :  { %s118_s20 = sshll.u32 %s3140_s21, 4  ;;  %s131_s10 = sshll.u32 %s3141_s8, 4  ;;  %s119_s20 = int_to_ptr.vmem [resolvable:$true] %s118_s20  ;;  %s132_s10 = int_to_ptr.vmem [resolvable:$true] %s131_s10 }
  0x18   :  { %124 = dma.hbm_to_vmem [thread:$0]  %s117_s17, 512, %s119_s20, [#allocation15], %s3133_s26, %s3133_s26, %s3134_s27  }
  0x19   :  { %137 = dma.hbm_to_vmem [thread:$0]  %s130_s19, 256, %s132_s10, [#allocation18], %s3133_s26, %s3133_s26, %s3134_s27  }
  0x1a   :  { %3120 = dma.done.wait [#allocation6], 128  }
  0x1b   :  { %3121 = vsyncadd [#allocation6], 4294967168 }
  0x1c   :  { %3122 = dma.done.wait [#allocation9], 384  }
  0x1d   :  { %3123 = vsyncadd [#allocation9], 4294966912 }
  0x1e   :  { %3124 = dma.done.wait [#allocation12], 384  }
  0x1f   :  { %3125 = vsyncadd [#allocation12], 4294966912 }
  0x20   :  { %3126 = dma.done.wait [#allocation15], 768  }
  0x21   :  { %3127 = vsyncadd [#allocation15], 4294966528 }
  0x22   :  { %3128 = dma.done.wait [#allocation18], 256  }
  0x23   :  { %3129 = vsyncadd [#allocation18], 4294967040  ;;  %v2608_v0 = vld [vmem:[#allocation8] sm:$0xff]  ;;  %v2610_v1 = vld [vmem:[#allocation10 + $0x8] sm:$0xff]  ;;  %vm200_vm0 = vcmask 130048   ;;  %v3142_v4 = vmov 0  }
  0x24   :  { %v3273_v2 = vld [vmem:[#allocation5] sm:$0xff]  ;;  %v2609_v3 = vld [vmem:[#allocation10] sm:$0xff]  ;;  %211 = vmatpush.bf16.msra.mxu0 %v2608_v0  ;;  %243 = vmatpush.bf16.msra.mxu1 %v2610_v1  ;;  %vm233_vm5 = vcmask 261120   ;;  %s3144_s11 = smov [#allocation19]   ;;  %s2436_s22 = sshll.u32 %s3702_s15, 4  ;;  %s2437_s22 = int_to_ptr.hbm [resolvable:$true] %s2436_s22 }
  0x25   :  { %308 = vmatpush.bf16.msra.mxu2 %v2610_v1  ;;  %372 = vmatpush.bf16.msra.mxu3 %v2610_v1  ;;  %v2643_v5 = vld [vmem:[%s3690_s3] ss:$0 sm:$0xff]  ;;  %s3143_s3 = smov 32   ;;  %s2434_s27 = sshll.u32 %s3144_s11, 4  ;;  %s2435_s27 = int_to_ptr.vmem [resolvable:$true] %s2434_s27 }
  0x27   :  { %2458 = vmatmul.msk.bf16.vlgmr.msra.gmra.mxu0 %vm200_vm0, %v3273_v2 }
  0x28   :  { %436 = vmatpush.bf16.msrb.mxu0 %v2610_v1  ;;  %244 = vmatpush.bf16.msra.mxu1 %v2609_v3 }
  0x29   :  { %309 = vmatpush.bf16.msra.mxu2 %v2609_v3  ;;  %373 = vmatpush.bf16.msra.mxu3 %v2609_v3 }
  0x2b   :  { %245 = vmatmul.bf16.vlgmr.msra.gmra.mxu1 %v3142_v4 }
  0x2c   :  { %437 = vmatpush.bf16.msrb.mxu0 %v2609_v3  ;;  %500 = vmatpush.bf16.msrb.mxu1 %v2610_v1 }
  0x2d   :  { %564 = vmatpush.bf16.msrb.mxu2 %v2610_v1  ;;  %628 = vmatpush.bf16.msrb.mxu3 %v2610_v1 }
  0x30   :  { %692 = vmatpush.bf16.msra.mxu0 %v2610_v1  ;;  %501 = vmatpush.bf16.msrb.mxu1 %v2609_v3 }
  0x31   :  { %565 = vmatpush.bf16.msrb.mxu2 %v2609_v3  ;;  %629 = vmatpush.bf16.msrb.mxu3 %v2609_v3 }
  0x34   :  { %693 = vmatpush.bf16.msra.mxu0 %v2609_v3 }
  0xa4   :  { %v213_v6 = vpop.f32.mrf.mxu0 }
  0xa5   :  { %v214_v7 = vadd.f32 %v2643_v5, %v213_v6 }
  0xa7   :  { %218 = vst [vmem:[#allocation4] sm:$0xff] %v214_v7 }
  0xa8   :  { %v246_v8 = vpop.f32.mrf.mxu1 }
  0xac   :  { %v215_v9 = vpop.f32.mrf.mxu0 }
  0xad   :  { %v216_v10 = vadd.f32 %v2643_v5, %v215_v9 }
  0xae   :  { %v220_v11 = vld [vmem:[#allocation4] sm:$0x3]  ;;  %v294_v38 = vld [vmem:[#allocation4 + $0x2] sm:$0x3]  ;;  %v358_v3 = vld [vmem:[#allocation4 + $0x4] sm:$0x3] }
  0xaf   :  { %v250_v12 = vadd.f32 %v246_v8, %v220_v11  ;;  %219 = vst [vmem:[#allocation4 + $0x8] sm:$0xff] %v216_v10 }
  0xb0   :  { %v248_v13 = vpop.f32.mrf.mxu1 }
  0xb1   :  { %2648 = vtanh.f32 %v250_v12  ;;  %v2467_v15 = vmul.f32 -1.442695, %v250_v12 }
  0xb3   :  { %2650 = vpow2.f32 %v2467_v15 }
  0xb7   :  { %v2649_v14 = vpop.eup %2648 }
  0xb8   :  { %273 = vrot.lane.b32.xlu0 %v2649_v14, %s3133_s26 }
  0xb9   :  { %v2651_v16 = vpop.eup %2650 }
  0xba   :  { %v254_v17 = vadd.f32 1.0, %v2651_v16 }
  0xbc   :  { %2652 = vrcp.f32 %v254_v17  ;;  %v266_v23 = vand.u32 2147483648, %v254_v17  ;;  %vm260_vm2 = vweird.f32 %v254_v17  ;;  %v264_v24 = vand.u32 2147483647, %v254_v17 }
  0xbe   :  { %v267_v26 = vor.u32 1.1754944e-38, %v266_v23  ;;  %vm265_vm4 = vcmp.eq.f32.partialorder %v264_v24, 8.507059e+37 }
  0xc2   :  { %v2653_v18 = vpop.eup %2652 }
  0xc3   :  { %v256_v19 = vmul.f32 %v2653_v18, %v254_v17  ;;  %vm261_vm1 = vweird.f32 %v2653_v18 }
  0xc4   :  { %vm262_vm3 = vmor %vm260_vm2, %vm261_vm1 }
  0xc5   :  { %v257_v20 = vsub.f32 1.0, %v256_v19 }
  0xc7   :  { %v258_v21 = vmul.f32 %v2653_v18, %v257_v20 }
  0xc9   :  { %v259_v22 = vadd.f32 %v2653_v18, %v258_v21 }
  0xcb   :  { %v263_v25 = vsel %vm262_vm3, %v2653_v18, %v259_v22 }
  0xcc   :  { %v268_v28 = vsel %vm265_vm4, %v267_v26, %v263_v25 }
  0xcd   :  { %v271_v30 = vmul.f32 0.0, %v268_v28 }
 0x12a   :  { %v274_v27 = vpop.permute.xlu0 %273 }
 0x12b   :  { %v276_v29 = vmul.f32 %v274_v27, %v268_v28 }
 0x12d   :  { %278 = vrot.lane.b32.xlu0 %v276_v29, %s3143_s3 }
 0x19f   :  { %v279_v31 = vpop.permute.xlu0 %278 }
 0x1a0   :  { %v281_v32 = vadd.f32 %v279_v31, %v271_v30 }
 0x1a2   :  { %2654 = vtanh.f32 %v281_v32 }
 0x1a8   :  { %v2655_v33 = vpop.eup %2654 }
 0x1a9   :  { %284 = vrot.lane.b32.xlu1 %v2655_v33, %s3133_s26 }
 0x21b   :  { %v285_v34 = vpop.permute.xlu1 %284 }
 0x21c   :  { %v3284_v35 = vmul.f32 %v285_v34, %v268_v28 }
 0x21e   :  { %v295_v36 = vpack.c.bf16 %v3284_v35, %v3284_v35 }
 0x220   :  { %297 = vrot.lane.b32.xlu1 %v295_v36, %s3143_s3 }
 0x292   :  { %v298_v37 = vpop.permute.xlu1 %297 }
 0x293   :  { %2468 = vmatmul.msk.bf16.vlgmr.msra.gmra.mxu2 %vm233_vm5, %v298_v37 }
 0x316   :  { %v311_v39 = vpop.f32.mrf.mxu2 }
 0x317   :  { %v315_v40 = vadd.f32 %v311_v39, %v294_v38 }
 0x319   :  { %2656 = vtanh.f32 %v315_v40  ;;  %v2469_v43 = vmul.f32 -1.442695, %v315_v40 }
 0x31b   :  { %2658 = vpow2.f32 %v2469_v43 }
 0x31e   :  { %v313_v41 = vpop.f32.mrf.mxu2 }
 0x31f   :  { %v2657_v42 = vpop.eup %2656 }
 0x320   :  { %338 = vrot.lane.b32.xlu2 %v2657_v42, %s3133_s26 }
 0x321   :  { %v2659_v44 = vpop.eup %2658 }
 0x322   :  { %v319_v45 = vadd.f32 1.0, %v2659_v44 }
 0x324   :  { %2660 = vrcp.f32 %v319_v45  ;;  %v331_v51 = vand.u32 2147483648, %v319_v45  ;;  %vm325_vm7 = vweird.f32 %v319_v45  ;;  %v329_v52 = vand.u32 2147483647, %v319_v45 }
 0x326   :  { %v332_v54 = vor.u32 1.1754944e-38, %v331_v51  ;;  %vm330_vm9 = vcmp.eq.f32.partialorder %v329_v52, 8.507059e+37 }
 0x32a   :  { %v2661_v46 = vpop.eup %2660 }
 0x32b   :  { %v321_v47 = vmul.f32 %v2661_v46, %v319_v45  ;;  %vm326_vm6 = vweird.f32 %v2661_v46 }
 0x32c   :  { %vm327_vm8 = vmor %vm325_vm7, %vm326_vm6 }
 0x32d   :  { %v322_v48 = vsub.f32 1.0, %v321_v47 }
 0x32f   :  { %v323_v49 = vmul.f32 %v2661_v46, %v322_v48 }
 0x331   :  { %v324_v50 = vadd.f32 %v2661_v46, %v323_v49 }
 0x333   :  { %v328_v53 = vsel %vm327_vm8, %v2661_v46, %v324_v50 }
 0x334   :  { %v333_v56 = vsel %vm330_vm9, %v332_v54, %v328_v53 }
 0x335   :  { %v336_v58 = vmul.f32 %v333_v56, %v281_v32  ;;  %v422_v32 = vld [vmem:[#allocation4 + $0x6] sm:$0x3] }
 0x37a   :  { %v339_v55 = vpop.permute.xlu2 %338 }
 0x37b   :  { %v341_v57 = vmul.f32 %v339_v55, %v333_v56 }
 0x37d   :  { %343 = vrot.lane.b32.xlu2 %v341_v57, %s3143_s3 }
 0x3d7   :  { %v344_v59 = vpop.permute.xlu2 %343 }
 0x3d8   :  { %v346_v60 = vadd.f32 %v344_v59, %v336_v58 }
 0x3da   :  { %2662 = vtanh.f32 %v346_v60 }
 0x3e0   :  { %v2663_v61 = vpop.eup %2662 }
 0x3e1   :  { %349 = vrot.lane.b32.xlu0 %v2663_v61, %s3133_s26  ;;  %v486_v61 = vld [vmem:[#allocation4 + $0x8] sm:$0x3] }
 0x453   :  { %v350_v62 = vpop.permute.xlu0 %349 }
 0x454   :  { %v3293_v63 = vmul.f32 %v350_v62, %v333_v56 }
 0x456   :  { %v359_v0 = vpack.c.bf16 %v3293_v63, %v3293_v63 }
 0x458   :  { %361 = vrot.lane.b32.xlu1 %v359_v0, %s3143_s3 }
 0x4ca   :  { %v362_v1 = vpop.permute.xlu1 %361 }
 0x4cb   :  { %2470 = vmatmul.msk.bf16.vlgmr.msra.gmra.mxu3 %vm233_vm5, %v362_v1 }
 0x54e   :  { %v375_v5 = vpop.f32.mrf.mxu3 }
 0x54f   :  { %v379_v6 = vadd.f32 %v375_v5, %v358_v3 }
 0x551   :  { %2664 = vtanh.f32 %v379_v6  ;;  %v2471_v9 = vmul.f32 -1.442695, %v379_v6 }
 0x553   :  { %2666 = vpow2.f32 %v2471_v9 }
 0x556   :  { %v377_v7 = vpop.f32.mrf.mxu3 }
 0x557   :  { %v2665_v8 = vpop.eup %2664 }
 0x558   :  { %402 = vrot.lane.b32.xlu2 %v2665_v8, %s3133_s26 }
 0x559   :  { %v2667_v10 = vpop.eup %2666 }
 0x55a   :  { %v383_v11 = vadd.f32 1.0, %v2667_v10 }
 0x55c   :  { %2668 = vrcp.f32 %v383_v11  ;;  %v395_v17 = vand.u32 2147483648, %v383_v11  ;;  %vm389_vm11 = vweird.f32 %v383_v11  ;;  %v393_v18 = vand.u32 2147483647, %v383_v11 }
 0x55e   :  { %v396_v20 = vor.u32 1.1754944e-38, %v395_v17  ;;  %vm394_vm13 = vcmp.eq.f32.partialorder %v393_v18, 8.507059e+37 }
 0x562   :  { %v2669_v12 = vpop.eup %2668 }
 0x563   :  { %v385_v13 = vmul.f32 %v2669_v12, %v383_v11  ;;  %vm390_vm10 = vweird.f32 %v2669_v12 }
 0x564   :  { %vm391_vm12 = vmor %vm389_vm11, %vm390_vm10 }
 0x565   :  { %v386_v14 = vsub.f32 1.0, %v385_v13 }
 0x567   :  { %v387_v15 = vmul.f32 %v2669_v12, %v386_v14 }
 0x569   :  { %v388_v16 = vadd.f32 %v2669_v12, %v387_v15 }
 0x56b   :  { %v392_v19 = vsel %vm391_vm12, %v2669_v12, %v388_v16 }
 0x56c   :  { %v397_v22 = vsel %vm394_vm13, %v396_v20, %v392_v19 }
 0x56d   :  { %v400_v24 = vmul.f32 %v397_v22, %v346_v60 }
 0x5b2   :  { %v403_v21 = vpop.permute.xlu2 %402 }
 0x5b3   :  { %v405_v23 = vmul.f32 %v403_v21, %v397_v22 }
 0x5b5   :  { %407 = vrot.lane.b32.xlu0 %v405_v23, %s3143_s3 }
 0x627   :  { %v408_v25 = vpop.permute.xlu0 %407 }
 0x628   :  { %v410_v26 = vadd.f32 %v408_v25, %v400_v24  ;;  %v2611_v24 = vld [vmem:[#allocation11] sm:$0xff] }
 0x629   :  { %765 = vmatpush.bf16.msra.mxu1 %v2611_v24 }
 0x62a   :  { %2670 = vtanh.f32 %v410_v26 }
 0x630   :  { %v2671_v27 = vpop.eup %2670 }
 0x631   :  { %413 = vrot.lane.b32.xlu1 %v2671_v27, %s3133_s26 }
 0x6a3   :  { %v414_v28 = vpop.permute.xlu1 %413 }
 0x6a4   :  { %v3302_v29 = vmul.f32 %v414_v28, %v397_v22  ;;  %v3330_v28 = vld [vmem:[#allocation13 + $0x8] sm:$0xff] }
 0x6a5   :  { %793 = vmatpush.bf16.msra.mxu2 %v3330_v28  ;;  %858 = vmatpush.bf16.msra.mxu3 %v3330_v28 }
 0x6a6   :  { %v423_v30 = vpack.c.bf16 %v3302_v29, %v3302_v29 }
 0x6a8   :  { %425 = vrot.lane.b32.xlu2 %v423_v30, %s3143_s3  ;;  %v3333_v30 = vld [vmem:[#allocation13] sm:$0xff] }
 0x6a9   :  { %794 = vmatpush.bf16.msra.mxu2 %v3333_v30  ;;  %859 = vmatpush.bf16.msra.mxu3 %v3333_v30 }
 0x702   :  { %v426_v31 = vpop.permute.xlu2 %425 }
 0x703   :  { %2472 = vmatmul.msk.bf16.vlgmr.msrb.gmra.mxu0 %vm233_vm5, %v426_v31 }
 0x704   :  { %922 = vmatpush.bf16.msrb.mxu0 %v3330_v28 }
 0x708   :  { %923 = vmatpush.bf16.msrb.mxu0 %v3333_v30 }
 0x780   :  { %v439_v33 = vpop.f32.mrf.mxu0 }
 0x781   :  { %v443_v34 = vadd.f32 %v439_v33, %v422_v32 }
 0x783   :  { %2672 = vtanh.f32 %v443_v34  ;;  %v2473_v38 = vmul.f32 -1.442695, %v443_v34 }
 0x785   :  { %2674 = vpow2.f32 %v2473_v38  ;;  %v3349_v38 = vld [vmem:[#allocation4 + $0xe] sm:$0x3] }
 0x788   :  { %v441_v36 = vpop.f32.mrf.mxu0 }
 0x789   :  { %v2673_v37 = vpop.eup %2672  ;;  %v550_v36 = vld [vmem:[#allocation4 + $0xa] sm:$0x3] }
 0x78a   :  { %466 = vrot.lane.b32.xlu0 %v2673_v37, %s3133_s26  ;;  %v3347_v37 = vld [vmem:[#allocation4 + $0xc] sm:$0x3] }
 0x78b   :  { %v2675_v39 = vpop.eup %2674 }
 0x78c   :  { %v447_v40 = vadd.f32 1.0, %v2675_v39 }
 0x78e   :  { %2676 = vrcp.f32 %v447_v40  ;;  %v459_v46 = vand.u32 2147483648, %v447_v40  ;;  %vm453_vm15 = vweird.f32 %v447_v40  ;;  %v457_v47 = vand.u32 2147483647, %v447_v40 }
 0x790   :  { %v460_v49 = vor.u32 1.1754944e-38, %v459_v46  ;;  %vm458_vm2 = vcmp.eq.f32.partialorder %v457_v47, 8.507059e+37 }
 0x794   :  { %v2677_v41 = vpop.eup %2676 }
 0x795   :  { %v449_v42 = vmul.f32 %v2677_v41, %v447_v40  ;;  %vm454_vm14 = vweird.f32 %v2677_v41 }
 0x796   :  { %vm455_vm1 = vmor %vm453_vm15, %vm454_vm14 }
 0x797   :  { %v450_v43 = vsub.f32 1.0, %v449_v42 }
 0x799   :  { %v451_v44 = vmul.f32 %v2677_v41, %v450_v43 }
 0x79b   :  { %v452_v45 = vadd.f32 %v2677_v41, %v451_v44 }
 0x79d   :  { %v456_v48 = vsel %vm455_vm1, %v2677_v41, %v452_v45 }
 0x79e   :  { %v461_v51 = vsel %vm458_vm2, %v460_v49, %v456_v48 }
 0x79f   :  { %v464_v53 = vmul.f32 %v461_v51, %v410_v26 }
 0x7fc   :  { %v467_v50 = vpop.permute.xlu0 %466 }
 0x7fd   :  { %v469_v52 = vmul.f32 %v467_v50, %v461_v51 }
 0x7ff   :  { %471 = vrot.lane.b32.xlu1 %v469_v52, %s3143_s3 }
 0x871   :  { %v472_v54 = vpop.permute.xlu1 %471 }
 0x872   :  { %v474_v55 = vadd.f32 %v472_v54, %v464_v53 }
 0x874   :  { %2678 = vtanh.f32 %v474_v55 }
 0x87a   :  { %v2679_v56 = vpop.eup %2678 }
 0x87b   :  { %477 = vrot.lane.b32.xlu2 %v2679_v56, %s3133_s26 }
 0x8d5   :  { %v478_v57 = vpop.permute.xlu2 %477 }
 0x8d6   :  { %v3311_v58 = vmul.f32 %v478_v57, %v461_v51 }
 0x8d8   :  { %v487_v59 = vpack.c.bf16 %v3311_v58, %v3311_v58 }
 0x8da   :  { %489 = vrot.lane.b32.xlu0 %v487_v59, %s3143_s3 }
 0x94c   :  { %v490_v60 = vpop.permute.xlu0 %489 }
 0x94d   :  { %2474 = vmatmul.msk.bf16.vlgmr.msrb.gmra.mxu1 %vm233_vm5, %v490_v60 }
 0x94e   :  { %986 = vmatpush.bf16.msrb.mxu1 %v3330_v28 }
 0x952   :  { %987 = vmatpush.bf16.msrb.mxu1 %v3333_v30 }
 0x95d   :  { %2486 = vmatmul.msk.bf16.vlgmr.msra.gmra.mxu1 %vm200_vm0, %v3273_v2  ;;  %v2644_v2 = vld [vmem:[%s3693_s6] ss:$0 sm:$0xff] }
 0x95e   :  { %1242 = vmatpush.bf16.msra.mxu1 %v3330_v28 }
 0x962   :  { %1243 = vmatpush.bf16.msra.mxu1 %v3333_v30 }
 0x9ca   :  { %v503_v62 = vpop.f32.mrf.mxu1 }
 0x9cb   :  { %v507_v0 = vadd.f32 %v503_v62, %v486_v61 }
 0x9cd   :  { %2680 = vtanh.f32 %v507_v0  ;;  %v2475_v5 = vmul.f32 -1.442695, %v507_v0 }
 0x9cf   :  { %2682 = vpow2.f32 %v2475_v5 }
 0x9d2   :  { %v505_v1 = vpop.f32.mrf.mxu1 }
 0x9d3   :  { %v2681_v3 = vpop.eup %2680 }
 0x9d4   :  { %530 = vrot.lane.b32.xlu1 %v2681_v3, %s3133_s26 }
 0x9d5   :  { %v2683_v6 = vpop.eup %2682 }
 0x9d6   :  { %v511_v7 = vadd.f32 1.0, %v2683_v6 }
 0x9d8   :  { %2684 = vrcp.f32 %v511_v7  ;;  %v523_v13 = vand.u32 2147483648, %v511_v7  ;;  %vm517_vm4 = vweird.f32 %v511_v7  ;;  %v521_v14 = vand.u32 2147483647, %v511_v7 }
 0x9da   :  { %v524_v16 = vor.u32 1.1754944e-38, %v523_v13  ;;  %vm522_vm7 = vcmp.eq.f32.partialorder %v521_v14, 8.507059e+37  ;;  %v767_v31 = vpop.f32.mrf.mxu1 }
 0x9db   :  { %v768_v32 = vadd.f32 %v2644_v2, %v767_v31 }
 0x9dd   :  { %772 = vst [vmem:[#allocation4] sm:$0xff] %v768_v32 }
 0x9de   :  { %v2685_v8 = vpop.eup %2684 }
 0x9df   :  { %v513_v9 = vmul.f32 %v2685_v8, %v511_v7  ;;  %vm518_vm3 = vweird.f32 %v2685_v8 }
 0x9e0   :  { %vm519_vm6 = vmor %vm517_vm4, %vm518_vm3 }
 0x9e1   :  { %v514_v10 = vsub.f32 1.0, %v513_v9 }
 0x9e2   :  { %v769_v33 = vpop.f32.mrf.mxu1 }
 0x9e3   :  { %v515_v11 = vmul.f32 %v2685_v8, %v514_v10  ;;  %v770_v34 = vadd.f32 %v2644_v2, %v769_v33 }
 0x9e5   :  { %v516_v12 = vadd.f32 %v2685_v8, %v515_v11  ;;  %773 = vst [vmem:[#allocation4 + $0x8] sm:$0xff] %v770_v34 }
 0x9e7   :  { %v520_v15 = vsel %vm519_vm6, %v2685_v8, %v516_v12 }
 0x9e8   :  { %v525_v18 = vsel %vm522_vm7, %v524_v16, %v520_v15 }
 0x9e9   :  { %v528_v20 = vmul.f32 %v525_v18, %v474_v55 }
 0x9ec   :  { %v774_v44 = vld [vmem:[#allocation4 + $0xe] sm:$0x3] }
 0xa46   :  { %v531_v17 = vpop.permute.xlu1 %530 }
 0xa47   :  { %v533_v19 = vmul.f32 %v531_v17, %v525_v18 }
 0xa49   :  { %535 = vrot.lane.b32.xlu2 %v533_v19, %s3143_s3 }
 0xaa3   :  { %v536_v21 = vpop.permute.xlu2 %535 }
 0xaa4   :  { %v3319_v22 = vadd.f32 %v536_v21, %v528_v20 }
 0xaa6   :  { %2686 = vtanh.f32 %v3319_v22 }
 0xaac   :  { %v2687_v23 = vpop.eup %2686 }
 0xaad   :  { %541 = vrot.lane.b32.xlu0 %v2687_v23, %s3133_s26 }
 0xb1f   :  { %v542_v25 = vpop.permute.xlu0 %541 }
 0xb20   :  { %v3325_v26 = vmul.f32 %v542_v25, %v525_v18 }
 0xb22   :  { %v551_v27 = vpack.c.bf16 %v3325_v26, %v3325_v26 }
 0xb24   :  { %553 = vrot.lane.b32.xlu1 %v551_v27, %s3143_s3 }
 0xb96   :  { %v554_v39 = vpop.permute.xlu1 %553 }
 0xb97   :  { %2476 = vmatmul.msk.bf16.vlgmr.msrb.gmra.mxu2 %vm233_vm5, %v554_v39 }
 0xb98   :  { %1050 = vmatpush.bf16.msrb.mxu2 %v3330_v28 }
 0xb9c   :  { %1051 = vmatpush.bf16.msrb.mxu2 %v3333_v30 }
 0xba7   :  { %795 = vmatmul.bf16.vlgmr.msra.gmra.mxu2 %v3142_v4 }
 0xc1a   :  { %v567_v40 = vpop.f32.mrf.mxu2 }
 0xc1b   :  { %v571_v41 = vadd.f32 %v567_v40, %v550_v36 }
 0xc1d   :  { %2688 = vtanh.f32 %v571_v41  ;;  %v2477_v49 = vmul.f32 -1.442695, %v571_v41 }
 0xc22   :  { %v569_v42 = vpop.f32.mrf.mxu2 }
 0xc23   :  { %v2689_v43 = vpop.eup %2688 }
 0xc24   :  { %594 = vrot.lane.b32.xlu2 %v2689_v43, %s3133_s26 }
 0xc2a   :  { %v796_v45 = vpop.f32.mrf.mxu2 }
 0xc2b   :  { %v800_v46 = vadd.f32 %v796_v45, %v774_v44  ;;  %v844_v45 = vld [vmem:[#allocation4 + $0xc] sm:$0x3] }
 0xc2d   :  { %2690 = vtanh.f32 %v800_v46  ;;  %v2495_v59 = vmul.f32 -1.442695, %v800_v46 }
 0xc2e   :  { %2692 = vpow2.f32 %v2477_v49 }
 0xc32   :  { %v798_v47 = vpop.f32.mrf.mxu2 }
 0xc33   :  { %v2691_v48 = vpop.eup %2690 }
 0xc34   :  { %823 = vrot.lane.b32.xlu0 %v2691_v48, %s3133_s26  ;;  %v2693_v50 = vpop.eup %2692 }
 0xc35   :  { %v575_v51 = vadd.f32 1.0, %v2693_v50 }
 0xc37   :  { %2694 = vrcp.f32 %v575_v51  ;;  %v587_v57 = vand.u32 2147483648, %v575_v51  ;;  %vm581_vm8 = vweird.f32 %v575_v51  ;;  %v585_v60 = vand.u32 2147483647, %v575_v51 }
 0xc38   :  { %2696 = vpow2.f32 %v2495_v59 }
 0xc39   :  { %v588_v62 = vor.u32 1.1754944e-38, %v587_v57  ;;  %vm586_vm10 = vcmp.eq.f32.partialorder %v585_v60, 8.507059e+37 }
 0xc3d   :  { %v2695_v52 = vpop.eup %2694 }
 0xc3e   :  { %v577_v53 = vmul.f32 %v2695_v52, %v575_v51  ;;  %vm582_vm0 = vweird.f32 %v2695_v52  ;;  %v2697_v5 = vpop.eup %2696 }
 0xc3f   :  { %vm583_vm9 = vmor %vm581_vm8, %vm582_vm0  ;;  %v804_v6 = vadd.f32 1.0, %v2697_v5 }
 0xc40   :  { %v578_v54 = vsub.f32 1.0, %v577_v53 }
 0xc41   :  { %2698 = vrcp.f32 %v804_v6  ;;  %v816_v12 = vand.u32 2147483648, %v804_v6  ;;  %vm810_vm12 = vweird.f32 %v804_v6  ;;  %v814_v13 = vand.u32 2147483647, %v804_v6 }
 0xc42   :  { %v579_v55 = vmul.f32 %v2695_v52, %v578_v54 }
 0xc43   :  { %v817_v15 = vor.u32 1.1754944e-38, %v816_v12  ;;  %vm815_vm14 = vcmp.eq.f32.partialorder %v814_v13, 8.507059e+37 }
 0xc44   :  { %v580_v56 = vadd.f32 %v2695_v52, %v579_v55 }
 0xc46   :  { %v584_v61 = vsel %vm583_vm9, %v2695_v52, %v580_v56 }
 0xc47   :  { %v589_v1 = vsel %vm586_vm10, %v588_v62, %v584_v61  ;;  %v2699_v7 = vpop.eup %2698 }
 0xc48   :  { %v806_v8 = vmul.f32 %v2699_v7, %v804_v6  ;;  %vm811_vm11 = vweird.f32 %v2699_v7  ;;  %v592_v19 = vmul.f32 %v589_v1, %v3319_v22 }
 0xc49   :  { %vm812_vm13 = vmor %vm810_vm12, %vm811_vm11 }
 0xc4a   :  { %v807_v9 = vsub.f32 1.0, %v806_v8 }
 0xc4c   :  { %v808_v10 = vmul.f32 %v2699_v7, %v807_v9 }
 0xc4e   :  { %v809_v11 = vadd.f32 %v2699_v7, %v808_v10 }
 0xc50   :  { %v813_v14 = vsel %vm812_vm13, %v2699_v7, %v809_v11 }
 0xc51   :  { %v818_v17 = vsel %vm815_vm14, %v817_v15, %v813_v14 }
 0xc52   :  { %v821_v24 = vmul.f32 0.0, %v818_v17 }
 0xc7e   :  { %v595_v0 = vpop.permute.xlu2 %594 }
 0xc7f   :  { %v597_v3 = vmul.f32 %v595_v0, %v589_v1 }
 0xc81   :  { %599 = vrot.lane.b32.xlu1 %v597_v3, %s3143_s3 }
 0xca6   :  { %v824_v16 = vpop.permute.xlu0 %823 }
 0xca7   :  { %v826_v18 = vmul.f32 %v824_v16, %v818_v17 }
 0xca9   :  { %828 = vrot.lane.b32.xlu2 %v826_v18, %s3143_s3 }
 0xcf3   :  { %v600_v20 = vpop.permute.xlu1 %599 }
 0xcf4   :  { %v3360_v21 = vadd.f32 %v600_v20, %v592_v19 }
 0xcf6   :  { %2700 = vtanh.f32 %v3360_v21 }
 0xcfc   :  { %v2701_v23 = vpop.eup %2700 }
 0xcfd   :  { %605 = vrot.lane.b32.xlu0 %v2701_v23, %s3133_s26 }
 0xd03   :  { %v829_v25 = vpop.permute.xlu2 %828 }
 0xd04   :  { %v3364_v27 = vadd.f32 %v829_v25, %v821_v24 }
 0xd06   :  { %2702 = vtanh.f32 %v3364_v27 }
 0xd0c   :  { %v2703_v2 = vpop.eup %2702 }
 0xd0d   :  { %834 = vrot.lane.b32.xlu1 %v2703_v2, %s3133_s26 }
 0xd6f   :  { %v606_v31 = vpop.permute.xlu0 %605 }
 0xd70   :  { %v3368_v32 = vmul.f32 %v606_v31, %v589_v1 }
 0xd72   :  { %v615_v22 = vpack.c.bf16 %v3368_v32, %v3368_v32 }
 0xd74   :  { %617 = vrot.lane.b32.xlu2 %v615_v22, %s3143_s3 }
 0xd7f   :  { %v835_v33 = vpop.permute.xlu1 %834 }
 0xd80   :  { %v3373_v34 = vmul.f32 %v835_v33, %v818_v17 }
 0xd82   :  { %v845_v36 = vpack.c.bf16 %v3373_v34, %v3373_v34 }
 0xd84   :  { %847 = vrot.lane.b32.xlu0 %v845_v36, %s3143_s3 }
 0xdce   :  { %v618_v39 = vpop.permute.xlu2 %617 }
 0xdcf   :  { %2478 = vmatmul.msk.bf16.vlgmr.msrb.gmra.mxu3 %vm233_vm5, %v618_v39 }
 0xdd0   :  { %1114 = vmatpush.bf16.msrb.mxu3 %v3330_v28 }
 0xdd4   :  { %1115 = vmatpush.bf16.msrb.mxu3 %v3333_v30 }
 0xdf6   :  { %v848_v40 = vpop.permute.xlu0 %847 }
 0xdf7   :  { %2496 = vmatmul.msk.bf16.vlgmr.msra.gmra.mxu3 %vm233_vm5, %v848_v40 }
 0xe52   :  { %v631_v41 = vpop.f32.mrf.mxu3 }
 0xe53   :  { %v635_v42 = vadd.f32 %v631_v41, %v3347_v37 }
 0xe55   :  { %2704 = vtanh.f32 %v635_v42  ;;  %v2479_v50 = vmul.f32 -1.442695, %v635_v42 }
 0xe5a   :  { %v633_v43 = vpop.f32.mrf.mxu3 }
 0xe5b   :  { %v2705_v44 = vpop.eup %2704 }
 0xe5c   :  { %658 = vrot.lane.b32.xlu1 %v2705_v44, %s3133_s26 }
 0xe7a   :  { %v861_v46 = vpop.f32.mrf.mxu3 }
 0xe7b   :  { %v865_v47 = vadd.f32 %v861_v46, %v844_v45  ;;  %v908_v45 = vld [vmem:[#allocation4 + $0xa] sm:$0x3] }
 0xe7d   :  { %2706 = vtanh.f32 %v865_v47  ;;  %v2497_v53 = vmul.f32 -1.442695, %v865_v47 }
 0xe7e   :  { %2708 = vpow2.f32 %v2479_v50 }
 0xe82   :  { %v863_v48 = vpop.f32.mrf.mxu3 }
 0xe83   :  { %v2707_v49 = vpop.eup %2706 }
 0xe84   :  { %888 = vrot.lane.b32.xlu2 %v2707_v49, %s3133_s26  ;;  %v2709_v51 = vpop.eup %2708 }
 0xe85   :  { %v639_v52 = vadd.f32 1.0, %v2709_v51 }
 0xe87   :  { %2710 = vrcp.f32 %v639_v52  ;;  %v651_v62 = vand.u32 2147483648, %v639_v52  ;;  %vm645_vm1 = vweird.f32 %v639_v52  ;;  %v649_v0 = vand.u32 2147483647, %v639_v52 }
 0xe88   :  { %2712 = vpow2.f32 %v2497_v53 }
 0xe89   :  { %v652_v5 = vor.u32 1.1754944e-38, %v651_v62  ;;  %vm650_vm3 = vcmp.eq.f32.partialorder %v649_v0, 8.507059e+37 }
 0xe8d   :  { %v2711_v37 = vpop.eup %2710 }
 0xe8e   :  { %v2713_v54 = vpop.eup %2712  ;;  %v641_v55 = vmul.f32 %v2711_v37, %v639_v52  ;;  %vm646_vm15 = vweird.f32 %v2711_v37 }
 0xe8f   :  { %v869_v56 = vadd.f32 1.0, %v2713_v54  ;;  %vm647_vm2 = vmor %vm645_vm1, %vm646_vm15 }
 0xe90   :  { %v642_v57 = vsub.f32 1.0, %v641_v55 }
 0xe91   :  { %2714 = vrcp.f32 %v869_v56  ;;  %v881_v12 = vand.u32 2147483648, %v869_v56  ;;  %vm875_vm6 = vweird.f32 %v869_v56  ;;  %v879_v13 = vand.u32 2147483647, %v869_v56 }
 0xe92   :  { %v643_v59 = vmul.f32 %v2711_v37, %v642_v57 }
 0xe93   :  { %v882_v15 = vor.u32 1.1754944e-38, %v881_v12  ;;  %vm880_vm0 = vcmp.eq.f32.partialorder %v879_v13, 8.507059e+37 }
 0xe94   :  { %v644_v60 = vadd.f32 %v2711_v37, %v643_v59 }
 0xe96   :  { %v648_v1 = vsel %vm647_vm2, %v2711_v37, %v644_v60 }
 0xe97   :  { %v2715_v61 = vpop.eup %2714  ;;  %v653_v6 = vsel %vm650_vm3, %v652_v5, %v648_v1 }
 0xe98   :  { %v871_v3 = vmul.f32 %v2715_v61, %v869_v56  ;;  %vm876_vm4 = vweird.f32 %v2715_v61  ;;  %v656_v19 = vmul.f32 %v653_v6, %v3360_v21 }
 0xe99   :  { %vm877_vm7 = vmor %vm875_vm6, %vm876_vm4 }
 0xe9a   :  { %v872_v9 = vsub.f32 1.0, %v871_v3 }
 0xe9c   :  { %v873_v10 = vmul.f32 %v2715_v61, %v872_v9 }
 0xe9e   :  { %v874_v11 = vadd.f32 %v2715_v61, %v873_v10  ;;  %v972_v10 = vld [vmem:[#allocation4 + $0x8] sm:$0x3] }
 0xea0   :  { %v878_v14 = vsel %vm877_vm7, %v2715_v61, %v874_v11 }
 0xea1   :  { %v883_v17 = vsel %vm880_vm0, %v882_v15, %v878_v14 }
 0xea2   :  { %v886_v25 = vmul.f32 %v883_v17, %v3364_v27 }
 0xece   :  { %v659_v7 = vpop.permute.xlu1 %658 }
 0xecf   :  { %v661_v8 = vmul.f32 %v659_v7, %v653_v6 }
 0xed1   :  { %663 = vrot.lane.b32.xlu0 %v661_v8, %s3143_s3 }
 0xede   :  { %v889_v16 = vpop.permute.xlu2 %888 }
 0xedf   :  { %v891_v18 = vmul.f32 %v889_v16, %v883_v17 }
 0xee1   :  { %893 = vrot.lane.b32.xlu1 %v891_v18, %s3143_s3 }
 0xf43   :  { %v664_v20 = vpop.permute.xlu0 %663 }
 0xf44   :  { %v3388_v23 = vadd.f32 %v664_v20, %v656_v19 }
 0xf46   :  { %2716 = vtanh.f32 %v3388_v23 }
 0xf4c   :  { %v2717_v24 = vpop.eup %2716 }
 0xf4d   :  { %669 = vrot.lane.b32.xlu2 %v2717_v24, %s3133_s26 }
 0xf53   :  { %v894_v2 = vpop.permute.xlu1 %893 }
 0xf54   :  { %v896_v31 = vadd.f32 %v894_v2, %v886_v25 }
 0xf56   :  { %2718 = vtanh.f32 %v896_v31 }
 0xf5c   :  { %v2719_v22 = vpop.eup %2718 }
 0xf5d   :  { %899 = vrot.lane.b32.xlu0 %v2719_v22, %s3133_s26 }
 0xfa7   :  { %v670_v33 = vpop.permute.xlu2 %669 }
 0xfa8   :  { %v3394_v36 = vmul.f32 %v670_v33, %v653_v6 }
 0xfaa   :  { %v679_v21 = vpack.c.bf16 %v3394_v36, %v3394_v36 }
 0xfac   :  { %681 = vrot.lane.b32.xlu1 %v679_v21, %s3143_s3 }
 0xfcf   :  { %v900_v39 = vpop.permute.xlu0 %899 }
 0xfd0   :  { %v3399_v40 = vmul.f32 %v900_v39, %v883_v17 }
 0xfd2   :  { %v909_v27 = vpack.c.bf16 %v3399_v40, %v3399_v40 }
 0xfd4   :  { %911 = vrot.lane.b32.xlu2 %v909_v27, %s3143_s3 }
0x101e   :  { %v682_v41 = vpop.permute.xlu1 %681 }
0x101f   :  { %2480 = vmatmul.msk.bf16.vlgmr.msra.gmra.mxu0 %vm233_vm5, %v682_v41 }
0x1020   :  { %1178 = vmatpush.bf16.msra.mxu0 %v3330_v28 }
0x1024   :  { %1179 = vmatpush.bf16.msra.mxu0 %v3333_v30 }
0x102e   :  { %v912_v42 = vpop.permute.xlu2 %911 }
0x102f   :  { %2498 = vmatmul.msk.bf16.vlgmr.msrb.gmra.mxu0 %vm233_vm5, %v912_v42 }
0x109c   :  { %v3408_v43 = vpop.f32.mrf.mxu0 }
0x10a4   :  { %v697_v44 = vpop.f32.mrf.mxu0 }
0x10ac   :  { %v925_v46 = vpop.f32.mrf.mxu0 }
0x10ad   :  { %v929_v47 = vadd.f32 %v925_v46, %v908_v45 }
0x10af   :  { %2720 = vtanh.f32 %v929_v47  ;;  %v2499_v50 = vmul.f32 -1.442695, %v929_v47 }
0x10b1   :  { %2722 = vpow2.f32 %v2499_v50  ;;  %v1036_v50 = vld [vmem:[#allocation4 + $0x6] sm:$0x3] }
0x10b4   :  { %v927_v48 = vpop.f32.mrf.mxu0 }
0x10b5   :  { %v2721_v49 = vpop.eup %2720 }
0x10b6   :  { %952 = vrot.lane.b32.xlu0 %v2721_v49, %s3133_s26 }
0x10b7   :  { %v2723_v51 = vpop.eup %2722 }
0x10b8   :  { %v933_v28 = vadd.f32 1.0, %v2723_v51 }
0x10ba   :  { %2724 = vrcp.f32 %v933_v28  ;;  %v945_v55 = vand.u32 2147483648, %v933_v28  ;;  %vm939_vm9 = vweird.f32 %v933_v28  ;;  %v943_v56 = vand.u32 2147483647, %v933_v28 }
0x10bc   :  { %v946_v59 = vor.u32 1.1754944e-38, %v945_v55  ;;  %vm944_vm11 = vcmp.eq.f32.partialorder %v943_v56, 8.507059e+37 }
0x10c0   :  { %v2725_v30 = vpop.eup %2724 }
0x10c1   :  { %v935_v52 = vmul.f32 %v2725_v30, %v933_v28  ;;  %vm940_vm8 = vweird.f32 %v2725_v30 }
0x10c2   :  { %vm941_vm10 = vmor %vm939_vm9, %vm940_vm8 }
0x10c3   :  { %v936_v53 = vsub.f32 1.0, %v935_v52 }
0x10c5   :  { %v937_v37 = vmul.f32 %v2725_v30, %v936_v53 }
0x10c7   :  { %v938_v54 = vadd.f32 %v2725_v30, %v937_v37 }
0x10c9   :  { %v942_v57 = vsel %vm941_vm10, %v2725_v30, %v938_v54 }
0x10ca   :  { %v947_v61 = vsel %vm944_vm11, %v946_v59, %v942_v57 }
0x10cb   :  { %v950_v0 = vmul.f32 %v947_v61, %v896_v31 }
0x1128   :  { %v953_v60 = vpop.permute.xlu0 %952 }
0x1129   :  { %v955_v62 = vmul.f32 %v953_v60, %v947_v61 }
0x112b   :  { %957 = vrot.lane.b32.xlu1 %v955_v62, %s3143_s3 }
0x119d   :  { %v958_v1 = vpop.permute.xlu1 %957 }
0x119e   :  { %v960_v3 = vadd.f32 %v958_v1, %v950_v0 }
0x11a0   :  { %2726 = vtanh.f32 %v960_v3 }
0x11a6   :  { %v2727_v5 = vpop.eup %2726 }
0x11a7   :  { %963 = vrot.lane.b32.xlu2 %v2727_v5, %s3133_s26 }
0x1201   :  { %v964_v6 = vpop.permute.xlu2 %963 }
0x1202   :  { %v3413_v7 = vmul.f32 %v964_v6, %v947_v61 }
0x1204   :  { %v973_v8 = vpack.c.bf16 %v3413_v7, %v3413_v7 }
0x1206   :  { %975 = vrot.lane.b32.xlu0 %v973_v8, %s3143_s3 }
0x1278   :  { %v976_v9 = vpop.permute.xlu0 %975 }
0x1279   :  { %2500 = vmatmul.msk.bf16.vlgmr.msrb.gmra.mxu1 %vm233_vm5, %v976_v9 }
0x12f6   :  { %v989_v11 = vpop.f32.mrf.mxu1 }
0x12f7   :  { %v993_v12 = vadd.f32 %v989_v11, %v972_v10 }
0x12f9   :  { %2728 = vtanh.f32 %v993_v12  ;;  %v2501_v15 = vmul.f32 -1.442695, %v993_v12 }
0x12fb   :  { %2730 = vpow2.f32 %v2501_v15 }
0x12fe   :  { %v991_v13 = vpop.f32.mrf.mxu1 }
0x12ff   :  { %v2729_v14 = vpop.eup %2728 }
0x1300   :  { %1016 = vrot.lane.b32.xlu1 %v2729_v14, %s3133_s26 }
0x1301   :  { %v2731_v16 = vpop.eup %2730 }
0x1302   :  { %v997_v17 = vadd.f32 1.0, %v2731_v16  ;;  %v1100_v16 = vld [vmem:[#allocation4 + $0x4] sm:$0x3] }
0x1304   :  { %2732 = vrcp.f32 %v997_v17  ;;  %v1009_v2 = vand.u32 2147483648, %v997_v17  ;;  %vm1003_vm13 = vweird.f32 %v997_v17  ;;  %v1007_v31 = vand.u32 2147483647, %v997_v17 }
0x1306   :  { %v1010_v33 = vor.u32 1.1754944e-38, %v1009_v2  ;;  %vm1008_vm15 = vcmp.eq.f32.partialorder %v1007_v31, 8.507059e+37 }
0x130a   :  { %v2733_v18 = vpop.eup %2732 }
0x130b   :  { %v999_v19 = vmul.f32 %v2733_v18, %v997_v17  ;;  %vm1004_vm12 = vweird.f32 %v2733_v18 }
0x130c   :  { %vm1005_vm14 = vmor %vm1003_vm13, %vm1004_vm12 }
0x130d   :  { %v1000_v20 = vsub.f32 1.0, %v999_v19 }
0x130f   :  { %v1001_v24 = vmul.f32 %v2733_v18, %v1000_v20 }
0x1311   :  { %v1002_v25 = vadd.f32 %v2733_v18, %v1001_v24 }
0x1313   :  { %v1006_v22 = vsel %vm1005_vm14, %v2733_v18, %v1002_v25 }
0x1314   :  { %v1011_v39 = vsel %vm1008_vm15, %v1010_v33, %v1006_v22 }
0x1315   :  { %v1014_v41 = vmul.f32 %v1011_v39, %v960_v3 }
0x1372   :  { %v1017_v21 = vpop.permute.xlu1 %1016 }
0x1373   :  { %v1019_v27 = vmul.f32 %v1017_v21, %v1011_v39 }
0x1375   :  { %1021 = vrot.lane.b32.xlu2 %v1019_v27, %s3143_s3 }
0x13cf   :  { %v1022_v42 = vpop.permute.xlu2 %1021 }
0x13d0   :  { %v1024_v44 = vadd.f32 %v1022_v42, %v1014_v41 }
0x13d2   :  { %2734 = vtanh.f32 %v1024_v44 }
0x13d8   :  { %v2735_v45 = vpop.eup %2734 }
0x13d9   :  { %1027 = vrot.lane.b32.xlu0 %v2735_v45, %s3133_s26 }
0x144b   :  { %v1028_v46 = vpop.permute.xlu0 %1027 }
0x144c   :  { %v3422_v47 = vmul.f32 %v1028_v46, %v1011_v39 }
0x144e   :  { %v1037_v48 = vpack.c.bf16 %v3422_v47, %v3422_v47 }
0x1450   :  { %1039 = vrot.lane.b32.xlu1 %v1037_v48, %s3143_s3 }
0x14c2   :  { %v1040_v49 = vpop.permute.xlu1 %1039 }
0x14c3   :  { %2502 = vmatmul.msk.bf16.vlgmr.msrb.gmra.mxu2 %vm233_vm5, %v1040_v49 }
0x1546   :  { %v1053_v51 = vpop.f32.mrf.mxu2 }
0x1547   :  { %v1057_v28 = vadd.f32 %v1053_v51, %v1036_v50 }
0x1549   :  { %2736 = vtanh.f32 %v1057_v28  ;;  %v2503_v53 = vmul.f32 -1.442695, %v1057_v28 }
0x154b   :  { %2738 = vpow2.f32 %v2503_v53 }
0x154e   :  { %v1055_v30 = vpop.f32.mrf.mxu2 }
0x154f   :  { %v2737_v52 = vpop.eup %2736 }
0x1550   :  { %1080 = vrot.lane.b32.xlu2 %v2737_v52, %s3133_s26 }
0x1551   :  { %v2739_v37 = vpop.eup %2738 }
0x1552   :  { %v1061_v54 = vadd.f32 1.0, %v2739_v37 }
0x1554   :  { %2740 = vrcp.f32 %v1061_v54  ;;  %v1073_v61 = vand.u32 2147483648, %v1061_v54  ;;  %vm1067_vm2 = vweird.f32 %v1061_v54  ;;  %v1071_v62 = vand.u32 2147483647, %v1061_v54 }
0x1556   :  { %v1074_v1 = vor.u32 1.1754944e-38, %v1073_v61  ;;  %vm1072_vm4 = vcmp.eq.f32.partialorder %v1071_v62, 8.507059e+37 }
0x155a   :  { %v2741_v55 = vpop.eup %2740 }
0x155b   :  { %v1063_v56 = vmul.f32 %v2741_v55, %v1061_v54  ;;  %vm1068_vm1 = vweird.f32 %v2741_v55  ;;  %v1164_v54 = vld [vmem:[#allocation4 + $0x2] sm:$0x3] }
0x155c   :  { %vm1069_vm3 = vmor %vm1067_vm2, %vm1068_vm1 }
0x155d   :  { %v1064_v57 = vsub.f32 1.0, %v1063_v56 }
0x155f   :  { %v1065_v59 = vmul.f32 %v2741_v55, %v1064_v57 }
0x1561   :  { %v1066_v60 = vadd.f32 %v2741_v55, %v1065_v59 }
0x1563   :  { %v1070_v0 = vsel %vm1069_vm3, %v2741_v55, %v1066_v60 }
0x1564   :  { %v1075_v5 = vsel %vm1072_vm4, %v1074_v1, %v1070_v0 }
0x1565   :  { %v1078_v8 = vmul.f32 %v1075_v5, %v1024_v44 }
0x15aa   :  { %v1081_v3 = vpop.permute.xlu2 %1080 }
0x15ab   :  { %v1083_v6 = vmul.f32 %v1081_v3, %v1075_v5 }
0x15ad   :  { %1085 = vrot.lane.b32.xlu0 %v1083_v6, %s3143_s3 }
0x161f   :  { %v1086_v9 = vpop.permute.xlu0 %1085 }
0x1620   :  { %v1088_v10 = vadd.f32 %v1086_v9, %v1078_v8 }
0x1622   :  { %2742 = vtanh.f32 %v1088_v10 }
0x1628   :  { %v2743_v11 = vpop.eup %2742 }
0x1629   :  { %1091 = vrot.lane.b32.xlu1 %v2743_v11, %s3133_s26 }
0x169b   :  { %v1092_v12 = vpop.permute.xlu1 %1091 }
0x169c   :  { %v3431_v13 = vmul.f32 %v1092_v12, %v1075_v5  ;;  %v699_v12 = vadd.f32 %v3408_v43, %v3349_v38 }
0x169e   :  { %v1101_v14 = vpack.c.bf16 %v3431_v13, %v3431_v13 }
0x16a0   :  { %1103 = vrot.lane.b32.xlu2 %v1101_v14, %s3143_s3 }
0x16fa   :  { %v1104_v15 = vpop.permute.xlu2 %1103 }
0x16fb   :  { %2504 = vmatmul.msk.bf16.vlgmr.msrb.gmra.mxu3 %vm233_vm5, %v1104_v15 }
0x177e   :  { %v1117_v17 = vpop.f32.mrf.mxu3 }
0x177f   :  { %v1121_v18 = vadd.f32 %v1117_v17, %v1100_v16 }
0x1781   :  { %2744 = vtanh.f32 %v1121_v18  ;;  %v2505_v24 = vmul.f32 -1.442695, %v1121_v18 }
0x1783   :  { %2746 = vpow2.f32 %v2505_v24 }
0x1786   :  { %v1119_v19 = vpop.f32.mrf.mxu3 }
0x1787   :  { %v2745_v20 = vpop.eup %2744 }
0x1788   :  { %1144 = vrot.lane.b32.xlu0 %v2745_v20, %s3133_s26 }
0x1789   :  { %v2747_v25 = vpop.eup %2746 }
0x178a   :  { %v1125_v2 = vadd.f32 1.0, %v2747_v25  ;;  %v2481_v25 = vmul.f32 -1.442695, %v699_v12 }
0x178c   :  { %2748 = vrcp.f32 %v1125_v2  ;;  %v1137_v27 = vand.u32 2147483648, %v1125_v2  ;;  %vm1131_vm7 = vweird.f32 %v1125_v2  ;;  %v1135_v41 = vand.u32 2147483647, %v1125_v2 }
0x178e   :  { %v1138_v44 = vor.u32 1.1754944e-38, %v1137_v27  ;;  %vm1136_vm8 = vcmp.eq.f32.partialorder %v1135_v41, 8.507059e+37 }
0x1792   :  { %v2749_v31 = vpop.eup %2748 }
0x1793   :  { %v1127_v22 = vmul.f32 %v2749_v31, %v1125_v2  ;;  %vm1132_vm6 = vweird.f32 %v2749_v31 }
0x1794   :  { %vm1133_vm0 = vmor %vm1131_vm7, %vm1132_vm6  ;;  %vm292_vm7 = vcmask 254976  }
0x1795   :  { %v1128_v33 = vsub.f32 1.0, %v1127_v22 }
0x1797   :  { %v1129_v21 = vmul.f32 %v2749_v31, %v1128_v33 }
0x1799   :  { %v1130_v39 = vadd.f32 %v2749_v31, %v1129_v21 }
0x179b   :  { %v1134_v42 = vsel %vm1133_vm0, %v2749_v31, %v1130_v39  ;;  %vm842_vm0 = vcmask 517376  }
0x179c   :  { %v1139_v46 = vsel %vm1136_vm8, %v1138_v44, %v1134_v42  ;;  %vm1335_vm8 = vcmask 523264  }
0x179d   :  { %v1142_v49 = vmul.f32 %v1139_v46, %v1088_v10 }
0x17fa   :  { %v1145_v45 = vpop.permute.xlu0 %1144 }
0x17fb   :  { %v1147_v48 = vmul.f32 %v1145_v45, %v1139_v46 }
0x17fd   :  { %1149 = vrot.lane.b32.xlu1 %v1147_v48, %s3143_s3 }
0x186f   :  { %v1150_v50 = vpop.permute.xlu1 %1149 }
0x1870   :  { %v1152_v51 = vadd.f32 %v1150_v50, %v1142_v49 }
0x1872   :  { %2750 = vtanh.f32 %v1152_v51 }
0x1878   :  { %v2751_v28 = vpop.eup %2750 }
0x1879   :  { %1155 = vrot.lane.b32.xlu2 %v2751_v28, %s3133_s26  ;;  %v1228_v28 = vld [vmem:[#allocation4] sm:$0x3] }
0x18d3   :  { %v1156_v30 = vpop.permute.xlu2 %1155 }
0x18d4   :  { %v3440_v52 = vmul.f32 %v1156_v30, %v1139_v46 }
0x18d6   :  { %v1165_v53 = vpack.c.bf16 %v3440_v52, %v3440_v52 }
0x18d8   :  { %1167 = vrot.lane.b32.xlu0 %v1165_v53, %s3143_s3 }
0x194a   :  { %v1168_v37 = vpop.permute.xlu0 %1167 }
0x194b   :  { %2506 = vmatmul.msk.bf16.vlgmr.msra.gmra.mxu0 %vm233_vm5, %v1168_v37 }
0x19c8   :  { %v1181_v55 = vpop.f32.mrf.mxu0 }
0x19c9   :  { %v1185_v56 = vadd.f32 %v1181_v55, %v1164_v54 }
0x19cb   :  { %2752 = vtanh.f32 %v1185_v56  ;;  %v2507_v60 = vmul.f32 -1.442695, %v1185_v56 }
0x19cd   :  { %2754 = vpow2.f32 %v2507_v60 }
0x19d0   :  { %v1183_v57 = vpop.f32.mrf.mxu0 }
0x19d1   :  { %v2753_v59 = vpop.eup %2752 }
0x19d2   :  { %1208 = vrot.lane.b32.xlu1 %v2753_v59, %s3133_s26 }
0x19d3   :  { %v2755_v61 = vpop.eup %2754 }
0x19d4   :  { %v1189_v62 = vadd.f32 1.0, %v2755_v61 }
0x19d6   :  { %2756 = vrcp.f32 %v1189_v62  ;;  %v1201_v8 = vand.u32 2147483648, %v1189_v62  ;;  %vm1195_vm10 = vweird.f32 %v1189_v62  ;;  %v1199_v9 = vand.u32 2147483647, %v1189_v62 }
0x19d7   :  { %2758 = vtanh.f32 %v699_v12 }
0x19d8   :  { %v1202_v11 = vor.u32 1.1754944e-38, %v1201_v8  ;;  %vm1200_vm12 = vcmp.eq.f32.partialorder %v1199_v9, 8.507059e+37 }
0x19dc   :  { %v2757_v0 = vpop.eup %2756 }
0x19dd   :  { %v1191_v1 = vmul.f32 %v2757_v0, %v1189_v62  ;;  %vm1196_vm9 = vweird.f32 %v2757_v0  ;;  %v2759_v17 = vpop.eup %2758 }
0x19de   :  { %vm1197_vm11 = vmor %vm1195_vm10, %vm1196_vm9 }
0x19df   :  { %v1192_v3 = vsub.f32 1.0, %v1191_v1 }
0x19e1   :  { %v1193_v5 = vmul.f32 %v2757_v0, %v1192_v3 }
0x19e3   :  { %v1194_v6 = vadd.f32 %v2757_v0, %v1193_v5 }
0x19e5   :  { %v1198_v10 = vsel %vm1197_vm11, %v2757_v0, %v1194_v6 }
0x19e6   :  { %v1203_v15 = vsel %vm1200_vm12, %v1202_v11, %v1198_v10 }
0x19e7   :  { %v1206_v18 = vmul.f32 %v1203_v15, %v1152_v51 }
0x1a44   :  { %v1209_v14 = vpop.permute.xlu1 %1208 }
0x1a45   :  { %v1211_v16 = vmul.f32 %v1209_v14, %v1203_v15 }
0x1a47   :  { %1213 = vrot.lane.b32.xlu2 %v1211_v16, %s3143_s3 }
0x1a4f   :  { %722 = vrot.lane.b32.xlu2 %v2759_v17, %s3133_s26 }
0x1aa1   :  { %v1214_v19 = vpop.permute.xlu2 %1213 }
0x1aa2   :  { %v3451_v20 = vadd.f32 %v1214_v19, %v1206_v18 }
0x1aa4   :  { %2760 = vtanh.f32 %v3451_v20 }
0x1aa5   :  { %2762 = vpow2.f32 %v2481_v25 }
0x1aa9   :  { %v723_v48 = vpop.permute.xlu2 %722 }
0x1aaa   :  { %v2761_v24 = vpop.eup %2760 }
0x1aab   :  { %1219 = vrot.lane.b32.xlu0 %v2761_v24, %s3133_s26  ;;  %v2763_v38 = vpop.eup %2762 }
0x1aac   :  { %v703_v43 = vadd.f32 1.0, %v2763_v38 }
0x1aae   :  { %2764 = vrcp.f32 %v703_v43  ;;  %v715_v42 = vand.u32 2147483648, %v703_v43  ;;  %vm709_vm14 = vweird.f32 %v703_v43  ;;  %v713_v44 = vand.u32 2147483647, %v703_v43 }
0x1ab0   :  { %v716_v46 = vor.u32 1.1754944e-38, %v715_v42  ;;  %vm714_vm1 = vcmp.eq.f32.partialorder %v713_v44, 8.507059e+37 }
0x1ab4   :  { %v2765_v2 = vpop.eup %2764 }
0x1ab5   :  { %v705_v31 = vmul.f32 %v2765_v2, %v703_v43  ;;  %vm710_vm13 = vweird.f32 %v2765_v2 }
0x1ab6   :  { %vm711_vm15 = vmor %vm709_vm14, %vm710_vm13 }
0x1ab7   :  { %v706_v22 = vsub.f32 1.0, %v705_v31 }
0x1ab9   :  { %v707_v33 = vmul.f32 %v2765_v2, %v706_v22  ;;  %v2615_v22 = vld [vmem:[%s3694_s7 + $0x8] sm:$0xff] }
0x1abb   :  { %v708_v27 = vadd.f32 %v2765_v2, %v707_v33  ;;  %v2619_v33 = vld [vmem:[#allocation14 + $0x8] sm:$0xff] }
0x1abc   :  { %1374 = vmatpush.bf16.msra.mxu3 %v2619_v33  ;;  %1433 = vmatpush.bf16.msrb.mxu0 %v2619_v33 }
0x1abd   :  { %v712_v45 = vsel %vm711_vm15, %v2765_v2, %v708_v27  ;;  %1492 = vmatpush.bf16.msrb.mxu1 %v2619_v33 }
0x1abe   :  { %v717_v49 = vsel %vm714_vm1, %v716_v46, %v712_v45 }
0x1abf   :  { %v725_v50 = vmul.f32 %v723_v48, %v717_v49  ;;  %v720_v54 = vmul.f32 %v717_v49, %v3388_v23  ;;  %v2645_v48 = vld [vmem:[%s3696_s9] ss:$0 sm:$0xff] }
0x1b1d   :  { %v1220_v21 = vpop.permute.xlu0 %1219 }
0x1b1e   :  { %v3455_v39 = vmul.f32 %v1220_v21, %v1203_v15  ;;  %v2614_v21 = vld [vmem:[%s3694_s7] sm:$0xff] }
0x1b20   :  { %v1229_v41 = vpack.c.bf16 %v3455_v39, %v3455_v39 }
0x1b22   :  { %1231 = vrot.lane.b32.xlu1 %v1229_v41, %s3143_s3 }
0x1b2a   :  { %727 = vrot.lane.b32.xlu1 %v725_v50, %s3143_s3 }
0x1b94   :  { %v1232_v51 = vpop.permute.xlu1 %1231 }
0x1b95   :  { %2508 = vmatmul.msk.bf16.vlgmr.msra.gmra.mxu1 %vm233_vm5, %v1232_v51 }
0x1b9c   :  { %v728_v37 = vpop.permute.xlu1 %727 }
0x1b9d   :  { %v730_v55 = vadd.f32 %v728_v37, %v720_v54 }
0x1c12   :  { %v1245_v30 = vpop.f32.mrf.mxu1 }
0x1c13   :  { %v1249_v53 = vadd.f32 %v1245_v30, %v1228_v28 }
0x1c15   :  { %2766 = vtanh.f32 %v1249_v53  ;;  %v2509_v60 = vmul.f32 -1.442695, %v1249_v53 }
0x1c16   :  { %2768 = vtanh.f32 %v730_v55 }
0x1c17   :  { %2770 = vpow2.f32 %v2509_v60 }
0x1c1a   :  { %v1247_v56 = vpop.f32.mrf.mxu1 }
0x1c1b   :  { %v2767_v57 = vpop.eup %2766 }
0x1c1c   :  { %1272 = vrot.lane.b32.xlu0 %v2767_v57, %s3133_s26  ;;  %v2769_v59 = vpop.eup %2768 }
0x1c1d   :  { %v2771_v61 = vpop.eup %2770 }
0x1c1e   :  { %v1253_v62 = vadd.f32 1.0, %v2771_v61 }
0x1c20   :  { %2772 = vrcp.f32 %v1253_v62  ;;  %v1265_v6 = vand.u32 2147483648, %v1253_v62  ;;  %vm1259_vm3 = vweird.f32 %v1253_v62  ;;  %v1263_v8 = vand.u32 2147483647, %v1253_v62 }
0x1c22   :  { %vm1264_vm6 = vcmp.eq.f32.partialorder %v1263_v8, 8.507059e+37 }
0x1c24   :  { %733 = vrot.lane.b32.xlu0 %v2769_v59, %s3133_s26 }
0x1c26   :  { %v2773_v23 = vpop.eup %2772 }
0x1c27   :  { %v1255_v0 = vmul.f32 %v2773_v23, %v1253_v62  ;;  %vm1260_vm2 = vweird.f32 %v2773_v23 }
0x1c28   :  { %vm1261_vm4 = vmor %vm1259_vm3, %vm1260_vm2 }
0x1c29   :  { %v1256_v1 = vsub.f32 1.0, %v1255_v0 }
0x1c2b   :  { %v1257_v3 = vmul.f32 %v2773_v23, %v1256_v1 }
0x1c2c   :  { %354 = vrot.lane.b32.xlu0 %v3293_v63, %s3143_s3  ;;  %v1266_v63 = vor.u32 1.1754944e-38, %v1265_v6 }
0x1c2d   :  { %v1258_v5 = vadd.f32 %v2773_v23, %v1257_v3 }
0x1c2f   :  { %v1262_v9 = vsel %vm1261_vm4, %v2773_v23, %v1258_v5 }
0x1c34   :  { %546 = vrot.lane.b32.xlu0 %v3325_v26, %s3143_s3  ;;  %v1267_v26 = vsel %vm1264_vm6, %v1266_v63, %v1262_v9 }
0x1c8e   :  { %v1273_v10 = vpop.permute.xlu0 %1272 }
0x1c8f   :  { %v1275_v11 = vmul.f32 %v1273_v10, %v1267_v26 }
0x1c91   :  { %1277 = vrot.lane.b32.xlu2 %v1275_v11, %s3143_s3 }
0x1c96   :  { %v734_v12 = vpop.permute.xlu0 %733 }
0x1c97   :  { %v736_v14 = vmul.f32 %v734_v12, %v717_v49 }
0x1c99   :  { %289 = vrot.lane.b32.xlu2 %v3284_v35, %s3143_s3  ;;  %738 = vrot.lane.b32.xlu0 %v736_v14, %s3143_s3  ;;  %v1270_v35 = vmul.f32 %v1267_v26, %v3451_v20 }
0x1c9e   :  { %v355_v15 = vpop.permute.xlu0 %354 }
0x1c9f   :  { %357 = vst.msk [vmem:[#allocation2 + $0x2] sm:$0x3] %vm292_vm7, %v355_v15 }
0x1ca1   :  { %482 = vrot.lane.b32.xlu2 %v3311_v58, %s3143_s3  ;;  %968 = vrot.lane.b32.xlu0 %v3413_v7, %s3133_s26 }
0x1ca6   :  { %v547_v16 = vpop.permute.xlu0 %546 }
0x1ca7   :  { %549 = vst.msk [vmem:[#allocation2 + $0x8] sm:$0x3] %vm292_vm7, %v547_v16 }
0x1ca9   :  { %674 = vrot.lane.b32.xlu2 %v3394_v36, %s3143_s3  ;;  %1160 = vrot.lane.b32.xlu0 %v3440_v52, %s3133_s26 }
0x1cb1   :  { %904 = vrot.lane.b32.xlu2 %v3399_v40, %s3133_s26 }
0x1cb9   :  { %1096 = vrot.lane.b32.xlu2 %v3431_v13, %s3133_s26 }
0x1ceb   :  { %v1278_v58 = vpop.permute.xlu2 %1277 }
0x1cec   :  { %v1280_v17 = vadd.f32 %v1278_v58, %v1270_v35 }
0x1cee   :  { %2774 = vtanh.f32 %v1280_v17 }
0x1cf3   :  { %v290_v7 = vpop.permute.xlu2 %289 }
0x1cf4   :  { %v2775_v18 = vpop.eup %2774  ;;  %293 = vst.msk [vmem:[#allocation2] sm:$0x3] %vm292_vm7, %v290_v7 }
0x1cf5   :  { %1283 = vrot.lane.b32.xlu1 %v2775_v18, %s3133_s26 }
0x1cfb   :  { %v483_v36 = vpop.permute.xlu2 %482 }
0x1cfc   :  { %485 = vst.msk [vmem:[#allocation2 + $0x6] sm:$0x3] %vm292_vm7, %v483_v36 }
0x1cfd   :  { %418 = vrot.lane.b32.xlu1 %v3302_v29, %s3143_s3 }
0x1d03   :  { %v675_v40 = vpop.permute.xlu2 %674 }
0x1d04   :  { %677 = vst.msk [vmem:[#allocation2 + $0xc] sm:$0x3] %vm292_vm7, %v675_v40 }
0x1d05   :  { %610 = vrot.lane.b32.xlu1 %v3368_v32, %s3143_s3 }
0x1d0b   :  { %v905_v13 = vpop.permute.xlu2 %904  ;;  %v739_v52 = vpop.permute.xlu0 %738 }
0x1d0c   :  { %907 = vst.msk [vmem:[#allocation2 + $0xc] sm:$0x3] %vm842_vm0, %v905_v13 }
0x1d0d   :  { %741 = vst.msk [vmem:[#allocation2 + $0xe] sm:$0x3] %vm292_vm7, %v739_v52  ;;  %839 = vrot.lane.b32.xlu1 %v3373_v34, %s3133_s26  ;;  %v2617_v34 = vld [vmem:[%s3694_s7 + $0x18] sm:$0xff] }
0x1d0e   :  { %1343 = vmatpush.bf16.msra.mxu2 %v2617_v34 }
0x1d13   :  { %v1097_v19 = vpop.permute.xlu2 %1096  ;;  %v969_v29 = vpop.permute.xlu0 %968 }
0x1d14   :  { %1099 = vst.msk [vmem:[#allocation2 + $0x6] sm:$0x3] %vm842_vm0, %v1097_v19 }
0x1d15   :  { %1032 = vrot.lane.b32.xlu1 %v3422_v47, %s3133_s26  ;;  %v2616_v47 = vld [vmem:[%s3694_s7 + $0x10] sm:$0xff] }
0x1d16   :  { %1344 = vmatpush.bf16.msra.mxu2 %v2616_v47 }
0x1d1a   :  { %1345 = vmatpush.bf16.msra.mxu2 %v2615_v22 }
0x1d1b   :  { %v1161_v25 = vpop.permute.xlu0 %1160 }
0x1d1d   :  { %1224 = vrot.lane.b32.xlu1 %v3455_v39, %s3133_s26  ;;  %v2618_v39 = vld [vmem:[#allocation14] sm:$0xff] }
0x1d1e   :  { %1346 = vmatpush.bf16.msra.mxu2 %v2614_v21  ;;  %1375 = vmatpush.bf16.msra.mxu3 %v2618_v39 }
0x1d1f   :  { %1434 = vmatpush.bf16.msrb.mxu0 %v2618_v39  ;;  %1493 = vmatpush.bf16.msrb.mxu1 %v2618_v39 }
0x1d21   :  { %1376 = vmatmul.bf16.vlgmr.msra.gmra.mxu3 %v3142_v4 }
0x1d22   :  { %1551 = vmatpush.bf16.msrb.mxu2 %v2619_v33  ;;  %1610 = vmatpush.bf16.msrb.mxu3 %v2619_v33 }
0x1d23   :  { %1669 = vmatpush.bf16.msra.mxu0 %v2619_v33  ;;  %1728 = vmatpush.bf16.msra.mxu1 %v2619_v33 }
0x1d26   :  { %1552 = vmatpush.bf16.msrb.mxu2 %v2618_v39  ;;  %1611 = vmatpush.bf16.msrb.mxu3 %v2618_v39 }
0x1d27   :  { %1670 = vmatpush.bf16.msra.mxu0 %v2618_v39  ;;  %1729 = vmatpush.bf16.msra.mxu1 %v2618_v39 }
0x1d67   :  { %v1284_v32 = vpop.permute.xlu1 %1283 }
0x1d68   :  { %v1286_v20 = vmul.f32 %v1284_v32, %v1267_v26 }
0x1d6a   :  { %1288 = vrot.lane.b32.xlu2 %v1286_v20, %s3133_s26 }
0x1d6f   :  { %v419_v24 = vpop.permute.xlu1 %418 }
0x1d70   :  { %421 = vst.msk [vmem:[#allocation2 + $0x4] sm:$0x3] %vm292_vm7, %v419_v24 }
0x1d71   :  { %1163 = vst.msk [vmem:[#allocation2 + $0x4] sm:$0x3] %vm842_vm0, %v1161_v25 }
0x1d77   :  { %v611_v38 = vpop.permute.xlu1 %610 }
0x1d78   :  { %613 = vst.msk [vmem:[#allocation2 + $0xa] sm:$0x3] %vm292_vm7, %v611_v38 }
0x1d79   :  { %971 = vst.msk [vmem:[#allocation2 + $0xa] sm:$0x3] %vm842_vm0, %v969_v29 }
0x1d7f   :  { %v840_v43 = vpop.permute.xlu1 %839 }
0x1d80   :  { %843 = vst.msk [vmem:[#allocation2 + $0xe] sm:$0x3] %vm842_vm0, %v840_v43 }
0x1d87   :  { %v1033_v2 = vpop.permute.xlu1 %1032 }
0x1d88   :  { %1035 = vst.msk [vmem:[#allocation2 + $0x8] sm:$0x3] %vm842_vm0, %v1033_v2 }
0x1d8f   :  { %v1225_v31 = vpop.permute.xlu1 %1224  ;;  %v1293_v42 = vld [vmem:[#allocation2 + $0x8] sm:$0xff] }
0x1d90   :  { %1227 = vst.msk [vmem:[#allocation2 + $0x2] sm:$0x3] %vm842_vm0, %v1225_v31 }
0x1da4   :  { %v1377_v45 = vpop.f32.mrf.mxu3 }
0x1dac   :  { %v1379_v46 = vpop.f32.mrf.mxu3 }
0x1dc4   :  { %v1289_v27 = vpop.permute.xlu2 %1288 }
0x1dc5   :  { %1291 = vst.msk [vmem:[#allocation2] sm:$0x3] %vm842_vm0, %v1289_v27 }
0x1dcc   :  { %v1292_v41 = vld [vmem:[#allocation2] sm:$0xff] }
0x1dcd   :  { %v3527_v44 = vpack.c.bf16 %v1293_v42, %v1292_v41 }
0x1dcf   :  { %2526 = vmatmul.msk.bf16.vlgmr.msra.gmra.mxu2 %vm1335_vm8, %v3527_v44 }
0x1dd0   :  { %1787 = vmatpush.bf16.msra.mxu2 %v2619_v33 }
0x1dd4   :  { %1788 = vmatpush.bf16.msra.mxu2 %v2618_v39 }
0x1e52   :  { %v1348_v49 = vpop.f32.mrf.mxu2 }
0x1e53   :  { %v1349_v50 = vadd.f32 %v2645_v48, %v1348_v49 }
0x1e55   :  { %1353 = vst [vmem:[#allocation4] sm:$0xff] %v1349_v50 }
0x1e5a   :  { %v1350_v51 = vpop.f32.mrf.mxu2 }
0x1e5b   :  { %v1351_v28 = vadd.f32 %v2645_v48, %v1350_v51 }
0x1e5c   :  { %v1355_v30 = vld [vmem:[#allocation4] sm:$0x3]  ;;  %v1419_v16 = vld [vmem:[#allocation4 + $0x2] sm:$0x3]  ;;  %v1478_v42 = vld [vmem:[#allocation4 + $0x4] sm:$0x3] }
0x1e5d   :  { %v1381_v53 = vadd.f32 %v1377_v45, %v1355_v30  ;;  %1354 = vst [vmem:[#allocation4 + $0x8] sm:$0xff] %v1351_v28 }
0x1e5f   :  { %2776 = vtanh.f32 %v1381_v53  ;;  %v2535_v54 = vmul.f32 -1.442695, %v1381_v53 }
0x1e61   :  { %2778 = vpow2.f32 %v2535_v54 }
0x1e65   :  { %v2777_v37 = vpop.eup %2776 }
0x1e66   :  { %1404 = vrot.lane.b32.xlu0 %v2777_v37, %s3133_s26 }
0x1e67   :  { %v2779_v55 = vpop.eup %2778 }
0x1e68   :  { %v1385_v56 = vadd.f32 1.0, %v2779_v55 }
0x1e6a   :  { %2780 = vrcp.f32 %v1385_v56  ;;  %v1397_v23 = vand.u32 2147483648, %v1385_v56  ;;  %vm1391_vm10 = vweird.f32 %v1385_v56  ;;  %v1395_v0 = vand.u32 2147483647, %v1385_v56 }
0x1e6c   :  { %v1398_v3 = vor.u32 1.1754944e-38, %v1397_v23  ;;  %vm1396_vm12 = vcmp.eq.f32.partialorder %v1395_v0, 8.507059e+37 }
0x1e70   :  { %v2781_v57 = vpop.eup %2780 }
0x1e71   :  { %v1387_v59 = vmul.f32 %v2781_v57, %v1385_v56  ;;  %vm1392_vm9 = vweird.f32 %v2781_v57 }
0x1e72   :  { %vm1393_vm11 = vmor %vm1391_vm10, %vm1392_vm9 }
0x1e73   :  { %v1388_v60 = vsub.f32 1.0, %v1387_v59 }
0x1e75   :  { %v1389_v61 = vmul.f32 %v2781_v57, %v1388_v60 }
0x1e77   :  { %v1390_v62 = vadd.f32 %v2781_v57, %v1389_v61 }
0x1e79   :  { %v1394_v1 = vsel %vm1393_vm11, %v2781_v57, %v1390_v62 }
0x1e7a   :  { %v1399_v6 = vsel %vm1396_vm12, %v1398_v3, %v1394_v1 }
0x1e7b   :  { %v1402_v9 = vmul.f32 0.0, %v1399_v6 }
0x1ed8   :  { %v1405_v5 = vpop.permute.xlu0 %1404 }
0x1ed9   :  { %v1407_v8 = vmul.f32 %v1405_v5, %v1399_v6 }
0x1edb   :  { %1409 = vrot.lane.b32.xlu1 %v1407_v8, %s3143_s3 }
0x1f4d   :  { %v1410_v63 = vpop.permute.xlu1 %1409 }
0x1f4e   :  { %v1412_v10 = vadd.f32 %v1410_v63, %v1402_v9 }
0x1f50   :  { %2782 = vtanh.f32 %v1412_v10 }
0x1f56   :  { %v2783_v26 = vpop.eup %2782 }
0x1f57   :  { %1415 = vrot.lane.b32.xlu2 %v2783_v26, %s3133_s26 }
0x1fb1   :  { %v1416_v11 = vpop.permute.xlu2 %1415 }
0x1fb2   :  { %v1418_v12 = vmul.f32 %v1416_v11, %v1399_v6 }
0x1fb4   :  { %v1420_v14 = vpack.c.bf16 %v1418_v12, %v1418_v12 }
0x1fb6   :  { %1422 = vrot.lane.b32.xlu0 %v1420_v14, %s3143_s3 }
0x2028   :  { %v1423_v15 = vpop.permute.xlu0 %1422 }
0x2029   :  { %2536 = vmatmul.msk.bf16.vlgmr.msrb.gmra.mxu0 %vm233_vm5, %v1423_v15 }
0x20a6   :  { %v1436_v35 = vpop.f32.mrf.mxu0 }
0x20a7   :  { %v1440_v58 = vadd.f32 %v1436_v35, %v1419_v16 }
0x20a9   :  { %2784 = vtanh.f32 %v1440_v58  ;;  %v2537_v18 = vmul.f32 -1.442695, %v1440_v58 }
0x20ab   :  { %2786 = vpow2.f32 %v2537_v18 }
0x20ae   :  { %v1438_v17 = vpop.f32.mrf.mxu0 }
0x20af   :  { %v2785_v7 = vpop.eup %2784 }
0x20b0   :  { %1463 = vrot.lane.b32.xlu1 %v2785_v7, %s3133_s26 }
0x20b1   :  { %v2787_v36 = vpop.eup %2786 }
0x20b2   :  { %v1444_v40 = vadd.f32 1.0, %v2787_v36 }
0x20b4   :  { %2788 = vrcp.f32 %v1444_v40  ;;  %v1456_v20 = vand.u32 2147483648, %v1444_v40  ;;  %vm1450_vm14 = vweird.f32 %v1444_v40  ;;  %v1454_v24 = vand.u32 2147483647, %v1444_v40 }
0x20b6   :  { %v1457_v34 = vor.u32 1.1754944e-38, %v1456_v20  ;;  %vm1455_vm1 = vcmp.eq.f32.partialorder %v1454_v24, 8.507059e+37 }
0x20ba   :  { %v2789_v13 = vpop.eup %2788 }
0x20bb   :  { %v1446_v52 = vmul.f32 %v2789_v13, %v1444_v40  ;;  %vm1451_vm13 = vweird.f32 %v2789_v13 }
0x20bc   :  { %vm1452_vm15 = vmor %vm1450_vm14, %vm1451_vm13 }
0x20bd   :  { %v1447_v19 = vsub.f32 1.0, %v1446_v52 }
0x20bf   :  { %v1448_v29 = vmul.f32 %v2789_v13, %v1447_v19 }
0x20c1   :  { %v1449_v32 = vadd.f32 %v2789_v13, %v1448_v29 }
0x20c3   :  { %v1453_v25 = vsel %vm1452_vm15, %v2789_v13, %v1449_v32 }
0x20c4   :  { %v1458_v38 = vsel %vm1455_vm1, %v1457_v34, %v1453_v25 }
0x20c5   :  { %v1461_v2 = vmul.f32 %v1458_v38, %v1412_v10  ;;  %v1537_v10 = vld [vmem:[#allocation4 + $0x6] sm:$0x3] }
0x2122   :  { %v1464_v47 = vpop.permute.xlu1 %1463 }
0x2123   :  { %v1466_v43 = vmul.f32 %v1464_v47, %v1458_v38 }
0x2125   :  { %1468 = vrot.lane.b32.xlu2 %v1466_v43, %s3143_s3 }
0x217f   :  { %v1469_v31 = vpop.permute.xlu2 %1468 }
0x2180   :  { %v1471_v22 = vadd.f32 %v1469_v31, %v1461_v2  ;;  %v2623_v31 = vld [vmem:[#allocation16 + $0x18] sm:$0xff] }
0x2181   :  { %1876 = vmatpush.bf16.msra.mxu3 %v2623_v31 }
0x2182   :  { %2790 = vtanh.f32 %v1471_v22 }
0x2188   :  { %v2791_v33 = vpop.eup %2790 }
0x2189   :  { %1474 = vrot.lane.b32.xlu0 %v2791_v33, %s3133_s26  ;;  %v2621_v33 = vld [vmem:[#allocation16 + $0x8] sm:$0xff] }
0x21fb   :  { %v1475_v21 = vpop.permute.xlu0 %1474 }
0x21fc   :  { %v1477_v39 = vmul.f32 %v1475_v21, %v1458_v38  ;;  %v2620_v21 = vld [vmem:[#allocation16] sm:$0xff] }
0x21fe   :  { %v1479_v27 = vpack.c.bf16 %v1477_v39, %v1477_v39 }
0x2200   :  { %1481 = vrot.lane.b32.xlu1 %v1479_v27, %s3143_s3  ;;  %v1596_v27 = vld [vmem:[#allocation4 + $0x8] sm:$0x3] }
0x2272   :  { %v1482_v41 = vpop.permute.xlu1 %1481 }
0x2273   :  { %2538 = vmatmul.msk.bf16.vlgmr.msrb.gmra.mxu1 %vm233_vm5, %v1482_v41 }
0x22f0   :  { %v1495_v45 = vpop.f32.mrf.mxu1 }
0x22f1   :  { %v1499_v46 = vadd.f32 %v1495_v45, %v1478_v42 }
0x22f3   :  { %2792 = vtanh.f32 %v1499_v46  ;;  %v2539_v50 = vmul.f32 -1.442695, %v1499_v46 }
0x22f5   :  { %2794 = vpow2.f32 %v2539_v50 }
0x22f8   :  { %v1497_v48 = vpop.f32.mrf.mxu1 }
0x22f9   :  { %v2793_v49 = vpop.eup %2792  ;;  %v2646_v48 = vld [vmem:[%s3699_s12] ss:$0 sm:$0xff] }
0x22fa   :  { %1522 = vrot.lane.b32.xlu2 %v2793_v49, %s3133_s26 }
0x22fb   :  { %v2795_v51 = vpop.eup %2794 }
0x22fc   :  { %v1503_v28 = vadd.f32 1.0, %v2795_v51 }
0x22fe   :  { %2796 = vrcp.f32 %v1503_v28  ;;  %v1515_v56 = vand.u32 2147483648, %v1503_v28  ;;  %vm1509_vm3 = vweird.f32 %v1503_v28  ;;  %v1513_v57 = vand.u32 2147483647, %v1503_v28 }
0x2300   :  { %v1516_v60 = vor.u32 1.1754944e-38, %v1515_v56  ;;  %vm1514_vm6 = vcmp.eq.f32.partialorder %v1513_v57, 8.507059e+37 }
0x2304   :  { %v2797_v30 = vpop.eup %2796 }
0x2305   :  { %v1505_v53 = vmul.f32 %v2797_v30, %v1503_v28  ;;  %vm1510_vm2 = vweird.f32 %v2797_v30 }
0x2306   :  { %vm1511_vm4 = vmor %vm1509_vm3, %vm1510_vm2 }
0x2307   :  { %v1506_v37 = vsub.f32 1.0, %v1505_v53  ;;  %v1655_v53 = vld [vmem:[#allocation4 + $0xa] sm:$0x3] }
0x2309   :  { %v1507_v54 = vmul.f32 %v2797_v30, %v1506_v37 }
0x230b   :  { %v1508_v55 = vadd.f32 %v2797_v30, %v1507_v54 }
0x230d   :  { %v1512_v59 = vsel %vm1511_vm4, %v2797_v30, %v1508_v55  ;;  %v3560_v30 = vld [vmem:[#allocation4 + $0xc] sm:$0x3] }
0x230e   :  { %v1517_v62 = vsel %vm1514_vm6, %v1516_v60, %v1512_v59 }
0x230f   :  { %v1520_v0 = vmul.f32 %v1517_v62, %v1471_v22  ;;  %v2622_v22 = vld [vmem:[#allocation16 + $0x10] sm:$0xff] }
0x2310   :  { %1877 = vmatpush.bf16.msra.mxu3 %v2622_v22 }
0x2314   :  { %1878 = vmatpush.bf16.msra.mxu3 %v2621_v33 }
0x2318   :  { %1879 = vmatpush.bf16.msra.mxu3 %v2620_v21 }
0x2354   :  { %v1523_v61 = vpop.permute.xlu2 %1522 }
0x2355   :  { %v1525_v23 = vmul.f32 %v1523_v61, %v1517_v62 }
0x2357   :  { %1527 = vrot.lane.b32.xlu0 %v1525_v23, %s3143_s3 }
0x23c9   :  { %v1528_v1 = vpop.permute.xlu0 %1527 }
0x23ca   :  { %v1530_v3 = vadd.f32 %v1528_v1, %v1520_v0 }
0x23cc   :  { %2798 = vtanh.f32 %v1530_v3 }
0x23d2   :  { %v2799_v5 = vpop.eup %2798 }
0x23d3   :  { %1533 = vrot.lane.b32.xlu1 %v2799_v5, %s3133_s26 }
0x2445   :  { %v1534_v6 = vpop.permute.xlu1 %1533 }
0x2446   :  { %v1536_v8 = vmul.f32 %v1534_v6, %v1517_v62 }
0x2448   :  { %v1538_v9 = vpack.c.bf16 %v1536_v8, %v1536_v8 }
0x244a   :  { %1540 = vrot.lane.b32.xlu2 %v1538_v9, %s3143_s3 }
0x24a4   :  { %v1541_v63 = vpop.permute.xlu2 %1540 }
0x24a5   :  { %2540 = vmatmul.msk.bf16.vlgmr.msrb.gmra.mxu2 %vm233_vm5, %v1541_v63 }
0x2528   :  { %v1554_v26 = vpop.f32.mrf.mxu2 }
0x2529   :  { %v1558_v11 = vadd.f32 %v1554_v26, %v1537_v10 }
0x252b   :  { %2800 = vtanh.f32 %v1558_v11  ;;  %v2541_v15 = vmul.f32 -1.442695, %v1558_v11 }
0x252d   :  { %2802 = vpow2.f32 %v2541_v15  ;;  %v3573_v15 = vld [vmem:[#allocation17] sm:$0xff] }
0x2530   :  { %v1556_v12 = vpop.f32.mrf.mxu2 }
0x2531   :  { %v2801_v14 = vpop.eup %2800 }
0x2532   :  { %1581 = vrot.lane.b32.xlu0 %v2801_v14, %s3133_s26  ;;  %v3570_v14 = vld [vmem:[#allocation17 + $0x8] sm:$0xff] }
0x2533   :  { %v2803_v16 = vpop.eup %2802  ;;  %1907 = vmatpush.bf16.msrb.mxu0 %v3570_v14  ;;  %1966 = vmatpush.bf16.msrb.mxu1 %v3570_v14 }
0x2534   :  { %v1562_v35 = vadd.f32 1.0, %v2803_v16  ;;  %2025 = vmatpush.bf16.msrb.mxu2 %v3570_v14 }
0x2536   :  { %2804 = vrcp.f32 %v1562_v35  ;;  %v1574_v40 = vand.u32 2147483648, %v1562_v35  ;;  %vm1568_vm0 = vweird.f32 %v1562_v35  ;;  %v1572_v13 = vand.u32 2147483647, %v1562_v35 }
0x2537   :  { %1908 = vmatpush.bf16.msrb.mxu0 %v3573_v15  ;;  %1967 = vmatpush.bf16.msrb.mxu1 %v3573_v15 }
0x2538   :  { %v1575_v19 = vor.u32 1.1754944e-38, %v1574_v40  ;;  %vm1573_vm10 = vcmp.eq.f32.partialorder %v1572_v13, 8.507059e+37  ;;  %2026 = vmatpush.bf16.msrb.mxu2 %v3573_v15 }
0x253c   :  { %v2805_v58 = vpop.eup %2804 }
0x253d   :  { %v1564_v17 = vmul.f32 %v2805_v58, %v1562_v35  ;;  %vm1569_vm7 = vweird.f32 %v2805_v58 }
0x253e   :  { %vm1570_vm9 = vmor %vm1568_vm0, %vm1569_vm7 }
0x253f   :  { %v1565_v7 = vsub.f32 1.0, %v1564_v17 }
0x2541   :  { %v1566_v18 = vmul.f32 %v2805_v58, %v1565_v7 }
0x2543   :  { %v1567_v36 = vadd.f32 %v2805_v58, %v1566_v18 }
0x2545   :  { %v1571_v52 = vsel %vm1570_vm9, %v2805_v58, %v1567_v36 }
0x2546   :  { %v1576_v32 = vsel %vm1573_vm10, %v1575_v19, %v1571_v52 }
0x2547   :  { %v1579_v24 = vmul.f32 %v1576_v32, %v1530_v3 }
0x25a4   :  { %v1582_v29 = vpop.permute.xlu0 %1581 }
0x25a5   :  { %v1584_v20 = vmul.f32 %v1582_v29, %v1576_v32 }
0x25a7   :  { %1586 = vrot.lane.b32.xlu1 %v1584_v20, %s3143_s3 }
0x2619   :  { %v1587_v25 = vpop.permute.xlu1 %1586 }
0x261a   :  { %v1589_v34 = vadd.f32 %v1587_v25, %v1579_v24 }
0x261c   :  { %2806 = vtanh.f32 %v1589_v34 }
0x2622   :  { %v2807_v47 = vpop.eup %2806 }
0x2623   :  { %1592 = vrot.lane.b32.xlu2 %v2807_v47, %s3133_s26 }
0x267d   :  { %v1593_v38 = vpop.permute.xlu2 %1592 }
0x267e   :  { %v1595_v43 = vmul.f32 %v1593_v38, %v1576_v32 }
0x2680   :  { %v1597_v2 = vpack.c.bf16 %v1595_v43, %v1595_v43 }
0x2682   :  { %1599 = vrot.lane.b32.xlu0 %v1597_v2, %s3143_s3 }
0x26f4   :  { %v1600_v39 = vpop.permute.xlu0 %1599 }
0x26f5   :  { %2542 = vmatmul.msk.bf16.vlgmr.msrb.gmra.mxu3 %vm233_vm5, %v1600_v39 }
0x26f6   :  { %2084 = vmatpush.bf16.msrb.mxu3 %v3570_v14 }
0x26fa   :  { %2085 = vmatpush.bf16.msrb.mxu3 %v3573_v15 }
0x2705   :  { %2566 = vmatmul.msk.bf16.vlgmr.msra.gmra.mxu3 %vm1335_vm8, %v3527_v44  ;;  %v3562_v44 = vld [vmem:[#allocation4 + $0xe] sm:$0x3] }
0x2706   :  { %2320 = vmatpush.bf16.msra.mxu3 %v3570_v14 }
0x270a   :  { %2321 = vmatpush.bf16.msra.mxu3 %v3573_v15 }
0x2778   :  { %v1613_v41 = vpop.f32.mrf.mxu3 }
0x2779   :  { %v1617_v42 = vadd.f32 %v1613_v41, %v1596_v27 }
0x277b   :  { %2808 = vtanh.f32 %v1617_v42  ;;  %v2543_v37 = vmul.f32 -1.442695, %v1617_v42 }
0x277d   :  { %2810 = vpow2.f32 %v2543_v37 }
0x2780   :  { %v1615_v45 = vpop.f32.mrf.mxu3 }
0x2781   :  { %v2809_v46 = vpop.eup %2808 }
0x2782   :  { %1640 = vrot.lane.b32.xlu1 %v2809_v46, %s3133_s26 }
0x2783   :  { %v2811_v54 = vpop.eup %2810 }
0x2784   :  { %v1621_v55 = vadd.f32 1.0, %v2811_v54 }
0x2786   :  { %2812 = vrcp.f32 %v1621_v55  ;;  %v1633_v62 = vand.u32 2147483648, %v1621_v55  ;;  %vm1627_vm12 = vweird.f32 %v1621_v55  ;;  %v1631_v23 = vand.u32 2147483647, %v1621_v55 }
0x2788   :  { %v1881_v49 = vpop.f32.mrf.mxu3  ;;  %v1634_v1 = vor.u32 1.1754944e-38, %v1633_v62  ;;  %vm1632_vm14 = vcmp.eq.f32.partialorder %v1631_v23, 8.507059e+37 }
0x2789   :  { %v1882_v50 = vadd.f32 %v2646_v48, %v1881_v49 }
0x278b   :  { %1886 = vst [vmem:[#allocation4] sm:$0xff] %v1882_v50 }
0x278c   :  { %v2813_v56 = vpop.eup %2812 }
0x278d   :  { %v1623_v57 = vmul.f32 %v2813_v56, %v1621_v55  ;;  %vm1628_vm11 = vweird.f32 %v2813_v56 }
0x278e   :  { %vm1629_vm13 = vmor %vm1627_vm12, %vm1628_vm11 }
0x278f   :  { %v1624_v59 = vsub.f32 1.0, %v1623_v57 }
0x2790   :  { %v1883_v51 = vpop.f32.mrf.mxu3 }
0x2791   :  { %v1884_v28 = vadd.f32 %v2646_v48, %v1883_v51  ;;  %v1625_v60 = vmul.f32 %v2813_v56, %v1624_v59 }
0x2793   :  { %1887 = vst [vmem:[#allocation4 + $0x8] sm:$0xff] %v1884_v28  ;;  %v1626_v61 = vadd.f32 %v2813_v56, %v1625_v60 }
0x2795   :  { %v1630_v0 = vsel %vm1629_vm13, %v2813_v56, %v1626_v61 }
0x2796   :  { %v1635_v5 = vsel %vm1632_vm14, %v1634_v1, %v1630_v0 }
0x2797   :  { %v1638_v8 = vmul.f32 %v1635_v5, %v1589_v34 }
0x279a   :  { %v1888_v18 = vld [vmem:[#allocation4 + $0xe] sm:$0x3] }
0x27f4   :  { %v1641_v3 = vpop.permute.xlu1 %1640 }
0x27f5   :  { %v1643_v6 = vmul.f32 %v1641_v3, %v1635_v5 }
0x27f7   :  { %1645 = vrot.lane.b32.xlu2 %v1643_v6, %s3143_s3 }
0x2851   :  { %v1646_v9 = vpop.permute.xlu2 %1645 }
0x2852   :  { %v3565_v63 = vadd.f32 %v1646_v9, %v1638_v8 }
0x2854   :  { %2814 = vtanh.f32 %v3565_v63 }
0x285a   :  { %v2815_v10 = vpop.eup %2814 }
0x285b   :  { %1651 = vrot.lane.b32.xlu0 %v2815_v10, %s3133_s26 }
0x28cd   :  { %v1652_v26 = vpop.permute.xlu0 %1651 }
0x28ce   :  { %v1654_v11 = vmul.f32 %v1652_v26, %v1635_v5 }
0x28d0   :  { %v1656_v12 = vpack.c.bf16 %v1654_v11, %v1654_v11 }
0x28d2   :  { %1658 = vrot.lane.b32.xlu1 %v1656_v12, %s3143_s3 }
0x2944   :  { %v1659_v16 = vpop.permute.xlu1 %1658 }
0x2945   :  { %2544 = vmatmul.msk.bf16.vlgmr.msra.gmra.mxu0 %vm233_vm5, %v1659_v16  ;;  %v1952_v16 = vld [vmem:[#allocation4 + $0xc] sm:$0x3] }
0x2946   :  { %2143 = vmatpush.bf16.msra.mxu0 %v3570_v14 }
0x294a   :  { %2144 = vmatpush.bf16.msra.mxu0 %v3573_v15 }
0x2955   :  { %1909 = vmatmul.bf16.vlgmr.msrb.gmra.mxu0 %v3142_v4 }
0x29c2   :  { %v1672_v35 = vpop.f32.mrf.mxu0 }
0x29c3   :  { %v1676_v58 = vadd.f32 %v1672_v35, %v1655_v53 }
0x29c5   :  { %2816 = vtanh.f32 %v1676_v58  ;;  %v2545_v19 = vmul.f32 -1.442695, %v1676_v58 }
0x29ca   :  { %v1674_v17 = vpop.f32.mrf.mxu0 }
0x29cb   :  { %v2817_v7 = vpop.eup %2816 }
0x29cc   :  { %1699 = vrot.lane.b32.xlu2 %v2817_v7, %s3133_s26 }
0x29d2   :  { %v1910_v36 = vpop.f32.mrf.mxu0 }
0x29d3   :  { %v1914_v40 = vadd.f32 %v1910_v36, %v1888_v18 }
0x29d5   :  { %2818 = vtanh.f32 %v1914_v40  ;;  %v2575_v38 = vmul.f32 -1.442695, %v1914_v40 }
0x29d6   :  { %2820 = vpow2.f32 %v2545_v19 }
0x29da   :  { %v1912_v13 = vpop.f32.mrf.mxu0 }
0x29db   :  { %v2819_v52 = vpop.eup %2818 }
0x29dc   :  { %1937 = vrot.lane.b32.xlu0 %v2819_v52, %s3133_s26  ;;  %v2821_v29 = vpop.eup %2820 }
0x29dd   :  { %v1680_v32 = vadd.f32 1.0, %v2821_v29 }
0x29df   :  { %2822 = vrcp.f32 %v1680_v32  ;;  %v1692_v47 = vand.u32 2147483648, %v1680_v32  ;;  %vm1686_vm1 = vweird.f32 %v1680_v32  ;;  %v1690_v43 = vand.u32 2147483647, %v1680_v32 }
0x29e0   :  { %2824 = vpow2.f32 %v2575_v38 }
0x29e1   :  { %v1693_v31 = vor.u32 1.1754944e-38, %v1692_v47  ;;  %vm1691_vm3 = vcmp.eq.f32.partialorder %v1690_v43, 8.507059e+37 }
0x29e5   :  { %v2823_v4 = vpop.eup %2822 }
0x29e6   :  { %v1682_v20 = vmul.f32 %v2823_v4, %v1680_v32  ;;  %vm1687_vm15 = vweird.f32 %v2823_v4  ;;  %v2825_v39 = vpop.eup %2824 }
0x29e7   :  { %vm1688_vm2 = vmor %vm1686_vm1, %vm1687_vm15  ;;  %v1918_v27 = vadd.f32 1.0, %v2825_v39 }
0x29e8   :  { %v1683_v24 = vsub.f32 1.0, %v1682_v20 }
0x29e9   :  { %2826 = vrcp.f32 %v1918_v27  ;;  %v1930_v49 = vand.u32 2147483648, %v1918_v27  ;;  %vm1924_vm6 = vweird.f32 %v1918_v27  ;;  %v1928_v50 = vand.u32 2147483647, %v1918_v27 }
0x29ea   :  { %v1684_v25 = vmul.f32 %v2823_v4, %v1683_v24 }
0x29eb   :  { %v1931_v28 = vor.u32 1.1754944e-38, %v1930_v49  ;;  %vm1929_vm0 = vcmp.eq.f32.partialorder %v1928_v50, 8.507059e+37 }
0x29ec   :  { %v1685_v34 = vadd.f32 %v2823_v4, %v1684_v25 }
0x29ee   :  { %v1689_v2 = vsel %vm1688_vm2, %v2823_v4, %v1685_v34 }
0x29ef   :  { %v1694_v33 = vsel %vm1691_vm3, %v1693_v31, %v1689_v2  ;;  %v2827_v41 = vpop.eup %2826 }
0x29f0   :  { %v1920_v42 = vmul.f32 %v2827_v41, %v1918_v27  ;;  %vm1925_vm4 = vweird.f32 %v2827_v41  ;;  %v1697_v55 = vmul.f32 %v1694_v33, %v3565_v63 }
0x29f1   :  { %vm1926_vm7 = vmor %vm1924_vm6, %vm1925_vm4 }
0x29f2   :  { %v1921_v45 = vsub.f32 1.0, %v1920_v42 }
0x29f4   :  { %v1922_v46 = vmul.f32 %v2827_v41, %v1921_v45 }
0x29f6   :  { %v1923_v48 = vadd.f32 %v2827_v41, %v1922_v46 }
0x29f8   :  { %v1927_v51 = vsel %vm1926_vm7, %v2827_v41, %v1923_v48 }
0x29f9   :  { %v1932_v37 = vsel %vm1929_vm0, %v1931_v28, %v1927_v51 }
0x29fa   :  { %v1935_v60 = vmul.f32 0.0, %v1932_v37 }
0x2a26   :  { %v1700_v22 = vpop.permute.xlu2 %1699 }
0x2a27   :  { %v1702_v21 = vmul.f32 %v1700_v22, %v1694_v33 }
0x2a29   :  { %1704 = vrot.lane.b32.xlu1 %v1702_v21, %s3143_s3 }
0x2a4e   :  { %v1938_v53 = vpop.permute.xlu0 %1937 }
0x2a4f   :  { %v1940_v54 = vmul.f32 %v1938_v53, %v1932_v37 }
0x2a51   :  { %1942 = vrot.lane.b32.xlu2 %v1940_v54, %s3143_s3 }
0x2a9b   :  { %v1705_v56 = vpop.permute.xlu1 %1704 }
0x2a9c   :  { %v3593_v57 = vadd.f32 %v1705_v56, %v1697_v55 }
0x2a9e   :  { %2828 = vtanh.f32 %v3593_v57 }
0x2aa4   :  { %v2829_v59 = vpop.eup %2828 }
0x2aa5   :  { %1710 = vrot.lane.b32.xlu0 %v2829_v59, %s3133_s26 }
0x2aab   :  { %v1943_v61 = vpop.permute.xlu2 %1942 }
0x2aac   :  { %v3597_v62 = vadd.f32 %v1943_v61, %v1935_v60 }
0x2aae   :  { %2830 = vtanh.f32 %v3597_v62 }
0x2ab4   :  { %v2831_v23 = vpop.eup %2830 }
0x2ab5   :  { %1948 = vrot.lane.b32.xlu1 %v2831_v23, %s3133_s26 }
0x2b17   :  { %v1711_v0 = vpop.permute.xlu0 %1710 }
0x2b18   :  { %v1713_v1 = vmul.f32 %v1711_v0, %v1694_v33 }
0x2b1a   :  { %v1715_v3 = vpack.c.bf16 %v1713_v1, %v1713_v1 }
0x2b1c   :  { %1717 = vrot.lane.b32.xlu2 %v1715_v3, %s3143_s3 }
0x2b27   :  { %v1949_v5 = vpop.permute.xlu1 %1948 }
0x2b28   :  { %v1951_v6 = vmul.f32 %v1949_v5, %v1932_v37 }
0x2b2a   :  { %v1953_v8 = vpack.c.bf16 %v1951_v6, %v1951_v6  ;;  %v2011_v6 = vld [vmem:[#allocation4 + $0xa] sm:$0x3] }
0x2b2c   :  { %1955 = vrot.lane.b32.xlu0 %v1953_v8, %s3143_s3 }
0x2b76   :  { %v1718_v9 = vpop.permute.xlu2 %1717 }
0x2b77   :  { %2546 = vmatmul.msk.bf16.vlgmr.msra.gmra.mxu1 %vm233_vm5, %v1718_v9 }
0x2b78   :  { %2202 = vmatpush.bf16.msra.mxu1 %v3570_v14 }
0x2b7c   :  { %2203 = vmatpush.bf16.msra.mxu1 %v3573_v15 }
0x2b9e   :  { %v1956_v63 = vpop.permute.xlu0 %1955 }
0x2b9f   :  { %2576 = vmatmul.msk.bf16.vlgmr.msrb.gmra.mxu1 %vm233_vm5, %v1956_v63 }
0x2bf4   :  { %v1731_v10 = vpop.f32.mrf.mxu1 }
0x2bf5   :  { %v1735_v26 = vadd.f32 %v1731_v10, %v3560_v30 }
0x2bf7   :  { %2832 = vtanh.f32 %v1735_v26  ;;  %v2547_v18 = vmul.f32 -1.442695, %v1735_v26 }
0x2bfc   :  { %v1733_v11 = vpop.f32.mrf.mxu1 }
0x2bfd   :  { %v2833_v12 = vpop.eup %2832 }
0x2bfe   :  { %1758 = vrot.lane.b32.xlu1 %v2833_v12, %s3133_s26 }
0x2c1c   :  { %v1969_v35 = vpop.f32.mrf.mxu1 }
0x2c1d   :  { %v1973_v58 = vadd.f32 %v1969_v35, %v1952_v16 }
0x2c1f   :  { %2834 = vtanh.f32 %v1973_v58  ;;  %v2577_v13 = vmul.f32 -1.442695, %v1973_v58 }
0x2c20   :  { %2836 = vpow2.f32 %v2547_v18 }
0x2c24   :  { %v1971_v17 = vpop.f32.mrf.mxu1 }
0x2c25   :  { %v2835_v7 = vpop.eup %2834 }
0x2c26   :  { %1996 = vrot.lane.b32.xlu2 %v2835_v7, %s3133_s26  ;;  %v2837_v36 = vpop.eup %2836 }
0x2c27   :  { %v1739_v40 = vadd.f32 1.0, %v2837_v36 }
0x2c29   :  { %2838 = vrcp.f32 %v1739_v40  ;;  %v1751_v25 = vand.u32 2147483648, %v1739_v40  ;;  %vm1745_vm10 = vweird.f32 %v1739_v40  ;;  %v1749_v34 = vand.u32 2147483647, %v1739_v40 }
0x2c2a   :  { %2840 = vpow2.f32 %v2577_v13 }
0x2c2b   :  { %v1752_v43 = vor.u32 1.1754944e-38, %v1751_v25  ;;  %vm1750_vm12 = vcmp.eq.f32.partialorder %v1749_v34, 8.507059e+37  ;;  %v2070_v34 = vld [vmem:[#allocation4 + $0x8] sm:$0x3] }
0x2c2f   :  { %v2839_v30 = vpop.eup %2838 }
0x2c30   :  { %v2841_v52 = vpop.eup %2840  ;;  %v1741_v19 = vmul.f32 %v2839_v30, %v1739_v40  ;;  %vm1746_vm9 = vweird.f32 %v2839_v30 }
0x2c31   :  { %v1977_v29 = vadd.f32 1.0, %v2841_v52  ;;  %vm1747_vm11 = vmor %vm1745_vm10, %vm1746_vm9 }
0x2c32   :  { %v1742_v32 = vsub.f32 1.0, %v1741_v19 }
0x2c33   :  { %2842 = vrcp.f32 %v1977_v29  ;;  %v1989_v27 = vand.u32 2147483648, %v1977_v29  ;;  %vm1983_vm14 = vweird.f32 %v1977_v29  ;;  %v1987_v41 = vand.u32 2147483647, %v1977_v29 }
0x2c34   :  { %v1743_v4 = vmul.f32 %v2839_v30, %v1742_v32 }
0x2c35   :  { %v1990_v45 = vor.u32 1.1754944e-38, %v1989_v27  ;;  %vm1988_vm1 = vcmp.eq.f32.partialorder %v1987_v41, 8.507059e+37 }
0x2c36   :  { %v1744_v20 = vadd.f32 %v2839_v30, %v1743_v4 }
0x2c38   :  { %v1748_v47 = vsel %vm1747_vm11, %v2839_v30, %v1744_v20 }
0x2c39   :  { %v2843_v24 = vpop.eup %2842  ;;  %v1753_v2 = vsel %vm1750_vm12, %v1752_v43, %v1748_v47 }
0x2c3a   :  { %v1979_v38 = vmul.f32 %v2843_v24, %v1977_v29  ;;  %vm1984_vm13 = vweird.f32 %v2843_v24  ;;  %v1756_v50 = vmul.f32 %v1753_v2, %v3593_v57 }
0x2c3b   :  { %vm1985_vm15 = vmor %vm1983_vm14, %vm1984_vm13 }
0x2c3c   :  { %v1980_v33 = vsub.f32 1.0, %v1979_v38 }
0x2c3e   :  { %v1981_v21 = vmul.f32 %v2843_v24, %v1980_v33 }
0x2c40   :  { %v1982_v39 = vadd.f32 %v2843_v24, %v1981_v21 }
0x2c42   :  { %v1986_v42 = vsel %vm1985_vm15, %v2843_v24, %v1982_v39 }
0x2c43   :  { %v1991_v48 = vsel %vm1988_vm1, %v1990_v45, %v1986_v42 }
0x2c44   :  { %v1994_v37 = vmul.f32 %v1991_v48, %v3597_v62 }
0x2c70   :  { %v1759_v31 = vpop.permute.xlu1 %1758 }
0x2c71   :  { %v1761_v22 = vmul.f32 %v1759_v31, %v1753_v2 }
0x2c73   :  { %1763 = vrot.lane.b32.xlu0 %v1761_v22, %s3143_s3 }
0x2c80   :  { %v1997_v46 = vpop.permute.xlu2 %1996 }
0x2c81   :  { %v1999_v49 = vmul.f32 %v1997_v46, %v1991_v48 }
0x2c83   :  { %2001 = vrot.lane.b32.xlu1 %v1999_v49, %s3143_s3 }
0x2ce5   :  { %v1764_v51 = vpop.permute.xlu0 %1763 }
0x2ce6   :  { %v3613_v28 = vadd.f32 %v1764_v51, %v1756_v50 }
0x2ce8   :  { %2844 = vtanh.f32 %v3613_v28 }
0x2cee   :  { %v2845_v53 = vpop.eup %2844 }
0x2cef   :  { %1769 = vrot.lane.b32.xlu2 %v2845_v53, %s3133_s26 }
0x2cf5   :  { %v2002_v54 = vpop.permute.xlu1 %2001 }
0x2cf6   :  { %v2004_v55 = vadd.f32 %v2002_v54, %v1994_v37 }
0x2cf8   :  { %2846 = vtanh.f32 %v2004_v55 }
0x2cfe   :  { %v2847_v56 = vpop.eup %2846 }
0x2cff   :  { %2007 = vrot.lane.b32.xlu0 %v2847_v56, %s3133_s26 }
0x2d49   :  { %v1770_v59 = vpop.permute.xlu2 %1769 }
0x2d4a   :  { %v1772_v60 = vmul.f32 %v1770_v59, %v1753_v2 }
0x2d4c   :  { %v1774_v61 = vpack.c.bf16 %v1772_v60, %v1772_v60 }
0x2d4e   :  { %1776 = vrot.lane.b32.xlu1 %v1774_v61, %s3143_s3 }
0x2d71   :  { %v2008_v57 = vpop.permute.xlu0 %2007 }
0x2d72   :  { %v2010_v23 = vmul.f32 %v2008_v57, %v1991_v48 }
0x2d74   :  { %v2012_v0 = vpack.c.bf16 %v2010_v23, %v2010_v23  ;;  %v2129_v23 = vld [vmem:[#allocation4 + $0x6] sm:$0x3] }
0x2d76   :  { %2014 = vrot.lane.b32.xlu2 %v2012_v0, %s3143_s3 }
0x2dc0   :  { %v1777_v1 = vpop.permute.xlu1 %1776 }
0x2dc1   :  { %2548 = vmatmul.msk.bf16.vlgmr.msra.gmra.mxu2 %vm233_vm5, %v1777_v1 }
0x2dc2   :  { %2261 = vmatpush.bf16.msra.mxu2 %v3570_v14 }
0x2dc6   :  { %2262 = vmatpush.bf16.msra.mxu2 %v3573_v15 }
0x2dd0   :  { %v2015_v62 = vpop.permute.xlu2 %2014 }
0x2dd1   :  { %2578 = vmatmul.msk.bf16.vlgmr.msrb.gmra.mxu2 %vm233_vm5, %v2015_v62 }
0x2e44   :  { %v3625_v3 = vpop.f32.mrf.mxu2 }
0x2e4c   :  { %v1792_v5 = vpop.f32.mrf.mxu2 }
0x2e54   :  { %v2028_v8 = vpop.f32.mrf.mxu2 }
0x2e55   :  { %v2032_v9 = vadd.f32 %v2028_v8, %v2011_v6 }
0x2e57   :  { %2848 = vtanh.f32 %v2032_v9  ;;  %v2579_v26 = vmul.f32 -1.442695, %v2032_v9 }
0x2e59   :  { %2850 = vpow2.f32 %v2579_v26 }
0x2e5c   :  { %v2030_v63 = vpop.f32.mrf.mxu2 }
0x2e5d   :  { %v2849_v10 = vpop.eup %2848 }
0x2e5e   :  { %2055 = vrot.lane.b32.xlu0 %v2849_v10, %s3133_s26 }
0x2e5f   :  { %v2851_v11 = vpop.eup %2850 }
0x2e60   :  { %v2036_v14 = vadd.f32 1.0, %v2851_v11 }
0x2e62   :  { %2852 = vrcp.f32 %v2036_v14  ;;  %v2048_v17 = vand.u32 2147483648, %v2036_v14  ;;  %vm2042_vm3 = vweird.f32 %v2036_v14  ;;  %v2046_v7 = vand.u32 2147483647, %v2036_v14 }
0x2e64   :  { %v2049_v36 = vor.u32 1.1754944e-38, %v2048_v17  ;;  %vm2047_vm6 = vcmp.eq.f32.partialorder %v2046_v7, 8.507059e+37 }
0x2e68   :  { %v2853_v15 = vpop.eup %2852 }
0x2e69   :  { %v2038_v12 = vmul.f32 %v2853_v15, %v2036_v14  ;;  %vm2043_vm2 = vweird.f32 %v2853_v15 }
0x2e6a   :  { %vm2044_vm4 = vmor %vm2042_vm3, %vm2043_vm2 }
0x2e6b   :  { %v2039_v16 = vsub.f32 1.0, %v2038_v12 }
0x2e6d   :  { %v2040_v35 = vmul.f32 %v2853_v15, %v2039_v16 }
0x2e6f   :  { %v2041_v58 = vadd.f32 %v2853_v15, %v2040_v35 }
0x2e71   :  { %v2045_v18 = vsel %vm2044_vm4, %v2853_v15, %v2041_v58 }
0x2e72   :  { %v2050_v13 = vsel %vm2047_vm6, %v2049_v36, %v2045_v18 }
0x2e73   :  { %v2053_v52 = vmul.f32 %v2050_v13, %v2004_v55 }
0x2ed0   :  { %v2056_v40 = vpop.permute.xlu0 %2055 }
0x2ed1   :  { %v2058_v30 = vmul.f32 %v2056_v40, %v2050_v13 }
0x2ed3   :  { %2060 = vrot.lane.b32.xlu1 %v2058_v30, %s3143_s3 }
0x2f45   :  { %v2061_v19 = vpop.permute.xlu1 %2060 }
0x2f46   :  { %v2063_v29 = vadd.f32 %v2061_v19, %v2053_v52 }
0x2f48   :  { %2854 = vtanh.f32 %v2063_v29 }
0x2f4e   :  { %v2855_v32 = vpop.eup %2854 }
0x2f4f   :  { %2066 = vrot.lane.b32.xlu2 %v2855_v32, %s3133_s26  ;;  %v2188_v32 = vld [vmem:[#allocation4 + $0x4] sm:$0x3] }
0x2fa9   :  { %v2067_v4 = vpop.permute.xlu2 %2066 }
0x2faa   :  { %v2069_v20 = vmul.f32 %v2067_v4, %v2050_v13 }
0x2fac   :  { %v2071_v24 = vpack.c.bf16 %v2069_v20, %v2069_v20 }
0x2fae   :  { %2073 = vrot.lane.b32.xlu0 %v2071_v24, %s3143_s3 }
0x3020   :  { %v2074_v25 = vpop.permute.xlu0 %2073 }
0x3021   :  { %2580 = vmatmul.msk.bf16.vlgmr.msrb.gmra.mxu3 %vm233_vm5, %v2074_v25 }
0x30a4   :  { %v2087_v47 = vpop.f32.mrf.mxu3 }
0x30a5   :  { %v2091_v38 = vadd.f32 %v2087_v47, %v2070_v34 }
0x30a7   :  { %2856 = vtanh.f32 %v2091_v38  ;;  %v2581_v31 = vmul.f32 -1.442695, %v2091_v38 }
0x30a9   :  { %2858 = vpow2.f32 %v2581_v31 }
0x30ac   :  { %v2089_v43 = vpop.f32.mrf.mxu3 }
0x30ad   :  { %v2857_v2 = vpop.eup %2856 }
0x30ae   :  { %2114 = vrot.lane.b32.xlu1 %v2857_v2, %s3133_s26 }
0x30af   :  { %v2859_v22 = vpop.eup %2858 }
0x30b0   :  { %v2095_v33 = vadd.f32 1.0, %v2859_v22 }
0x30b2   :  { %2860 = vrcp.f32 %v2095_v33  ;;  %v2107_v45 = vand.u32 2147483648, %v2095_v33  ;;  %vm2101_vm0 = vweird.f32 %v2095_v33  ;;  %v2105_v46 = vand.u32 2147483647, %v2095_v33 }
0x30b4   :  { %v2108_v49 = vor.u32 1.1754944e-38, %v2107_v45  ;;  %vm2106_vm10 = vcmp.eq.f32.partialorder %v2105_v46, 8.507059e+37 }
0x30b8   :  { %v2861_v21 = vpop.eup %2860 }
0x30b9   :  { %v2097_v39 = vmul.f32 %v2861_v21, %v2095_v33  ;;  %vm2102_vm7 = vweird.f32 %v2861_v21 }
0x30ba   :  { %vm2103_vm9 = vmor %vm2101_vm0, %vm2102_vm7 }
0x30bb   :  { %v2098_v27 = vsub.f32 1.0, %v2097_v39 }
0x30bd   :  { %v2099_v41 = vmul.f32 %v2861_v21, %v2098_v27 }
0x30bf   :  { %v2100_v42 = vadd.f32 %v2861_v21, %v2099_v41 }
0x30c1   :  { %v2104_v48 = vsel %vm2103_vm9, %v2861_v21, %v2100_v42 }
0x30c2   :  { %v2109_v51 = vsel %vm2106_vm10, %v2108_v49, %v2104_v48 }
0x30c3   :  { %v2112_v37 = vmul.f32 %v2109_v51, %v2063_v29 }
0x3120   :  { %v2115_v50 = vpop.permute.xlu1 %2114 }
0x3121   :  { %v2117_v53 = vmul.f32 %v2115_v50, %v2109_v51 }
0x3123   :  { %2119 = vrot.lane.b32.xlu2 %v2117_v53, %s3143_s3 }
0x317d   :  { %v2120_v54 = vpop.permute.xlu2 %2119 }
0x317e   :  { %v2122_v55 = vadd.f32 %v2120_v54, %v2112_v37 }
0x3180   :  { %2862 = vtanh.f32 %v2122_v55 }
0x3186   :  { %v2863_v56 = vpop.eup %2862 }
0x3187   :  { %2125 = vrot.lane.b32.xlu0 %v2863_v56, %s3133_s26  ;;  %v2247_v56 = vld [vmem:[#allocation4 + $0x2] sm:$0x3] }
0x31f9   :  { %v2126_v59 = vpop.permute.xlu0 %2125 }
0x31fa   :  { %v2128_v60 = vmul.f32 %v2126_v59, %v2109_v51 }
0x31fc   :  { %v2130_v61 = vpack.c.bf16 %v2128_v60, %v2128_v60 }
0x31fe   :  { %2132 = vrot.lane.b32.xlu1 %v2130_v61, %s3143_s3 }
0x3270   :  { %v2133_v57 = vpop.permute.xlu1 %2132 }
0x3271   :  { %2582 = vmatmul.msk.bf16.vlgmr.msra.gmra.mxu0 %vm233_vm5, %v2133_v57 }
0x32ee   :  { %v2146_v0 = vpop.f32.mrf.mxu0 }
0x32ef   :  { %v2150_v1 = vadd.f32 %v2146_v0, %v2129_v23 }
0x32f1   :  { %2864 = vtanh.f32 %v2150_v1  ;;  %v2583_v6 = vmul.f32 -1.442695, %v2150_v1 }
0x32f3   :  { %2866 = vpow2.f32 %v2583_v6 }
0x32f6   :  { %v2148_v62 = vpop.f32.mrf.mxu0 }
0x32f7   :  { %v2865_v5 = vpop.eup %2864 }
0x32f8   :  { %2173 = vrot.lane.b32.xlu2 %v2865_v5, %s3133_s26 }
0x32f9   :  { %v2867_v8 = vpop.eup %2866 }
0x32fa   :  { %v2154_v9 = vadd.f32 1.0, %v2867_v8 }
0x32fc   :  { %2868 = vrcp.f32 %v2154_v9  ;;  %v2166_v15 = vand.u32 2147483648, %v2154_v9  ;;  %vm2160_vm12 = vweird.f32 %v2154_v9  ;;  %v2164_v12 = vand.u32 2147483647, %v2154_v9 }
0x32fe   :  { %v2167_v35 = vor.u32 1.1754944e-38, %v2166_v15  ;;  %vm2165_vm14 = vcmp.eq.f32.partialorder %v2164_v12, 8.507059e+37 }
0x3302   :  { %v2869_v63 = vpop.eup %2868 }
0x3303   :  { %v2156_v10 = vmul.f32 %v2869_v63, %v2154_v9  ;;  %vm2161_vm11 = vweird.f32 %v2869_v63 }
0x3304   :  { %vm2162_vm13 = vmor %vm2160_vm12, %vm2161_vm11 }
0x3305   :  { %v2157_v26 = vsub.f32 1.0, %v2156_v10 }
0x3307   :  { %v2158_v11 = vmul.f32 %v2869_v63, %v2157_v26 }
0x3309   :  { %v2159_v14 = vadd.f32 %v2869_v63, %v2158_v11 }
0x330b   :  { %v2163_v16 = vsel %vm2162_vm13, %v2869_v63, %v2159_v14  ;;  %v1794_v14 = vadd.f32 %v3625_v3, %v3562_v44 }
0x330c   :  { %v2168_v17 = vsel %vm2165_vm14, %v2167_v35, %v2163_v16 }
0x330d   :  { %v2171_v18 = vmul.f32 %v2168_v17, %v2122_v55 }
0x3352   :  { %v2174_v58 = vpop.permute.xlu2 %2173 }
0x3353   :  { %v2176_v7 = vmul.f32 %v2174_v58, %v2168_v17 }
0x3355   :  { %2178 = vrot.lane.b32.xlu0 %v2176_v7, %s3143_s3 }
0x33c7   :  { %v2179_v36 = vpop.permute.xlu0 %2178 }
0x33c8   :  { %v2181_v40 = vadd.f32 %v2179_v36, %v2171_v18  ;;  %v2549_v36 = vmul.f32 -1.442695, %v1794_v14 }
0x33ca   :  { %2870 = vtanh.f32 %v2181_v40 }
0x33d0   :  { %v2871_v13 = vpop.eup %2870 }
0x33d1   :  { %2184 = vrot.lane.b32.xlu1 %v2871_v13, %s3133_s26 }
0x3443   :  { %v2185_v30 = vpop.permute.xlu1 %2184 }
0x3444   :  { %v2187_v52 = vmul.f32 %v2185_v30, %v2168_v17 }
0x3446   :  { %v2189_v19 = vpack.c.bf16 %v2187_v52, %v2187_v52 }
0x3448   :  { %2191 = vrot.lane.b32.xlu2 %v2189_v19, %s3143_s3 }
0x34a2   :  { %v2192_v29 = vpop.permute.xlu2 %2191 }
0x34a3   :  { %2584 = vmatmul.msk.bf16.vlgmr.msra.gmra.mxu1 %vm233_vm5, %v2192_v29 }
0x3520   :  { %v2205_v4 = vpop.f32.mrf.mxu1 }
0x3521   :  { %v2209_v20 = vadd.f32 %v2205_v4, %v2188_v32 }
0x3523   :  { %2872 = vtanh.f32 %v2209_v20  ;;  %v2585_v34 = vmul.f32 -1.442695, %v2209_v20 }
0x3525   :  { %2874 = vpow2.f32 %v2585_v34 }
0x3528   :  { %v2207_v24 = vpop.f32.mrf.mxu1 }
0x3529   :  { %v2873_v25 = vpop.eup %2872 }
0x352a   :  { %2232 = vrot.lane.b32.xlu0 %v2873_v25, %s3133_s26 }
0x352b   :  { %v2875_v47 = vpop.eup %2874 }
0x352c   :  { %v2213_v38 = vadd.f32 1.0, %v2875_v47 }
0x352e   :  { %2876 = vrcp.f32 %v2213_v38  ;;  %v2225_v21 = vand.u32 2147483648, %v2213_v38  ;;  %vm2219_vm1 = vweird.f32 %v2213_v38  ;;  %v2223_v39 = vand.u32 2147483647, %v2213_v38 }
0x3530   :  { %v2226_v41 = vor.u32 1.1754944e-38, %v2225_v21  ;;  %vm2224_vm3 = vcmp.eq.f32.partialorder %v2223_v39, 8.507059e+37 }
0x3534   :  { %v2877_v43 = vpop.eup %2876 }
0x3535   :  { %v2215_v2 = vmul.f32 %v2877_v43, %v2213_v38  ;;  %vm2220_vm15 = vweird.f32 %v2877_v43 }
0x3536   :  { %vm2221_vm2 = vmor %vm2219_vm1, %vm2220_vm15 }
0x3537   :  { %v2216_v31 = vsub.f32 1.0, %v2215_v2 }
0x3539   :  { %v2217_v22 = vmul.f32 %v2877_v43, %v2216_v31  ;;  %v2306_v31 = vld [vmem:[#allocation4] sm:$0x3] }
0x353b   :  { %v2218_v33 = vadd.f32 %v2877_v43, %v2217_v22 }
0x353d   :  { %v2222_v27 = vsel %vm2221_vm2, %v2877_v43, %v2218_v33  ;;  %vm2427_vm2 = vcmask 17408  }
0x353e   :  { %v2227_v45 = vsel %vm2224_vm3, %v2226_v41, %v2222_v27 }
0x353f   :  { %v2230_v48 = vmul.f32 %v2227_v45, %v2181_v40 }
0x359c   :  { %v2233_v42 = vpop.permute.xlu0 %2232 }
0x359d   :  { %v2235_v46 = vmul.f32 %v2233_v42, %v2227_v45 }
0x359f   :  { %2237 = vrot.lane.b32.xlu1 %v2235_v46, %s3143_s3 }
0x3611   :  { %v2238_v49 = vpop.permute.xlu1 %2237 }
0x3612   :  { %v2240_v50 = vadd.f32 %v2238_v49, %v2230_v48 }
0x3614   :  { %2878 = vtanh.f32 %v2240_v50 }
0x361a   :  { %v2879_v51 = vpop.eup %2878 }
0x361b   :  { %2243 = vrot.lane.b32.xlu2 %v2879_v51, %s3133_s26 }
0x3675   :  { %v2244_v53 = vpop.permute.xlu2 %2243 }
0x3676   :  { %v2246_v37 = vmul.f32 %v2244_v53, %v2227_v45 }
0x3678   :  { %v2248_v54 = vpack.c.bf16 %v2246_v37, %v2246_v37 }
0x367a   :  { %2250 = vrot.lane.b32.xlu0 %v2248_v54, %s3143_s3 }
0x36ec   :  { %v2251_v55 = vpop.permute.xlu0 %2250 }
0x36ed   :  { %2586 = vmatmul.msk.bf16.vlgmr.msra.gmra.mxu2 %vm233_vm5, %v2251_v55 }
0x3770   :  { %v2264_v59 = vpop.f32.mrf.mxu2 }
0x3771   :  { %v2268_v60 = vadd.f32 %v2264_v59, %v2247_v56 }
0x3773   :  { %2880 = vtanh.f32 %v2268_v60  ;;  %v2587_v23 = vmul.f32 -1.442695, %v2268_v60 }
0x3775   :  { %2882 = vpow2.f32 %v2587_v23 }
0x3778   :  { %v2266_v61 = vpop.f32.mrf.mxu2 }
0x3779   :  { %v2881_v57 = vpop.eup %2880 }
0x377a   :  { %2291 = vrot.lane.b32.xlu1 %v2881_v57, %s3133_s26 }
0x377b   :  { %v2883_v0 = vpop.eup %2882 }
0x377c   :  { %v2272_v1 = vadd.f32 1.0, %v2883_v0 }
0x377e   :  { %2884 = vrcp.f32 %v2272_v1  ;;  %v2284_v63 = vand.u32 2147483648, %v2272_v1  ;;  %vm2278_vm6 = vweird.f32 %v2272_v1  ;;  %v2282_v10 = vand.u32 2147483647, %v2272_v1 }
0x377f   :  { %2886 = vtanh.f32 %v1794_v14 }
0x3780   :  { %v2285_v11 = vor.u32 1.1754944e-38, %v2284_v63  ;;  %vm2283_vm0 = vcmp.eq.f32.partialorder %v2282_v10, 8.507059e+37  ;;  %v2627_v63 = vld [vmem:[%s3700_s13 + $0x8] sm:$0xff]  ;;  %v2626_v10 = vld [vmem:[%s3700_s13] sm:$0xff] }
0x3784   :  { %v2885_v62 = vpop.eup %2884 }
0x3785   :  { %v2274_v5 = vmul.f32 %v2885_v62, %v2272_v1  ;;  %vm2279_vm4 = vweird.f32 %v2885_v62  ;;  %v2887_v35 = vpop.eup %2886 }
0x3786   :  { %vm2280_vm7 = vmor %vm2278_vm6, %vm2279_vm4 }
0x3787   :  { %v2275_v6 = vsub.f32 1.0, %v2274_v5 }
0x3789   :  { %v2276_v8 = vmul.f32 %v2885_v62, %v2275_v6 }
0x378b   :  { %v2277_v9 = vadd.f32 %v2885_v62, %v2276_v8  ;;  %v2629_v8 = vld [vmem:[%s3700_s13 + $0x18] sm:$0xff] }
0x378c   :  { %2418 = vmatpush.bf16.msrb.mxu0 %v2629_v8 }
0x378d   :  { %v2281_v26 = vsel %vm2280_vm7, %v2885_v62, %v2277_v9  ;;  %v2628_v9 = vld [vmem:[%s3700_s13 + $0x10] sm:$0xff] }
0x378e   :  { %v2286_v12 = vsel %vm2283_vm0, %v2285_v11, %v2281_v26 }
0x378f   :  { %v2289_v58 = vmul.f32 %v2286_v12, %v2240_v50 }
0x3790   :  { %2419 = vmatpush.bf16.msrb.mxu0 %v2628_v9 }
0x3794   :  { %2420 = vmatpush.bf16.msrb.mxu0 %v2627_v63 }
0x3798   :  { %2421 = vmatpush.bf16.msrb.mxu0 %v2626_v10 }
0x37ec   :  { %v2292_v15 = vpop.permute.xlu1 %2291 }
0x37ed   :  { %v2294_v16 = vmul.f32 %v2292_v15, %v2286_v12 }
0x37ef   :  { %2296 = vrot.lane.b32.xlu2 %v2294_v16, %s3143_s3 }
0x37f7   :  { %1817 = vrot.lane.b32.xlu2 %v2887_v35, %s3133_s26  ;;  %v2647_v35 = vld [vmem:[%s3701_s14] ss:$0 sm:$0xff] }
0x3849   :  { %v2297_v17 = vpop.permute.xlu2 %2296 }
0x384a   :  { %v3652_v7 = vadd.f32 %v2297_v17, %v2289_v58 }
0x384c   :  { %2888 = vtanh.f32 %v3652_v7 }
0x384d   :  { %2890 = vpow2.f32 %v2549_v36 }
0x3851   :  { %v1818_v47 = vpop.permute.xlu2 %1817 }
0x3852   :  { %v2889_v18 = vpop.eup %2888 }
0x3853   :  { %2302 = vrot.lane.b32.xlu0 %v2889_v18, %s3133_s26  ;;  %v2891_v44 = vpop.eup %2890 }
0x3854   :  { %v1798_v3 = vadd.f32 1.0, %v2891_v44 }
0x3856   :  { %2892 = vrcp.f32 %v1798_v3  ;;  %v1810_v20 = vand.u32 2147483648, %v1798_v3  ;;  %vm1804_vm10 = vweird.f32 %v1798_v3  ;;  %v1808_v24 = vand.u32 2147483647, %v1798_v3 }
0x3858   :  { %v1811_v34 = vor.u32 1.1754944e-38, %v1810_v20  ;;  %vm1809_vm12 = vcmp.eq.f32.partialorder %v1808_v24, 8.507059e+37 }
0x385c   :  { %v2893_v40 = vpop.eup %2892 }
0x385d   :  { %v1800_v13 = vmul.f32 %v2893_v40, %v1798_v3  ;;  %vm1805_vm9 = vweird.f32 %v2893_v40 }
0x385e   :  { %vm1806_vm11 = vmor %vm1804_vm10, %vm1805_vm9 }
0x385f   :  { %v1801_v30 = vsub.f32 1.0, %v1800_v13 }
0x3861   :  { %v1802_v52 = vmul.f32 %v2893_v40, %v1801_v30 }
0x3863   :  { %v1803_v32 = vadd.f32 %v2893_v40, %v1802_v52 }
0x3865   :  { %v1807_v25 = vsel %vm1806_vm11, %v2893_v40, %v1803_v32 }
0x3866   :  { %v1812_v38 = vsel %vm1809_vm12, %v1811_v34, %v1807_v25 }
0x3867   :  { %v1820_v43 = vmul.f32 %v1818_v47, %v1812_v38  ;;  %v1815_v39 = vmul.f32 %v1812_v38, %v3613_v28 }
0x38c5   :  { %v2303_v19 = vpop.permute.xlu0 %2302 }
0x38c6   :  { %v2305_v29 = vmul.f32 %v2303_v19, %v2286_v12 }
0x38c8   :  { %v2307_v4 = vpack.c.bf16 %v2305_v29, %v2305_v29 }
0x38ca   :  { %2309 = vrot.lane.b32.xlu1 %v2307_v4, %s3143_s3 }
0x38d2   :  { %1822 = vrot.lane.b32.xlu1 %v1820_v43, %s3143_s3 }
0x393c   :  { %v2310_v2 = vpop.permute.xlu1 %2309 }
0x393d   :  { %2588 = vmatmul.msk.bf16.vlgmr.msra.gmra.mxu3 %vm233_vm5, %v2310_v2 }
0x3944   :  { %v1823_v21 = vpop.permute.xlu1 %1822 }
0x3945   :  { %v1825_v27 = vadd.f32 %v1823_v21, %v1815_v39 }
0x39c0   :  { %v2323_v22 = vpop.f32.mrf.mxu3 }
0x39c1   :  { %v2327_v33 = vadd.f32 %v2323_v22, %v2306_v31 }
0x39c3   :  { %2894 = vtanh.f32 %v2327_v33  ;;  %v2589_v46 = vmul.f32 -1.442695, %v2327_v33 }
0x39c4   :  { %2896 = vtanh.f32 %v1825_v27 }
0x39c5   :  { %2898 = vpow2.f32 %v2589_v46 }
0x39c8   :  { %v2325_v41 = vpop.f32.mrf.mxu3 }
0x39c9   :  { %v2895_v42 = vpop.eup %2894 }
0x39ca   :  { %2350 = vrot.lane.b32.xlu0 %v2895_v42, %s3133_s26  ;;  %v2897_v45 = vpop.eup %2896 }
0x39cb   :  { %v2899_v48 = vpop.eup %2898 }
0x39cc   :  { %v2331_v49 = vadd.f32 1.0, %v2899_v48 }
0x39ce   :  { %2900 = vrcp.f32 %v2331_v49  ;;  %v2343_v28 = vand.u32 2147483648, %v2331_v49  ;;  %vm2337_vm14 = vweird.f32 %v2331_v49  ;;  %v2341_v55 = vand.u32 2147483647, %v2331_v49 }
0x39d0   :  { %v2344_v59 = vor.u32 1.1754944e-38, %v2343_v28  ;;  %vm2342_vm1 = vcmp.eq.f32.partialorder %v2341_v55, 8.507059e+37 }
0x39d2   :  { %1828 = vrot.lane.b32.xlu0 %v2897_v45, %s3133_s26 }
0x39d4   :  { %v2901_v50 = vpop.eup %2900 }
0x39d5   :  { %v2333_v51 = vmul.f32 %v2901_v50, %v2331_v49  ;;  %vm2338_vm13 = vweird.f32 %v2901_v50 }
0x39d6   :  { %vm2339_vm15 = vmor %vm2337_vm14, %vm2338_vm13 }
0x39d7   :  { %v2334_v53 = vsub.f32 1.0, %v2333_v51 }
0x39d9   :  { %v2335_v37 = vmul.f32 %v2901_v50, %v2334_v53 }
0x39db   :  { %v2336_v54 = vadd.f32 %v2901_v50, %v2335_v37 }
0x39dd   :  { %v2340_v56 = vsel %vm2339_vm15, %v2901_v50, %v2336_v54 }
0x39de   :  { %v2345_v61 = vsel %vm2342_vm1, %v2344_v59, %v2340_v56 }
0x39df   :  { %v2348_v1 = vmul.f32 %v2345_v61, %v3652_v7 }
0x3a3c   :  { %v2351_v60 = vpop.permute.xlu0 %2350 }
0x3a3d   :  { %v2353_v57 = vmul.f32 %v2351_v60, %v2345_v61 }
0x3a3f   :  { %2355 = vrot.lane.b32.xlu2 %v2353_v57, %s3143_s3 }
0x3a44   :  { %v1829_v23 = vpop.permute.xlu0 %1828 }
0x3a45   :  { %v1831_v0 = vmul.f32 %v1829_v23, %v1812_v38 }
0x3a47   :  { %2366 = vrot.lane.b32.xlu2 %v1831_v0, %s3143_s3 }
0x3a99   :  { %v2356_v62 = vpop.permute.xlu2 %2355 }
0x3a9a   :  { %v2358_v5 = vadd.f32 %v2356_v62, %v2348_v1 }
0x3a9c   :  { %2902 = vtanh.f32 %v2358_v5 }
0x3aa1   :  { %v2367_v14 = vpop.permute.xlu2 %2366 }
0x3aa2   :  { %v2903_v6 = vpop.eup %2902 }
0x3aa3   :  { %2361 = vrot.lane.b32.xlu1 %v2903_v6, %s3133_s26 }
0x3b15   :  { %v2362_v26 = vpop.permute.xlu1 %2361 }
0x3b16   :  { %v2364_v11 = vmul.f32 %v2362_v26, %v2345_v61 }
0x3b18   :  { %2370 = vrot.lane.b32.xlu0 %v2364_v11, %s3133_s26 }
0x3b8a   :  { %v2371_v15 = vpop.permute.xlu0 %2370 }
0x3b8b   :  { %v2373_v12 = vsel %vm233_vm5, %v2367_v14, %v2371_v15 }
0x3b8c   :  { %v2374_v16 = vpack.c.bf16 %v2373_v12, %v2373_v12 }
0x3b8e   :  { %2606 = vmatmul.msk.bf16.vlgmr.msrb.gmra.mxu0 %vm1335_vm8, %v2374_v16 }
0x3c0b   :  { %v2423_v58 = vpop.f32.mrf.mxu0 }
0x3c0c   :  { %v2424_v17 = vadd.f32 %v2647_v35, %v2423_v58 }
0x3c0e   :  { %2428 = vst.msk [vmem:[#allocation19] sm:$0x3] %vm2427_vm2, %v2424_v17 }
0x3c0f   :  { %2439 = dma.vmem_to_hbm [thread:$0]  %s2435_s27, 32, %s2437_s22, [#allocation7]  }
0x3c13   :  { %v2425_v7 = vpop.f32.mrf.mxu0 }
0x3c14   :  { %3130 = dma.done.wait [#allocation7], 32  }
0x3c15   :  { %3131 = vsyncadd [#allocation7], 4294967264 }
0x3c16   :  { %2444 = vsyncpa [#allocation6], 1 }
0x3c17   :  { %2445 = vsyncpa [#allocation9], 1 }
0x3c18   :  { %2446 = vsyncpa [#allocation12], 1 }
0x3c19   :  { %2447 = vsyncpa [#allocation15], 1 }
0x3c1a   :  { %2448 = vsyncpa [#allocation18], 1 }
0x3c1b   :  { %2449 = vsyncpa [#allocation7], 1 }

</bundles_post_ra>
